<compile_context>
chip_gen: v5e
topology: v5e:2x2
jax: 0.10.0
libtpu: 0.0.40
codegen_flags: <defaults>
</compile_context>

<pallas_src>
import math
import functools

import jax
import jax.numpy as jnp
from jax.experimental import pallas as pl
from jax.experimental.pallas import tpu as pltpu

LN_EPS = 1e-5                      # nn.LayerNorm default eps
MATMUL_DTYPE = jnp.bfloat16        # MXU operand dtype (all TPU gens run bf16 MXU)
SPATIAL_DIM = 3
SPATIAL_PAD = 8                    # pad K=3 contraction of mlp_in to one sublane group
OUT_PAD = 128                      # lane-dense output store; sliced back to 3 in the wrapper


# ----------------------------------------------------------------------------
# In-kernel helpers (f32 element-wise math)
# ----------------------------------------------------------------------------
def _layer_norm(x, g, b, eps):
    mu = jnp.mean(x, axis=-1, keepdims=True)
    var = jnp.mean((x - mu) ** 2, axis=-1, keepdims=True)
    return (x - mu) * jax.lax.rsqrt(var + eps) * g + b


def _erf(x):
    # Abramowitz & Stegun 7.1.26 rational approximation (|err| <= ~1.5e-7 vs exact erf,
    # which is what torch nn.GELU uses). exp and the approx reciprocal go to the EUP.
    a1, a2, a3, a4, a5 = 0.254829592, -0.284496736, 1.421413741, -1.453152027, 1.061405429
    p = 0.3275911
    s = jnp.where(x >= 0.0, 1.0, -1.0)
    ax = jnp.abs(x)
    t = pl.reciprocal(1.0 + p * ax, approx=True)
    poly = ((((a5 * t + a4) * t + a3) * t + a2) * t + a1) * t
    return s * (1.0 - poly * jnp.exp(-ax * ax))


def _gelu_exact(x):
    return 0.5 * x * (1.0 + _erf(x * (1.0 / math.sqrt(2.0))))


def _softmax_lastdim(s):
    # Explicit softmax: divide replaced with EUP approx reciprocal (VALU stays light).
    m = jnp.max(s, axis=-1, keepdims=True)
    e = jnp.exp(s - m)
    denom = jnp.sum(e, axis=-1, keepdims=True)
    return e * pl.reciprocal(denom, approx=True)


# ----------------------------------------------------------------------------
# The single fused forward kernel (Bt batch elements per grid step)
# ----------------------------------------------------------------------------
def _fused_forward_kernel(pos_ref, kbias_ref, tbias_ref,
                          w_in_ref, b_in_ref,
                          w_mid_ref, b_mid_ref,
                          ln_g_ref, ln_b_ref,
                          w_qkv_ref, b_qkv_ref,
                          w_o_ref, b_o_ref,
                          ff_g_ref, ff_b_ref,
                          w1_ref, b1_ref, w2_ref, b2_ref,
                          w_out_ref, b_out_ref,
                          o_ref, *, n_layers, num_heads, hidden_dim, eps, mm_dtype):
    H = hidden_dim
    hd = H // num_heads
    scale = 1.0 / math.sqrt(hd)

    Bt, N, _ = pos_ref.shape
    R = Bt * N                                   # folded matmul row dimension

    pos = pos_ref[...].reshape(R, SPATIAL_PAD)   # [R, 8]   f32 (cols 3..7 are zero)
    key_bias = kbias_ref[...]                    # [Bt,1,N] f32 (0 valid / -1e30 padded keys)
    t_bias = tbias_ref[...]                      # [Bt,L,H] f32 (hoisted silu(t_pe)@W_t + b_t)

    # ---- mlp_in: Linear(3, H)  (tiny K -> keep f32) ----
    x = jnp.dot(pos, w_in_ref[...], preferred_element_type=jnp.float32) + b_in_ref[...]  # [R,H]

    # Static unroll over layers (L=2).
    # TODO(synk): for large n_layers switch to lax.fori_loop with dynamic w_*_ref[l] indexing
    # (and a layer grid axis) to bound vreg live ranges / VMEM-resident weight footprint.
    for l in range(n_layers):
        # ---- mlp_mid: ReLU + Linear(H,H), plus hoisted per-batch t-embedding bias ----
        h = jnp.dot(jnp.maximum(x, 0.0).astype(mm_dtype), w_mid_ref[l],
                    preferred_element_type=jnp.float32) + b_mid_ref[l]
        x = (h.reshape(Bt, N, H) + t_bias[:, l:l + 1, :]).reshape(R, H)

        # ---- SelfAttention: LN -> MHA (key_padding_mask) -> +x -> FF -> +res ----
        x_ln = _layer_norm(x, ln_g_ref[l], ln_b_ref[l], eps)
        qkv = jnp.dot(x_ln.astype(mm_dtype), w_qkv_ref[l],
                      preferred_element_type=jnp.float32) + b_qkv_ref[l]        # [R, 3H]
        q = qkv[:, :H].reshape(Bt, N, H)
        k = qkv[:, H:2 * H].reshape(Bt, N, H)
        v = qkv[:, 2 * H:].reshape(Bt, N, H)

        heads = []
        for hh in range(num_heads):              # small static loop; dots batched over Bt
            lo = hh * hd
            qh = q[:, :, lo:lo + hd].astype(mm_dtype)
            kh = k[:, :, lo:lo + hd].astype(mm_dtype)
            vh = v[:, :, lo:lo + hd].astype(mm_dtype)
            s = jnp.einsum('bqd,bkd->bqk', qh, kh,
                           preferred_element_type=jnp.float32) * scale + key_bias
            p = _softmax_lastdim(s)
            heads.append(jnp.einsum('bqk,bkd->bqd', p.astype(mm_dtype), vh,
                                    preferred_element_type=jnp.float32))
        attn = jnp.concatenate(heads, axis=-1).reshape(R, H)
        attn = jnp.dot(attn.astype(mm_dtype), w_o_ref[l],
                       preferred_element_type=jnp.float32) + b_o_ref[l] + x

        h_ln = _layer_norm(attn, ff_g_ref[l], ff_b_ref[l], eps)
        hid = _gelu_exact(jnp.dot(h_ln.astype(mm_dtype), w1_ref[l],
                                  preferred_element_type=jnp.float32) + b1_ref[l])
        ff = jnp.dot(hid.astype(mm_dtype), w2_ref[l],
                     preferred_element_type=jnp.float32) + b2_ref[l]
        x = ff + attn

    # ---- mlp_out: ReLU + Linear(H, 3) padded to 128 output lanes (lane-dense store) ----
    y = jnp.dot(jnp.maximum(x, 0.0), w_out_ref[...],
                preferred_element_type=jnp.float32) + b_out_ref[...]            # [R, 128]
    o_ref[...] = y.reshape(Bt, N, OUT_PAD).astype(o_ref.dtype)


# ----------------------------------------------------------------------------
# Plain-JAX glue: sinusoidal time embedding, parameter setup, full forward
# ----------------------------------------------------------------------------
def pos_encoding(t, proj_dims):
    # t: [B, 1] -> [B, proj_dims]   (matches Simple_FC.pos_encoding)
    inv_freq = 1.0 / (10000.0 ** (jnp.arange(0, proj_dims, 2, dtype=jnp.float32) / proj_dims))
    ang = t * inv_freq[None, :]
    return jnp.concatenate([jnp.sin(ang), jnp.cos(ang)], axis=-1)


def init_params(key, hidden_dim, n_layers=2, num_heads=4, spatial_dim=SPATIAL_DIM):
    H, L = hidden_dim, n_layers
    keys = iter(jax.random.split(key, 64))
    md = MATMUL_DTYPE

    def nrm(shape, scale=0.1):
        return jax.random.normal(next(keys), shape, dtype=jnp.float32) * scale

    p = {}
    # mlp_in: torch Linear(3, H): weight [H,3], bias [H]  -> store [3,H], [1,H]
    w, b = nrm((H, spatial_dim)), nrm((H,))
    p["w_in"], p["b_in"] = w.T, b[None, :]
    # mlp_out: torch Linear(H, 3)
    w, b = nrm((spatial_dim, H)), nrm((spatial_dim,))
    p["w_out"], p["b_out"] = w.T, b[None, :]

    w_mid, b_mid, w_t, b_t = [], [], [], []
    ln_g, ln_b, w_qkv, b_qkv, w_o, b_o = [], [], [], [], [], []
    ff_g, ff_b, w1, b1, w2, b2 = [], [], [], [], [], []
    for _ in range(L):
        w, b = nrm((H, H)), nrm((H,)); w_mid.append(w.T); b_mid.append(b[None, :])
        w, b = nrm((H, H)), nrm((H,)); w_t.append(w.T);   b_t.append(b)
        ln_g.append(jnp.ones((1, H), jnp.float32)); ln_b.append(jnp.zeros((1, H), jnp.float32))
        # MultiheadAttention: in_proj_weight [3H, H] (q|k|v stacked), in_proj_bias [3H]
        in_w, in_b = nrm((3 * H, H)), nrm((3 * H,))
        w_qkv.append(in_w.T)                        # [H, 3H], y = x @ in_w.T
        b_qkv.append(in_b[None, :])
        wo, bo = nrm((H, H)), nrm((H,)); w_o.append(wo.T); b_o.append(bo[None, :])
        ff_g.append(jnp.ones((1, H), jnp.float32)); ff_b.append(jnp.zeros((1, H), jnp.float32))
        w, b = nrm((H, H)), nrm((H,)); w1.append(w.T); b1.append(b[None, :])
        w, b = nrm((H, H)), nrm((H,)); w2.append(w.T); b2.append(b[None, :])

    stack = lambda xs: jnp.stack(xs, axis=0)
    p["w_mid"], p["b_mid"] = stack(w_mid).astype(md), stack(b_mid)
    p["w_t"], p["b_t"] = stack(w_t), stack(b_t)                 # f32, consumed in the JAX wrapper
    p["ln_g"], p["ln_b"] = stack(ln_g), stack(ln_b)
    p["w_qkv"], p["b_qkv"] = stack(w_qkv).astype(md), stack(b_qkv)
    p["w_o"], p["b_o"] = stack(w_o).astype(md), stack(b_o)
    p["ff_g"], p["ff_b"] = stack(ff_g), stack(ff_b)
    p["w1"], p["b1"] = stack(w1).astype(md), stack(b1)
    p["w2"], p["b2"] = stack(w2).astype(md), stack(b2)
    return p


def simple_fc_forward(params, pos, t, node_mask, hidden_dim, num_heads=4, block_batch=None):
    B, N, S = pos.shape
    H = hidden_dim
    L = params["w_mid"].shape[0]

    # Hoisted t-embedding branch (independent of N): silu(pos_encoding(t)) @ W_t + b_t, per layer.
    t_pe = pos_encoding(t[:, None], H)                               # [B, H]
    silu_t = t_pe * jax.nn.sigmoid(t_pe)
    t_bias = (jnp.einsum("bh,lho->blo", silu_t, params["w_t"])
              + params["b_t"][None, :, :]).astype(jnp.float32)       # [B, L, H]

    # key_padding_mask = ~node_mask -> additive bias on keys (f32-safe large negative).
    key_bias = jnp.where(node_mask, 0.0, -1e30).astype(jnp.float32)[:, None, :]   # [B, 1, N]

    # Pad the tiny contraction / output dims for clean MXU tiles and lane-dense stores.
    pos_p = jnp.pad(pos.astype(jnp.float32), ((0, 0), (0, 0), (0, SPATIAL_PAD - S)))
    w_in_p = jnp.zeros((SPATIAL_PAD, H), jnp.float32).at[:S].set(params["w_in"])
    w_out_p = jnp.zeros((H, OUT_PAD), jnp.float32).at[:, :S].set(params["w_out"])
    b_out_p = jnp.zeros((1, OUT_PAD), jnp.float32).at[:, :S].set(params["b_out"])

    # Fold batch elements per grid step so the matmul row dim is ~128 (fills MXU rows
    # and amortizes per-step overhead).
    if block_batch is None:
        block_batch = max(1, min(B, 128 // max(1, N)))
        while B % block_batch:
            block_batch -= 1
    Bt = block_batch
    # TODO(synk): on v7x prefer keeping the resulting grid length a multiple of 2 so both
    # TensorCores of a chip receive work under the "parallel" semantics.

    args = (pos_p, key_bias, t_bias,
            w_in_p, params["b_in"],
            params["w_mid"], params["b_mid"],
            params["ln_g"], params["ln_b"],
            params["w_qkv"], params["b_qkv"],
            params["w_o"], params["b_o"],
            params["ff_g"], params["ff_b"],
            params["w1"], params["b1"], params["w2"], params["b2"],
            w_out_p, b_out_p)

    def per_batch(a):   # Bt batch elements per grid step
        nd = a.ndim
        return pl.BlockSpec((Bt,) + a.shape[1:], lambda i, nd=nd: (i,) + (0,) * (nd - 1))

    def resident(a):    # full-array, grid-invariant -> loaded into VMEM once, reused every step
        nd = a.ndim
        return pl.BlockSpec(a.shape, lambda i, nd=nd: (0,) * nd)

    in_specs = [per_batch(a) for a in args[:3]] + [resident(a) for a in args[3:]]

    kernel = functools.partial(
        _fused_forward_kernel,
        n_layers=L, num_heads=num_heads, hidden_dim=H,
        eps=LN_EPS, mm_dtype=params["w_mid"].dtype)

    # NOTE: at larger hidden sizes the "all weights resident" layout must be re-budgeted for
    # v7x's 64 MiB VMEM (add a layer/K grid axis marked "arbitrary" before 14*H^2*L bf16
    # bytes approaches ~40-48 MiB, i.e. H~1.2k at L=2).
    out = pl.pallas_call(
        kernel,
        out_shape=jax.ShapeDtypeStruct((B, N, OUT_PAD), jnp.float32),
        grid=(B // Bt,),
        in_specs=in_specs,
        out_specs=pl.BlockSpec((Bt, N, OUT_PAD), lambda i: (i, 0, 0)),
        compiler_params=pltpu.CompilerParams(
            dimension_semantics=("parallel",),
            vmem_limit_bytes=32 * 1024 * 1024),   # raise v5e's 16 MiB scoped default
    )(*args)
    return out[..., :S]


if __name__ == "__main__":
    B, N, H = 2, 8, 32
    n_layers, num_heads = 2, 4

    key = jax.random.PRNGKey(0)
    kp, kt, kparam = jax.random.split(key, 3)
    pos = jax.random.normal(kp, (B, N, 3), dtype=jnp.float32)
    t = jax.random.uniform(kt, (B,), dtype=jnp.float32) * 100.0
    node_mask = jnp.ones((B, N), dtype=bool).at[1, 6:].set(False)   # last 2 nodes of batch 1 padded

    params = init_params(kparam, H, n_layers=n_layers, num_heads=num_heads)
    fwd = jax.jit(functools.partial(simple_fc_forward, hidden_dim=H, num_heads=num_heads))
    out = fwd(params, pos, t, node_mask)
    out = jax.block_until_ready(out)

    assert out.shape == (B, N, 3), out.shape
    assert bool(jnp.all(jnp.isfinite(out)))
    print("KERNEL_OK")
</pallas_src>

<mosaic_0001>
module attributes {stable_mosaic.version = 11 : i64} {
  func.func @_fused_forward_kernel(%arg0: i32, %arg1: memref<2x8x8xf32, #tpu.memory_space<vmem>>, %arg2: memref<2x1x8xf32, #tpu.memory_space<vmem>>, %arg3: memref<2x2x32xf32, #tpu.memory_space<vmem>>, %arg4: memref<8x32xf32, #tpu.memory_space<vmem>>, %arg5: memref<1x32xf32, #tpu.memory_space<vmem>>, %arg6: memref<2x32x32xbf16, #tpu.memory_space<vmem>>, %arg7: memref<2x1x32xf32, #tpu.memory_space<vmem>>, %arg8: memref<2x1x32xf32, #tpu.memory_space<vmem>>, %arg9: memref<2x1x32xf32, #tpu.memory_space<vmem>>, %arg10: memref<2x32x96xbf16, #tpu.memory_space<vmem>>, %arg11: memref<2x1x96xf32, #tpu.memory_space<vmem>>, %arg12: memref<2x32x32xbf16, #tpu.memory_space<vmem>>, %arg13: memref<2x1x32xf32, #tpu.memory_space<vmem>>, %arg14: memref<2x1x32xf32, #tpu.memory_space<vmem>>, %arg15: memref<2x1x32xf32, #tpu.memory_space<vmem>>, %arg16: memref<2x32x32xbf16, #tpu.memory_space<vmem>>, %arg17: memref<2x1x32xf32, #tpu.memory_space<vmem>>, %arg18: memref<2x32x32xbf16, #tpu.memory_space<vmem>>, %arg19: memref<2x1x32xf32, #tpu.memory_space<vmem>>, %arg20: memref<32x128xf32, #tpu.memory_space<vmem>>, %arg21: memref<1x128xf32, #tpu.memory_space<vmem>>, %arg22: memref<2x8x128xf32, #tpu.memory_space<vmem>>) attributes {dimension_semantics = [#tpu.dimension_semantics<parallel>], iteration_bounds = array<i64: 1>, scalar_prefetch = 0 : i64, scratch_operands = 0 : i64, tpu.core_type = #tpu.core_type<tc>, window_params = [{transform_indices = @transform_0, window_bounds = array<i64: 2, 8, 8>}, {transform_indices = @transform_1, window_bounds = array<i64: 2, 1, 8>}, {transform_indices = @transform_2, window_bounds = array<i64: 2, 2, 32>}, {pipeline_mode = #tpu.pipeline_mode<synchronous>, transform_indices = @transform_3, window_bounds = array<i64: 8, 32>}, {pipeline_mode = #tpu.pipeline_mode<synchronous>, transform_indices = @transform_4, window_bounds = array<i64: 1, 32>}, {pipeline_mode = #tpu.pipeline_mode<synchronous>, transform_indices = @transform_5, window_bounds = array<i64: 2, 32, 32>}, {pipeline_mode = #tpu.pipeline_mode<synchronous>, transform_indices = @transform_6, window_bounds = array<i64: 2, 1, 32>}, {pipeline_mode = #tpu.pipeline_mode<synchronous>, transform_indices = @transform_7, window_bounds = array<i64: 2, 1, 32>}, {pipeline_mode = #tpu.pipeline_mode<synchronous>, transform_indices = @transform_8, window_bounds = array<i64: 2, 1, 32>}, {pipeline_mode = #tpu.pipeline_mode<synchronous>, transform_indices = @transform_9, window_bounds = array<i64: 2, 32, 96>}, {pipeline_mode = #tpu.pipeline_mode<synchronous>, transform_indices = @transform_10, window_bounds = array<i64: 2, 1, 96>}, {pipeline_mode = #tpu.pipeline_mode<synchronous>, transform_indices = @transform_11, window_bounds = array<i64: 2, 32, 32>}, {pipeline_mode = #tpu.pipeline_mode<synchronous>, transform_indices = @transform_12, window_bounds = array<i64: 2, 1, 32>}, {pipeline_mode = #tpu.pipeline_mode<synchronous>, transform_indices = @transform_13, window_bounds = array<i64: 2, 1, 32>}, {pipeline_mode = #tpu.pipeline_mode<synchronous>, transform_indices = @transform_14, window_bounds = array<i64: 2, 1, 32>}, {pipeline_mode = #tpu.pipeline_mode<synchronous>, transform_indices = @transform_15, window_bounds = array<i64: 2, 32, 32>}, {pipeline_mode = #tpu.pipeline_mode<synchronous>, transform_indices = @transform_16, window_bounds = array<i64: 2, 1, 32>}, {pipeline_mode = #tpu.pipeline_mode<synchronous>, transform_indices = @transform_17, window_bounds = array<i64: 2, 32, 32>}, {pipeline_mode = #tpu.pipeline_mode<synchronous>, transform_indices = @transform_18, window_bounds = array<i64: 2, 1, 32>}, {pipeline_mode = #tpu.pipeline_mode<synchronous>, transform_indices = @transform_19, window_bounds = array<i64: 32, 128>}, {pipeline_mode = #tpu.pipeline_mode<synchronous>, transform_indices = @transform_20, window_bounds = array<i64: 1, 128>}, {transform_indices = @transform_21, window_bounds = array<i64: 2, 8, 128>}]} {
    %c0 = arith.constant 0 : index
    %c0_0 = arith.constant 0 : index
    %c0_1 = arith.constant 0 : index
    %0 = vector.load %arg1[%c0, %c0_0, %c0_1] : memref<2x8x8xf32, #tpu.memory_space<vmem>>, vector<2x8x8xf32>
    %1 = vector.shape_cast %0 : vector<2x8x8xf32> to vector<16x8xf32>
    %c0_2 = arith.constant 0 : index
    %c0_3 = arith.constant 0 : index
    %c0_4 = arith.constant 0 : index
    %2 = vector.load %arg2[%c0_2, %c0_3, %c0_4] : memref<2x1x8xf32, #tpu.memory_space<vmem>>, vector<2x1x8xf32>
    %c0_5 = arith.constant 0 : index
    %c0_6 = arith.constant 0 : index
    %c0_7 = arith.constant 0 : index
    %3 = vector.load %arg3[%c0_5, %c0_6, %c0_7] : memref<2x2x32xf32, #tpu.memory_space<vmem>>, vector<2x2x32xf32>
    %c0_8 = arith.constant 0 : index
    %c0_9 = arith.constant 0 : index
    %4 = vector.load %arg4[%c0_8, %c0_9] : memref<8x32xf32, #tpu.memory_space<vmem>>, vector<8x32xf32>
    %cst = arith.constant dense<0.000000e+00> : vector<16x32xf32>
    %5 = tpu.matmul %1, %4, %cst {dimension_numbers = #tpu.dot_dimension_numbers<[1], [0], [0], [1], [0, 0, 1, 1], [], []>} : vector<16x8xf32>, vector<8x32xf32>, vector<16x32xf32> -> vector<16x32xf32>
    %c0_10 = arith.constant 0 : index
    %c0_11 = arith.constant 0 : index
    %6 = vector.load %arg5[%c0_10, %c0_11] : memref<1x32xf32, #tpu.memory_space<vmem>>, vector<1x32xf32>
    %7 = vector.broadcast %6 : vector<1x32xf32> to vector<16x32xf32>
    %8 = arith.addf %5, %7 : vector<16x32xf32>
    %cst_12 = arith.constant 0.000000e+00 : f32
    %9 = vector.broadcast %cst_12 : f32 to vector<16x32xf32>
    %10 = arith.maximumf %8, %9 : vector<16x32xf32>
    %11 = arith.truncf %10 : vector<16x32xf32> to vector<16x32xbf16>
    %c0_13 = arith.constant 0 : index
    %c0_14 = arith.constant 0 : index
    %c0_15 = arith.constant 0 : index
    %12 = vector.load %arg6[%c0_13, %c0_14, %c0_15] : memref<2x32x32xbf16, #tpu.memory_space<vmem>>, vector<1x32x32xbf16>
    %13 = vector.shape_cast %12 : vector<1x32x32xbf16> to vector<32x32xbf16>
    %cst_16 = arith.constant dense<0.000000e+00> : vector<16x32xf32>
    %14 = tpu.matmul %11, %13, %cst_16 {dimension_numbers = #tpu.dot_dimension_numbers<[1], [0], [0], [1], [0, 0, 1, 1], [], []>} : vector<16x32xbf16>, vector<32x32xbf16>, vector<16x32xf32> -> vector<16x32xf32>
    %c0_17 = arith.constant 0 : index
    %c0_18 = arith.constant 0 : index
    %c0_19 = arith.constant 0 : index
    %15 = vector.load %arg7[%c0_17, %c0_18, %c0_19] : memref<2x1x32xf32, #tpu.memory_space<vmem>>, vector<1x1x32xf32>
    %16 = vector.shape_cast %15 : vector<1x1x32xf32> to vector<1x32xf32>
    %17 = vector.broadcast %16 : vector<1x32xf32> to vector<16x32xf32>
    %18 = arith.addf %14, %17 : vector<16x32xf32>
    %19 = vector.shape_cast %18 : vector<16x32xf32> to vector<2x8x32xf32>
    %20 = vector.extract_strided_slice %3 {offsets = [0, 0, 0], sizes = [2, 1, 32], strides = [1, 1, 1]} : vector<2x2x32xf32> to vector<2x1x32xf32>
    %21 = vector.broadcast %20 : vector<2x1x32xf32> to vector<2x8x32xf32>
    %22 = arith.addf %19, %21 : vector<2x8x32xf32>
    %23 = vector.shape_cast %22 : vector<2x8x32xf32> to vector<16x32xf32>
    %c0_20 = arith.constant 0 : index
    %c0_21 = arith.constant 0 : index
    %c0_22 = arith.constant 0 : index
    %24 = vector.load %arg8[%c0_20, %c0_21, %c0_22] : memref<2x1x32xf32, #tpu.memory_space<vmem>>, vector<1x1x32xf32>
    %25 = vector.shape_cast %24 : vector<1x1x32xf32> to vector<1x32xf32>
    %c0_23 = arith.constant 0 : index
    %c0_24 = arith.constant 0 : index
    %c0_25 = arith.constant 0 : index
    %26 = vector.load %arg9[%c0_23, %c0_24, %c0_25] : memref<2x1x32xf32, #tpu.memory_space<vmem>>, vector<1x1x32xf32>
    %27 = vector.shape_cast %26 : vector<1x1x32xf32> to vector<1x32xf32>
    %cst_26 = arith.constant dense<0.000000e+00> : vector<16xf32>
    %28 = vector.multi_reduction <add>, %23, %cst_26 [1] : vector<16x32xf32> to vector<16xf32>
    %29 = vector.shape_cast %28 : vector<16xf32> to vector<16x1xf32>
    %cst_27 = arith.constant 3.200000e+01 : f32
    %30 = vector.broadcast %cst_27 : f32 to vector<16x1xf32>
    %31 = arith.divf %29, %30 : vector<16x1xf32>
    %32 = vector.broadcast %31 : vector<16x1xf32> to vector<16x32xf32>
    %33 = arith.subf %23, %32 : vector<16x32xf32>
    %34 = arith.mulf %33, %33 : vector<16x32xf32>
    %cst_28 = arith.constant dense<0.000000e+00> : vector<16xf32>
    %35 = vector.multi_reduction <add>, %34, %cst_28 [1] : vector<16x32xf32> to vector<16xf32>
    %36 = vector.shape_cast %35 : vector<16xf32> to vector<16x1xf32>
    %cst_29 = arith.constant 3.200000e+01 : f32
    %37 = vector.broadcast %cst_29 : f32 to vector<16x1xf32>
    %38 = arith.divf %36, %37 : vector<16x1xf32>
    %39 = vector.broadcast %31 : vector<16x1xf32> to vector<16x32xf32>
    %40 = arith.subf %23, %39 : vector<16x32xf32>
    %cst_30 = arith.constant 9.99999974E-6 : f32
    %41 = vector.broadcast %cst_30 : f32 to vector<16x1xf32>
    %42 = arith.addf %38, %41 : vector<16x1xf32>
    %43 = math.rsqrt %42 : vector<16x1xf32>
    %44 = vector.broadcast %43 : vector<16x1xf32> to vector<16x32xf32>
    %45 = arith.mulf %40, %44 : vector<16x32xf32>
    %46 = vector.broadcast %25 : vector<1x32xf32> to vector<16x32xf32>
    %47 = arith.mulf %45, %46 : vector<16x32xf32>
    %48 = vector.broadcast %27 : vector<1x32xf32> to vector<16x32xf32>
    %49 = arith.addf %47, %48 : vector<16x32xf32>
    %50 = arith.truncf %49 : vector<16x32xf32> to vector<16x32xbf16>
    %c0_31 = arith.constant 0 : index
    %c0_32 = arith.constant 0 : index
    %c0_33 = arith.constant 0 : index
    %51 = vector.load %arg10[%c0_31, %c0_32, %c0_33] : memref<2x32x96xbf16, #tpu.memory_space<vmem>>, vector<1x32x96xbf16>
    %52 = vector.shape_cast %51 : vector<1x32x96xbf16> to vector<32x96xbf16>
    %cst_34 = arith.constant dense<0.000000e+00> : vector<16x96xf32>
    %53 = tpu.matmul %50, %52, %cst_34 {dimension_numbers = #tpu.dot_dimension_numbers<[1], [0], [0], [1], [0, 0, 1, 1], [], []>} : vector<16x32xbf16>, vector<32x96xbf16>, vector<16x96xf32> -> vector<16x96xf32>
    %c0_35 = arith.constant 0 : index
    %c0_36 = arith.constant 0 : index
    %c0_37 = arith.constant 0 : index
    %54 = vector.load %arg11[%c0_35, %c0_36, %c0_37] : memref<2x1x96xf32, #tpu.memory_space<vmem>>, vector<1x1x96xf32>
    %55 = vector.shape_cast %54 : vector<1x1x96xf32> to vector<1x96xf32>
    %56 = vector.broadcast %55 : vector<1x96xf32> to vector<16x96xf32>
    %57 = arith.addf %53, %56 : vector<16x96xf32>
    %58 = vector.extract_strided_slice %57 {offsets = [0, 0], sizes = [16, 32], strides = [1, 1]} : vector<16x96xf32> to vector<16x32xf32>
    %59 = vector.shape_cast %58 : vector<16x32xf32> to vector<2x8x32xf32>
    %60 = vector.extract_strided_slice %57 {offsets = [0, 32], sizes = [16, 32], strides = [1, 1]} : vector<16x96xf32> to vector<16x32xf32>
    %61 = vector.shape_cast %60 : vector<16x32xf32> to vector<2x8x32xf32>
    %62 = vector.extract_strided_slice %57 {offsets = [0, 64], sizes = [16, 32], strides = [1, 1]} : vector<16x96xf32> to vector<16x32xf32>
    %63 = vector.shape_cast %62 : vector<16x32xf32> to vector<2x8x32xf32>
    %64 = vector.extract_strided_slice %59 {offsets = [0, 0, 0], sizes = [2, 8, 8], strides = [1, 1, 1]} : vector<2x8x32xf32> to vector<2x8x8xf32>
    %65 = arith.truncf %64 : vector<2x8x8xf32> to vector<2x8x8xbf16>
    %66 = vector.extract_strided_slice %61 {offsets = [0, 0, 0], sizes = [2, 8, 8], strides = [1, 1, 1]} : vector<2x8x32xf32> to vector<2x8x8xf32>
    %67 = arith.truncf %66 : vector<2x8x8xf32> to vector<2x8x8xbf16>
    %68 = vector.extract_strided_slice %63 {offsets = [0, 0, 0], sizes = [2, 8, 8], strides = [1, 1, 1]} : vector<2x8x32xf32> to vector<2x8x8xf32>
    %69 = arith.truncf %68 : vector<2x8x8xf32> to vector<2x8x8xbf16>
    "tpu.trace_start"() <{level = 10 : i32, message = "bqd,bkd->bqk"}> : () -> ()
    %cst_38 = arith.constant dense<0.000000e+00> : vector<2x8x8xf32>
    %70 = tpu.matmul %65, %67, %cst_38 {dimension_numbers = #tpu.dot_dimension_numbers<[2], [2], [1], [1], [0, 0, 0, 1, 1, 1], [0], [0]>} : vector<2x8x8xbf16>, vector<2x8x8xbf16>, vector<2x8x8xf32> -> vector<2x8x8xf32>
    "tpu.trace_stop"() : () -> ()
    %cst_39 = arith.constant 0.353553385 : f32
    %71 = vector.broadcast %cst_39 : f32 to vector<2x8x8xf32>
    %72 = arith.mulf %70, %71 : vector<2x8x8xf32>
    %73 = vector.broadcast %2 : vector<2x1x8xf32> to vector<2x8x8xf32>
    %74 = arith.addf %72, %73 : vector<2x8x8xf32>
    %cst_40 = arith.constant dense<0xFF800000> : vector<2x8xf32>
    %75 = vector.multi_reduction <maximumf>, %74, %cst_40 [2] : vector<2x8x8xf32> to vector<2x8xf32>
    %76 = vector.shape_cast %75 : vector<2x8xf32> to vector<2x8x1xf32>
    %77 = vector.broadcast %76 : vector<2x8x1xf32> to vector<2x8x8xf32>
    %78 = arith.subf %74, %77 : vector<2x8x8xf32>
    %79 = math.exp %78 : vector<2x8x8xf32>
    %cst_41 = arith.constant dense<0.000000e+00> : vector<2x8xf32>
    %80 = vector.multi_reduction <add>, %79, %cst_41 [2] : vector<2x8x8xf32> to vector<2x8xf32>
    %81 = vector.shape_cast %80 : vector<2x8xf32> to vector<2x8x1xf32>
    %82 = tpu.reciprocal %81 {approx = true} : vector<2x8x1xf32> -> vector<2x8x1xf32>
    %83 = vector.broadcast %82 : vector<2x8x1xf32> to vector<2x8x8xf32>
    %84 = arith.mulf %79, %83 : vector<2x8x8xf32>
    %85 = arith.truncf %84 : vector<2x8x8xf32> to vector<2x8x8xbf16>
    "tpu.trace_start"() <{level = 10 : i32, message = "bqk,bkd->bqd"}> : () -> ()
    %cst_42 = arith.constant dense<0.000000e+00> : vector<2x8x8xf32>
    %86 = tpu.matmul %85, %69, %cst_42 {dimension_numbers = #tpu.dot_dimension_numbers<[2], [1], [1], [2], [0, 0, 0, 1, 1, 2], [0], [0]>} : vector<2x8x8xbf16>, vector<2x8x8xbf16>, vector<2x8x8xf32> -> vector<2x8x8xf32>
    "tpu.trace_stop"() : () -> ()
    %87 = vector.extract_strided_slice %59 {offsets = [0, 0, 8], sizes = [2, 8, 8], strides = [1, 1, 1]} : vector<2x8x32xf32> to vector<2x8x8xf32>
    %88 = arith.truncf %87 : vector<2x8x8xf32> to vector<2x8x8xbf16>
    %89 = vector.extract_strided_slice %61 {offsets = [0, 0, 8], sizes = [2, 8, 8], strides = [1, 1, 1]} : vector<2x8x32xf32> to vector<2x8x8xf32>
    %90 = arith.truncf %89 : vector<2x8x8xf32> to vector<2x8x8xbf16>
    %91 = vector.extract_strided_slice %63 {offsets = [0, 0, 8], sizes = [2, 8, 8], strides = [1, 1, 1]} : vector<2x8x32xf32> to vector<2x8x8xf32>
    %92 = arith.truncf %91 : vector<2x8x8xf32> to vector<2x8x8xbf16>
    "tpu.trace_start"() <{level = 10 : i32, message = "bqd,bkd->bqk"}> : () -> ()
    %cst_43 = arith.constant dense<0.000000e+00> : vector<2x8x8xf32>
    %93 = tpu.matmul %88, %90, %cst_43 {dimension_numbers = #tpu.dot_dimension_numbers<[2], [2], [1], [1], [0, 0, 0, 1, 1, 1], [0], [0]>} : vector<2x8x8xbf16>, vector<2x8x8xbf16>, vector<2x8x8xf32> -> vector<2x8x8xf32>
    "tpu.trace_stop"() : () -> ()
    %cst_44 = arith.constant 0.353553385 : f32
    %94 = vector.broadcast %cst_44 : f32 to vector<2x8x8xf32>
    %95 = arith.mulf %93, %94 : vector<2x8x8xf32>
    %96 = vector.broadcast %2 : vector<2x1x8xf32> to vector<2x8x8xf32>
    %97 = arith.addf %95, %96 : vector<2x8x8xf32>
    %cst_45 = arith.constant dense<0xFF800000> : vector<2x8xf32>
    %98 = vector.multi_reduction <maximumf>, %97, %cst_45 [2] : vector<2x8x8xf32> to vector<2x8xf32>
    %99 = vector.shape_cast %98 : vector<2x8xf32> to vector<2x8x1xf32>
    %100 = vector.broadcast %99 : vector<2x8x1xf32> to vector<2x8x8xf32>
    %101 = arith.subf %97, %100 : vector<2x8x8xf32>
    %102 = math.exp %101 : vector<2x8x8xf32>
    %cst_46 = arith.constant dense<0.000000e+00> : vector<2x8xf32>
    %103 = vector.multi_reduction <add>, %102, %cst_46 [2] : vector<2x8x8xf32> to vector<2x8xf32>
    %104 = vector.shape_cast %103 : vector<2x8xf32> to vector<2x8x1xf32>
    %105 = tpu.reciprocal %104 {approx = true} : vector<2x8x1xf32> -> vector<2x8x1xf32>
    %106 = vector.broadcast %105 : vector<2x8x1xf32> to vector<2x8x8xf32>
    %107 = arith.mulf %102, %106 : vector<2x8x8xf32>
    %108 = arith.truncf %107 : vector<2x8x8xf32> to vector<2x8x8xbf16>
    "tpu.trace_start"() <{level = 10 : i32, message = "bqk,bkd->bqd"}> : () -> ()
    %cst_47 = arith.constant dense<0.000000e+00> : vector<2x8x8xf32>
    %109 = tpu.matmul %108, %92, %cst_47 {dimension_numbers = #tpu.dot_dimension_numbers<[2], [1], [1], [2], [0, 0, 0, 1, 1, 2], [0], [0]>} : vector<2x8x8xbf16>, vector<2x8x8xbf16>, vector<2x8x8xf32> -> vector<2x8x8xf32>
    "tpu.trace_stop"() : () -> ()
    %110 = vector.extract_strided_slice %59 {offsets = [0, 0, 16], sizes = [2, 8, 8], strides = [1, 1, 1]} : vector<2x8x32xf32> to vector<2x8x8xf32>
    %111 = arith.truncf %110 : vector<2x8x8xf32> to vector<2x8x8xbf16>
    %112 = vector.extract_strided_slice %61 {offsets = [0, 0, 16], sizes = [2, 8, 8], strides = [1, 1, 1]} : vector<2x8x32xf32> to vector<2x8x8xf32>
    %113 = arith.truncf %112 : vector<2x8x8xf32> to vector<2x8x8xbf16>
    %114 = vector.extract_strided_slice %63 {offsets = [0, 0, 16], sizes = [2, 8, 8], strides = [1, 1, 1]} : vector<2x8x32xf32> to vector<2x8x8xf32>
    %115 = arith.truncf %114 : vector<2x8x8xf32> to vector<2x8x8xbf16>
    "tpu.trace_start"() <{level = 10 : i32, message = "bqd,bkd->bqk"}> : () -> ()
    %cst_48 = arith.constant dense<0.000000e+00> : vector<2x8x8xf32>
    %116 = tpu.matmul %111, %113, %cst_48 {dimension_numbers = #tpu.dot_dimension_numbers<[2], [2], [1], [1], [0, 0, 0, 1, 1, 1], [0], [0]>} : vector<2x8x8xbf16>, vector<2x8x8xbf16>, vector<2x8x8xf32> -> vector<2x8x8xf32>
    "tpu.trace_stop"() : () -> ()
    %cst_49 = arith.constant 0.353553385 : f32
    %117 = vector.broadcast %cst_49 : f32 to vector<2x8x8xf32>
    %118 = arith.mulf %116, %117 : vector<2x8x8xf32>
    %119 = vector.broadcast %2 : vector<2x1x8xf32> to vector<2x8x8xf32>
    %120 = arith.addf %118, %119 : vector<2x8x8xf32>
    %cst_50 = arith.constant dense<0xFF800000> : vector<2x8xf32>
    %121 = vector.multi_reduction <maximumf>, %120, %cst_50 [2] : vector<2x8x8xf32> to vector<2x8xf32>
    %122 = vector.shape_cast %121 : vector<2x8xf32> to vector<2x8x1xf32>
    %123 = vector.broadcast %122 : vector<2x8x1xf32> to vector<2x8x8xf32>
    %124 = arith.subf %120, %123 : vector<2x8x8xf32>
    %125 = math.exp %124 : vector<2x8x8xf32>
    %cst_51 = arith.constant dense<0.000000e+00> : vector<2x8xf32>
    %126 = vector.multi_reduction <add>, %125, %cst_51 [2] : vector<2x8x8xf32> to vector<2x8xf32>
    %127 = vector.shape_cast %126 : vector<2x8xf32> to vector<2x8x1xf32>
    %128 = tpu.reciprocal %127 {approx = true} : vector<2x8x1xf32> -> vector<2x8x1xf32>
    %129 = vector.broadcast %128 : vector<2x8x1xf32> to vector<2x8x8xf32>
    %130 = arith.mulf %125, %129 : vector<2x8x8xf32>
    %131 = arith.truncf %130 : vector<2x8x8xf32> to vector<2x8x8xbf16>
    "tpu.trace_start"() <{level = 10 : i32, message = "bqk,bkd->bqd"}> : () -> ()
    %cst_52 = arith.constant dense<0.000000e+00> : vector<2x8x8xf32>
    %132 = tpu.matmul %131, %115, %cst_52 {dimension_numbers = #tpu.dot_dimension_numbers<[2], [1], [1], [2], [0, 0, 0, 1, 1, 2], [0], [0]>} : vector<2x8x8xbf16>, vector<2x8x8xbf16>, vector<2x8x8xf32> -> vector<2x8x8xf32>
    "tpu.trace_stop"() : () -> ()
    %133 = vector.extract_strided_slice %59 {offsets = [0, 0, 24], sizes = [2, 8, 8], strides = [1, 1, 1]} : vector<2x8x32xf32> to vector<2x8x8xf32>
    %134 = arith.truncf %133 : vector<2x8x8xf32> to vector<2x8x8xbf16>
    %135 = vector.extract_strided_slice %61 {offsets = [0, 0, 24], sizes = [2, 8, 8], strides = [1, 1, 1]} : vector<2x8x32xf32> to vector<2x8x8xf32>
    %136 = arith.truncf %135 : vector<2x8x8xf32> to vector<2x8x8xbf16>
    %137 = vector.extract_strided_slice %63 {offsets = [0, 0, 24], sizes = [2, 8, 8], strides = [1, 1, 1]} : vector<2x8x32xf32> to vector<2x8x8xf32>
    %138 = arith.truncf %137 : vector<2x8x8xf32> to vector<2x8x8xbf16>
    "tpu.trace_start"() <{level = 10 : i32, message = "bqd,bkd->bqk"}> : () -> ()
    %cst_53 = arith.constant dense<0.000000e+00> : vector<2x8x8xf32>
    %139 = tpu.matmul %134, %136, %cst_53 {dimension_numbers = #tpu.dot_dimension_numbers<[2], [2], [1], [1], [0, 0, 0, 1, 1, 1], [0], [0]>} : vector<2x8x8xbf16>, vector<2x8x8xbf16>, vector<2x8x8xf32> -> vector<2x8x8xf32>
    "tpu.trace_stop"() : () -> ()
    %cst_54 = arith.constant 0.353553385 : f32
    %140 = vector.broadcast %cst_54 : f32 to vector<2x8x8xf32>
    %141 = arith.mulf %139, %140 : vector<2x8x8xf32>
    %142 = vector.broadcast %2 : vector<2x1x8xf32> to vector<2x8x8xf32>
    %143 = arith.addf %141, %142 : vector<2x8x8xf32>
    %cst_55 = arith.constant dense<0xFF800000> : vector<2x8xf32>
    %144 = vector.multi_reduction <maximumf>, %143, %cst_55 [2] : vector<2x8x8xf32> to vector<2x8xf32>
    %145 = vector.shape_cast %144 : vector<2x8xf32> to vector<2x8x1xf32>
    %146 = vector.broadcast %145 : vector<2x8x1xf32> to vector<2x8x8xf32>
    %147 = arith.subf %143, %146 : vector<2x8x8xf32>
    %148 = math.exp %147 : vector<2x8x8xf32>
    %cst_56 = arith.constant dense<0.000000e+00> : vector<2x8xf32>
    %149 = vector.multi_reduction <add>, %148, %cst_56 [2] : vector<2x8x8xf32> to vector<2x8xf32>
    %150 = vector.shape_cast %149 : vector<2x8xf32> to vector<2x8x1xf32>
    %151 = tpu.reciprocal %150 {approx = true} : vector<2x8x1xf32> -> vector<2x8x1xf32>
    %152 = vector.broadcast %151 : vector<2x8x1xf32> to vector<2x8x8xf32>
    %153 = arith.mulf %148, %152 : vector<2x8x8xf32>
    %154 = arith.truncf %153 : vector<2x8x8xf32> to vector<2x8x8xbf16>
    "tpu.trace_start"() <{level = 10 : i32, message = "bqk,bkd->bqd"}> : () -> ()
    %cst_57 = arith.constant dense<0.000000e+00> : vector<2x8x8xf32>
    %155 = tpu.matmul %154, %138, %cst_57 {dimension_numbers = #tpu.dot_dimension_numbers<[2], [1], [1], [2], [0, 0, 0, 1, 1, 2], [0], [0]>} : vector<2x8x8xbf16>, vector<2x8x8xbf16>, vector<2x8x8xf32> -> vector<2x8x8xf32>
    "tpu.trace_stop"() : () -> ()
    %156 = tpu.concatenate %86, %109, %132, %155 in 2 : vector<2x8x8xf32>, vector<2x8x8xf32>, vector<2x8x8xf32>, vector<2x8x8xf32> -> vector<2x8x32xf32>
    %157 = vector.shape_cast %156 : vector<2x8x32xf32> to vector<16x32xf32>
    %158 = arith.truncf %157 : vector<16x32xf32> to vector<16x32xbf16>
    %c0_58 = arith.constant 0 : index
    %c0_59 = arith.constant 0 : index
    %c0_60 = arith.constant 0 : index
    %159 = vector.load %arg12[%c0_58, %c0_59, %c0_60] : memref<2x32x32xbf16, #tpu.memory_space<vmem>>, vector<1x32x32xbf16>
    %160 = vector.shape_cast %159 : vector<1x32x32xbf16> to vector<32x32xbf16>
    %cst_61 = arith.constant dense<0.000000e+00> : vector<16x32xf32>
    %161 = tpu.matmul %158, %160, %cst_61 {dimension_numbers = #tpu.dot_dimension_numbers<[1], [0], [0], [1], [0, 0, 1, 1], [], []>} : vector<16x32xbf16>, vector<32x32xbf16>, vector<16x32xf32> -> vector<16x32xf32>
    %c0_62 = arith.constant 0 : index
    %c0_63 = arith.constant 0 : index
    %c0_64 = arith.constant 0 : index
    %162 = vector.load %arg13[%c0_62, %c0_63, %c0_64] : memref<2x1x32xf32, #tpu.memory_space<vmem>>, vector<1x1x32xf32>
    %163 = vector.shape_cast %162 : vector<1x1x32xf32> to vector<1x32xf32>
    %164 = vector.broadcast %163 : vector<1x32xf32> to vector<16x32xf32>
    %165 = arith.addf %161, %164 : vector<16x32xf32>
    %166 = arith.addf %165, %23 : vector<16x32xf32>
    %c0_65 = arith.constant 0 : index
    %c0_66 = arith.constant 0 : index
    %c0_67 = arith.constant 0 : index
    %167 = vector.load %arg14[%c0_65, %c0_66, %c0_67] : memref<2x1x32xf32, #tpu.memory_space<vmem>>, vector<1x1x32xf32>
    %168 = vector.shape_cast %167 : vector<1x1x32xf32> to vector<1x32xf32>
    %c0_68 = arith.constant 0 : index
    %c0_69 = arith.constant 0 : index
    %c0_70 = arith.constant 0 : index
    %169 = vector.load %arg15[%c0_68, %c0_69, %c0_70] : memref<2x1x32xf32, #tpu.memory_space<vmem>>, vector<1x1x32xf32>
    %170 = vector.shape_cast %169 : vector<1x1x32xf32> to vector<1x32xf32>
    %cst_71 = arith.constant dense<0.000000e+00> : vector<16xf32>
    %171 = vector.multi_reduction <add>, %166, %cst_71 [1] : vector<16x32xf32> to vector<16xf32>
    %172 = vector.shape_cast %171 : vector<16xf32> to vector<16x1xf32>
    %cst_72 = arith.constant 3.200000e+01 : f32
    %173 = vector.broadcast %cst_72 : f32 to vector<16x1xf32>
    %174 = arith.divf %172, %173 : vector<16x1xf32>
    %175 = vector.broadcast %174 : vector<16x1xf32> to vector<16x32xf32>
    %176 = arith.subf %166, %175 : vector<16x32xf32>
    %177 = arith.mulf %176, %176 : vector<16x32xf32>
    %cst_73 = arith.constant dense<0.000000e+00> : vector<16xf32>
    %178 = vector.multi_reduction <add>, %177, %cst_73 [1] : vector<16x32xf32> to vector<16xf32>
    %179 = vector.shape_cast %178 : vector<16xf32> to vector<16x1xf32>
    %cst_74 = arith.constant 3.200000e+01 : f32
    %180 = vector.broadcast %cst_74 : f32 to vector<16x1xf32>
    %181 = arith.divf %179, %180 : vector<16x1xf32>
    %182 = vector.broadcast %174 : vector<16x1xf32> to vector<16x32xf32>
    %183 = arith.subf %166, %182 : vector<16x32xf32>
    %cst_75 = arith.constant 9.99999974E-6 : f32
    %184 = vector.broadcast %cst_75 : f32 to vector<16x1xf32>
    %185 = arith.addf %181, %184 : vector<16x1xf32>
    %186 = math.rsqrt %185 : vector<16x1xf32>
    %187 = vector.broadcast %186 : vector<16x1xf32> to vector<16x32xf32>
    %188 = arith.mulf %183, %187 : vector<16x32xf32>
    %189 = vector.broadcast %168 : vector<1x32xf32> to vector<16x32xf32>
    %190 = arith.mulf %188, %189 : vector<16x32xf32>
    %191 = vector.broadcast %170 : vector<1x32xf32> to vector<16x32xf32>
    %192 = arith.addf %190, %191 : vector<16x32xf32>
    %193 = arith.truncf %192 : vector<16x32xf32> to vector<16x32xbf16>
    %c0_76 = arith.constant 0 : index
    %c0_77 = arith.constant 0 : index
    %c0_78 = arith.constant 0 : index
    %194 = vector.load %arg16[%c0_76, %c0_77, %c0_78] : memref<2x32x32xbf16, #tpu.memory_space<vmem>>, vector<1x32x32xbf16>
    %195 = vector.shape_cast %194 : vector<1x32x32xbf16> to vector<32x32xbf16>
    %cst_79 = arith.constant dense<0.000000e+00> : vector<16x32xf32>
    %196 = tpu.matmul %193, %195, %cst_79 {dimension_numbers = #tpu.dot_dimension_numbers<[1], [0], [0], [1], [0, 0, 1, 1], [], []>} : vector<16x32xbf16>, vector<32x32xbf16>, vector<16x32xf32> -> vector<16x32xf32>
    %c0_80 = arith.constant 0 : index
    %c0_81 = arith.constant 0 : index
    %c0_82 = arith.constant 0 : index
    %197 = vector.load %arg17[%c0_80, %c0_81, %c0_82] : memref<2x1x32xf32, #tpu.memory_space<vmem>>, vector<1x1x32xf32>
    %198 = vector.shape_cast %197 : vector<1x1x32xf32> to vector<1x32xf32>
    %199 = vector.broadcast %198 : vector<1x32xf32> to vector<16x32xf32>
    %200 = arith.addf %196, %199 : vector<16x32xf32>
    %cst_83 = arith.constant 5.000000e-01 : f32
    %201 = vector.broadcast %cst_83 : f32 to vector<16x32xf32>
    %202 = arith.mulf %201, %200 : vector<16x32xf32>
    %cst_84 = arith.constant 0.707106769 : f32
    %203 = vector.broadcast %cst_84 : f32 to vector<16x32xf32>
    %204 = arith.mulf %200, %203 : vector<16x32xf32>
    %cst_85 = arith.constant 0.000000e+00 : f32
    %205 = vector.broadcast %cst_85 : f32 to vector<16x32xf32>
    %206 = arith.cmpf oge, %204, %205 : vector<16x32xf32>
    %cst_86 = arith.constant 1.000000e+00 : f32
    %cst_87 = arith.constant -1.000000e+00 : f32
    %207 = vector.broadcast %cst_86 : f32 to vector<16x32xf32>
    %208 = vector.broadcast %cst_87 : f32 to vector<16x32xf32>
    %209 = arith.select %206, %207, %208 : vector<16x32xi1>, vector<16x32xf32>
    %210 = math.absf %204 : vector<16x32xf32>
    %cst_88 = arith.constant 0.327591091 : f32
    %211 = vector.broadcast %cst_88 : f32 to vector<16x32xf32>
    %212 = arith.mulf %211, %210 : vector<16x32xf32>
    %cst_89 = arith.constant 1.000000e+00 : f32
    %213 = vector.broadcast %cst_89 : f32 to vector<16x32xf32>
    %214 = arith.addf %213, %212 : vector<16x32xf32>
    %215 = tpu.reciprocal %214 {approx = true} : vector<16x32xf32> -> vector<16x32xf32>
    %cst_90 = arith.constant 1.06140542 : f32
    %216 = vector.broadcast %cst_90 : f32 to vector<16x32xf32>
    %217 = arith.mulf %216, %215 : vector<16x32xf32>
    %cst_91 = arith.constant -1.45315206 : f32
    %218 = vector.broadcast %cst_91 : f32 to vector<16x32xf32>
    %219 = arith.addf %217, %218 : vector<16x32xf32>
    %220 = arith.mulf %219, %215 : vector<16x32xf32>
    %cst_92 = arith.constant 1.42141378 : f32
    %221 = vector.broadcast %cst_92 : f32 to vector<16x32xf32>
    %222 = arith.addf %220, %221 : vector<16x32xf32>
    %223 = arith.mulf %222, %215 : vector<16x32xf32>
    %cst_93 = arith.constant -0.284496725 : f32
    %224 = vector.broadcast %cst_93 : f32 to vector<16x32xf32>
    %225 = arith.addf %223, %224 : vector<16x32xf32>
    %226 = arith.mulf %225, %215 : vector<16x32xf32>
    %cst_94 = arith.constant 0.254829586 : f32
    %227 = vector.broadcast %cst_94 : f32 to vector<16x32xf32>
    %228 = arith.addf %226, %227 : vector<16x32xf32>
    %229 = arith.mulf %228, %215 : vector<16x32xf32>
    %cst_95 = arith.constant 0.000000e+00 : f32
    %230 = vector.broadcast %cst_95 : f32 to vector<16x32xf32>
    %231 = arith.subf %230, %210 : vector<16x32xf32>
    %232 = arith.mulf %231, %210 : vector<16x32xf32>
    %233 = math.exp %232 : vector<16x32xf32>
    %234 = arith.mulf %229, %233 : vector<16x32xf32>
    %cst_96 = arith.constant 1.000000e+00 : f32
    %235 = vector.broadcast %cst_96 : f32 to vector<16x32xf32>
    %236 = arith.subf %235, %234 : vector<16x32xf32>
    %237 = arith.mulf %209, %236 : vector<16x32xf32>
    %cst_97 = arith.constant 1.000000e+00 : f32
    %238 = vector.broadcast %cst_97 : f32 to vector<16x32xf32>
    %239 = arith.addf %238, %237 : vector<16x32xf32>
    %240 = arith.mulf %202, %239 : vector<16x32xf32>
    %241 = arith.truncf %240 : vector<16x32xf32> to vector<16x32xbf16>
    %c0_98 = arith.constant 0 : index
    %c0_99 = arith.constant 0 : index
    %c0_100 = arith.constant 0 : index
    %242 = vector.load %arg18[%c0_98, %c0_99, %c0_100] : memref<2x32x32xbf16, #tpu.memory_space<vmem>>, vector<1x32x32xbf16>
    %243 = vector.shape_cast %242 : vector<1x32x32xbf16> to vector<32x32xbf16>
    %cst_101 = arith.constant dense<0.000000e+00> : vector<16x32xf32>
    %244 = tpu.matmul %241, %243, %cst_101 {dimension_numbers = #tpu.dot_dimension_numbers<[1], [0], [0], [1], [0, 0, 1, 1], [], []>} : vector<16x32xbf16>, vector<32x32xbf16>, vector<16x32xf32> -> vector<16x32xf32>
    %c0_102 = arith.constant 0 : index
    %c0_103 = arith.constant 0 : index
    %c0_104 = arith.constant 0 : index
    %245 = vector.load %arg19[%c0_102, %c0_103, %c0_104] : memref<2x1x32xf32, #tpu.memory_space<vmem>>, vector<1x1x32xf32>
    %246 = vector.shape_cast %245 : vector<1x1x32xf32> to vector<1x32xf32>
    %247 = vector.broadcast %246 : vector<1x32xf32> to vector<16x32xf32>
    %248 = arith.addf %244, %247 : vector<16x32xf32>
    %249 = arith.addf %248, %166 : vector<16x32xf32>
    %cst_105 = arith.constant 0.000000e+00 : f32
    %250 = vector.broadcast %cst_105 : f32 to vector<16x32xf32>
    %251 = arith.maximumf %249, %250 : vector<16x32xf32>
    %252 = arith.truncf %251 : vector<16x32xf32> to vector<16x32xbf16>
    %c1 = arith.constant 1 : index
    %c0_106 = arith.constant 0 : index
    %c0_107 = arith.constant 0 : index
    %253 = vector.load %arg6[%c1, %c0_106, %c0_107] : memref<2x32x32xbf16, #tpu.memory_space<vmem>>, vector<1x32x32xbf16>
    %254 = vector.shape_cast %253 : vector<1x32x32xbf16> to vector<32x32xbf16>
    %cst_108 = arith.constant dense<0.000000e+00> : vector<16x32xf32>
    %255 = tpu.matmul %252, %254, %cst_108 {dimension_numbers = #tpu.dot_dimension_numbers<[1], [0], [0], [1], [0, 0, 1, 1], [], []>} : vector<16x32xbf16>, vector<32x32xbf16>, vector<16x32xf32> -> vector<16x32xf32>
    %c1_109 = arith.constant 1 : index
    %c0_110 = arith.constant 0 : index
    %c0_111 = arith.constant 0 : index
    %256 = vector.load %arg7[%c1_109, %c0_110, %c0_111] : memref<2x1x32xf32, #tpu.memory_space<vmem>>, vector<1x1x32xf32>
    %257 = vector.shape_cast %256 : vector<1x1x32xf32> to vector<1x32xf32>
    %258 = vector.broadcast %257 : vector<1x32xf32> to vector<16x32xf32>
    %259 = arith.addf %255, %258 : vector<16x32xf32>
    %260 = vector.shape_cast %259 : vector<16x32xf32> to vector<2x8x32xf32>
    %261 = vector.extract_strided_slice %3 {offsets = [0, 1, 0], sizes = [2, 1, 32], strides = [1, 1, 1]} : vector<2x2x32xf32> to vector<2x1x32xf32>
    %262 = vector.broadcast %261 : vector<2x1x32xf32> to vector<2x8x32xf32>
    %263 = arith.addf %260, %262 : vector<2x8x32xf32>
    %264 = vector.shape_cast %263 : vector<2x8x32xf32> to vector<16x32xf32>
    %c1_112 = arith.constant 1 : index
    %c0_113 = arith.constant 0 : index
    %c0_114 = arith.constant 0 : index
    %265 = vector.load %arg8[%c1_112, %c0_113, %c0_114] : memref<2x1x32xf32, #tpu.memory_space<vmem>>, vector<1x1x32xf32>
    %266 = vector.shape_cast %265 : vector<1x1x32xf32> to vector<1x32xf32>
    %c1_115 = arith.constant 1 : index
    %c0_116 = arith.constant 0 : index
    %c0_117 = arith.constant 0 : index
    %267 = vector.load %arg9[%c1_115, %c0_116, %c0_117] : memref<2x1x32xf32, #tpu.memory_space<vmem>>, vector<1x1x32xf32>
    %268 = vector.shape_cast %267 : vector<1x1x32xf32> to vector<1x32xf32>
    %cst_118 = arith.constant dense<0.000000e+00> : vector<16xf32>
    %269 = vector.multi_reduction <add>, %264, %cst_118 [1] : vector<16x32xf32> to vector<16xf32>
    %270 = vector.shape_cast %269 : vector<16xf32> to vector<16x1xf32>
    %cst_119 = arith.constant 3.200000e+01 : f32
    %271 = vector.broadcast %cst_119 : f32 to vector<16x1xf32>
    %272 = arith.divf %270, %271 : vector<16x1xf32>
    %273 = vector.broadcast %272 : vector<16x1xf32> to vector<16x32xf32>
    %274 = arith.subf %264, %273 : vector<16x32xf32>
    %275 = arith.mulf %274, %274 : vector<16x32xf32>
    %cst_120 = arith.constant dense<0.000000e+00> : vector<16xf32>
    %276 = vector.multi_reduction <add>, %275, %cst_120 [1] : vector<16x32xf32> to vector<16xf32>
    %277 = vector.shape_cast %276 : vector<16xf32> to vector<16x1xf32>
    %cst_121 = arith.constant 3.200000e+01 : f32
    %278 = vector.broadcast %cst_121 : f32 to vector<16x1xf32>
    %279 = arith.divf %277, %278 : vector<16x1xf32>
    %280 = vector.broadcast %272 : vector<16x1xf32> to vector<16x32xf32>
    %281 = arith.subf %264, %280 : vector<16x32xf32>
    %cst_122 = arith.constant 9.99999974E-6 : f32
    %282 = vector.broadcast %cst_122 : f32 to vector<16x1xf32>
    %283 = arith.addf %279, %282 : vector<16x1xf32>
    %284 = math.rsqrt %283 : vector<16x1xf32>
    %285 = vector.broadcast %284 : vector<16x1xf32> to vector<16x32xf32>
    %286 = arith.mulf %281, %285 : vector<16x32xf32>
    %287 = vector.broadcast %266 : vector<1x32xf32> to vector<16x32xf32>
    %288 = arith.mulf %286, %287 : vector<16x32xf32>
    %289 = vector.broadcast %268 : vector<1x32xf32> to vector<16x32xf32>
    %290 = arith.addf %288, %289 : vector<16x32xf32>
    %291 = arith.truncf %290 : vector<16x32xf32> to vector<16x32xbf16>
    %c1_123 = arith.constant 1 : index
    %c0_124 = arith.constant 0 : index
    %c0_125 = arith.constant 0 : index
    %292 = vector.load %arg10[%c1_123, %c0_124, %c0_125] : memref<2x32x96xbf16, #tpu.memory_space<vmem>>, vector<1x32x96xbf16>
    %293 = vector.shape_cast %292 : vector<1x32x96xbf16> to vector<32x96xbf16>
    %cst_126 = arith.constant dense<0.000000e+00> : vector<16x96xf32>
    %294 = tpu.matmul %291, %293, %cst_126 {dimension_numbers = #tpu.dot_dimension_numbers<[1], [0], [0], [1], [0, 0, 1, 1], [], []>} : vector<16x32xbf16>, vector<32x96xbf16>, vector<16x96xf32> -> vector<16x96xf32>
    %c1_127 = arith.constant 1 : index
    %c0_128 = arith.constant 0 : index
    %c0_129 = arith.constant 0 : index
    %295 = vector.load %arg11[%c1_127, %c0_128, %c0_129] : memref<2x1x96xf32, #tpu.memory_space<vmem>>, vector<1x1x96xf32>
    %296 = vector.shape_cast %295 : vector<1x1x96xf32> to vector<1x96xf32>
    %297 = vector.broadcast %296 : vector<1x96xf32> to vector<16x96xf32>
    %298 = arith.addf %294, %297 : vector<16x96xf32>
    %299 = vector.extract_strided_slice %298 {offsets = [0, 0], sizes = [16, 32], strides = [1, 1]} : vector<16x96xf32> to vector<16x32xf32>
    %300 = vector.shape_cast %299 : vector<16x32xf32> to vector<2x8x32xf32>
    %301 = vector.extract_strided_slice %298 {offsets = [0, 32], sizes = [16, 32], strides = [1, 1]} : vector<16x96xf32> to vector<16x32xf32>
    %302 = vector.shape_cast %301 : vector<16x32xf32> to vector<2x8x32xf32>
    %303 = vector.extract_strided_slice %298 {offsets = [0, 64], sizes = [16, 32], strides = [1, 1]} : vector<16x96xf32> to vector<16x32xf32>
    %304 = vector.shape_cast %303 : vector<16x32xf32> to vector<2x8x32xf32>
    %305 = vector.extract_strided_slice %300 {offsets = [0, 0, 0], sizes = [2, 8, 8], strides = [1, 1, 1]} : vector<2x8x32xf32> to vector<2x8x8xf32>
    %306 = arith.truncf %305 : vector<2x8x8xf32> to vector<2x8x8xbf16>
    %307 = vector.extract_strided_slice %302 {offsets = [0, 0, 0], sizes = [2, 8, 8], strides = [1, 1, 1]} : vector<2x8x32xf32> to vector<2x8x8xf32>
    %308 = arith.truncf %307 : vector<2x8x8xf32> to vector<2x8x8xbf16>
    %309 = vector.extract_strided_slice %304 {offsets = [0, 0, 0], sizes = [2, 8, 8], strides = [1, 1, 1]} : vector<2x8x32xf32> to vector<2x8x8xf32>
    %310 = arith.truncf %309 : vector<2x8x8xf32> to vector<2x8x8xbf16>
    "tpu.trace_start"() <{level = 10 : i32, message = "bqd,bkd->bqk"}> : () -> ()
    %cst_130 = arith.constant dense<0.000000e+00> : vector<2x8x8xf32>
    %311 = tpu.matmul %306, %308, %cst_130 {dimension_numbers = #tpu.dot_dimension_numbers<[2], [2], [1], [1], [0, 0, 0, 1, 1, 1], [0], [0]>} : vector<2x8x8xbf16>, vector<2x8x8xbf16>, vector<2x8x8xf32> -> vector<2x8x8xf32>
    "tpu.trace_stop"() : () -> ()
    %cst_131 = arith.constant 0.353553385 : f32
    %312 = vector.broadcast %cst_131 : f32 to vector<2x8x8xf32>
    %313 = arith.mulf %311, %312 : vector<2x8x8xf32>
    %314 = vector.broadcast %2 : vector<2x1x8xf32> to vector<2x8x8xf32>
    %315 = arith.addf %313, %314 : vector<2x8x8xf32>
    %cst_132 = arith.constant dense<0xFF800000> : vector<2x8xf32>
    %316 = vector.multi_reduction <maximumf>, %315, %cst_132 [2] : vector<2x8x8xf32> to vector<2x8xf32>
    %317 = vector.shape_cast %316 : vector<2x8xf32> to vector<2x8x1xf32>
    %318 = vector.broadcast %317 : vector<2x8x1xf32> to vector<2x8x8xf32>
    %319 = arith.subf %315, %318 : vector<2x8x8xf32>
    %320 = math.exp %319 : vector<2x8x8xf32>
    %cst_133 = arith.constant dense<0.000000e+00> : vector<2x8xf32>
    %321 = vector.multi_reduction <add>, %320, %cst_133 [2] : vector<2x8x8xf32> to vector<2x8xf32>
    %322 = vector.shape_cast %321 : vector<2x8xf32> to vector<2x8x1xf32>
    %323 = tpu.reciprocal %322 {approx = true} : vector<2x8x1xf32> -> vector<2x8x1xf32>
    %324 = vector.broadcast %323 : vector<2x8x1xf32> to vector<2x8x8xf32>
    %325 = arith.mulf %320, %324 : vector<2x8x8xf32>
    %326 = arith.truncf %325 : vector<2x8x8xf32> to vector<2x8x8xbf16>
    "tpu.trace_start"() <{level = 10 : i32, message = "bqk,bkd->bqd"}> : () -> ()
    %cst_134 = arith.constant dense<0.000000e+00> : vector<2x8x8xf32>
    %327 = tpu.matmul %326, %310, %cst_134 {dimension_numbers = #tpu.dot_dimension_numbers<[2], [1], [1], [2], [0, 0, 0, 1, 1, 2], [0], [0]>} : vector<2x8x8xbf16>, vector<2x8x8xbf16>, vector<2x8x8xf32> -> vector<2x8x8xf32>
    "tpu.trace_stop"() : () -> ()
    %328 = vector.extract_strided_slice %300 {offsets = [0, 0, 8], sizes = [2, 8, 8], strides = [1, 1, 1]} : vector<2x8x32xf32> to vector<2x8x8xf32>
    %329 = arith.truncf %328 : vector<2x8x8xf32> to vector<2x8x8xbf16>
    %330 = vector.extract_strided_slice %302 {offsets = [0, 0, 8], sizes = [2, 8, 8], strides = [1, 1, 1]} : vector<2x8x32xf32> to vector<2x8x8xf32>
    %331 = arith.truncf %330 : vector<2x8x8xf32> to vector<2x8x8xbf16>
    %332 = vector.extract_strided_slice %304 {offsets = [0, 0, 8], sizes = [2, 8, 8], strides = [1, 1, 1]} : vector<2x8x32xf32> to vector<2x8x8xf32>
    %333 = arith.truncf %332 : vector<2x8x8xf32> to vector<2x8x8xbf16>
    "tpu.trace_start"() <{level = 10 : i32, message = "bqd,bkd->bqk"}> : () -> ()
    %cst_135 = arith.constant dense<0.000000e+00> : vector<2x8x8xf32>
    %334 = tpu.matmul %329, %331, %cst_135 {dimension_numbers = #tpu.dot_dimension_numbers<[2], [2], [1], [1], [0, 0, 0, 1, 1, 1], [0], [0]>} : vector<2x8x8xbf16>, vector<2x8x8xbf16>, vector<2x8x8xf32> -> vector<2x8x8xf32>
    "tpu.trace_stop"() : () -> ()
    %cst_136 = arith.constant 0.353553385 : f32
    %335 = vector.broadcast %cst_136 : f32 to vector<2x8x8xf32>
    %336 = arith.mulf %334, %335 : vector<2x8x8xf32>
    %337 = vector.broadcast %2 : vector<2x1x8xf32> to vector<2x8x8xf32>
    %338 = arith.addf %336, %337 : vector<2x8x8xf32>
    %cst_137 = arith.constant dense<0xFF800000> : vector<2x8xf32>
    %339 = vector.multi_reduction <maximumf>, %338, %cst_137 [2] : vector<2x8x8xf32> to vector<2x8xf32>
    %340 = vector.shape_cast %339 : vector<2x8xf32> to vector<2x8x1xf32>
    %341 = vector.broadcast %340 : vector<2x8x1xf32> to vector<2x8x8xf32>
    %342 = arith.subf %338, %341 : vector<2x8x8xf32>
    %343 = math.exp %342 : vector<2x8x8xf32>
    %cst_138 = arith.constant dense<0.000000e+00> : vector<2x8xf32>
    %344 = vector.multi_reduction <add>, %343, %cst_138 [2] : vector<2x8x8xf32> to vector<2x8xf32>
    %345 = vector.shape_cast %344 : vector<2x8xf32> to vector<2x8x1xf32>
    %346 = tpu.reciprocal %345 {approx = true} : vector<2x8x1xf32> -> vector<2x8x1xf32>
    %347 = vector.broadcast %346 : vector<2x8x1xf32> to vector<2x8x8xf32>
    %348 = arith.mulf %343, %347 : vector<2x8x8xf32>
    %349 = arith.truncf %348 : vector<2x8x8xf32> to vector<2x8x8xbf16>
    "tpu.trace_start"() <{level = 10 : i32, message = "bqk,bkd->bqd"}> : () -> ()
    %cst_139 = arith.constant dense<0.000000e+00> : vector<2x8x8xf32>
    %350 = tpu.matmul %349, %333, %cst_139 {dimension_numbers = #tpu.dot_dimension_numbers<[2], [1], [1], [2], [0, 0, 0, 1, 1, 2], [0], [0]>} : vector<2x8x8xbf16>, vector<2x8x8xbf16>, vector<2x8x8xf32> -> vector<2x8x8xf32>
    "tpu.trace_stop"() : () -> ()
    %351 = vector.extract_strided_slice %300 {offsets = [0, 0, 16], sizes = [2, 8, 8], strides = [1, 1, 1]} : vector<2x8x32xf32> to vector<2x8x8xf32>
    %352 = arith.truncf %351 : vector<2x8x8xf32> to vector<2x8x8xbf16>
    %353 = vector.extract_strided_slice %302 {offsets = [0, 0, 16], sizes = [2, 8, 8], strides = [1, 1, 1]} : vector<2x8x32xf32> to vector<2x8x8xf32>
    %354 = arith.truncf %353 : vector<2x8x8xf32> to vector<2x8x8xbf16>
    %355 = vector.extract_strided_slice %304 {offsets = [0, 0, 16], sizes = [2, 8, 8], strides = [1, 1, 1]} : vector<2x8x32xf32> to vector<2x8x8xf32>
    %356 = arith.truncf %355 : vector<2x8x8xf32> to vector<2x8x8xbf16>
    "tpu.trace_start"() <{level = 10 : i32, message = "bqd,bkd->bqk"}> : () -> ()
    %cst_140 = arith.constant dense<0.000000e+00> : vector<2x8x8xf32>
    %357 = tpu.matmul %352, %354, %cst_140 {dimension_numbers = #tpu.dot_dimension_numbers<[2], [2], [1], [1], [0, 0, 0, 1, 1, 1], [0], [0]>} : vector<2x8x8xbf16>, vector<2x8x8xbf16>, vector<2x8x8xf32> -> vector<2x8x8xf32>
    "tpu.trace_stop"() : () -> ()
    %cst_141 = arith.constant 0.353553385 : f32
    %358 = vector.broadcast %cst_141 : f32 to vector<2x8x8xf32>
    %359 = arith.mulf %357, %358 : vector<2x8x8xf32>
    %360 = vector.broadcast %2 : vector<2x1x8xf32> to vector<2x8x8xf32>
    %361 = arith.addf %359, %360 : vector<2x8x8xf32>
    %cst_142 = arith.constant dense<0xFF800000> : vector<2x8xf32>
    %362 = vector.multi_reduction <maximumf>, %361, %cst_142 [2] : vector<2x8x8xf32> to vector<2x8xf32>
    %363 = vector.shape_cast %362 : vector<2x8xf32> to vector<2x8x1xf32>
    %364 = vector.broadcast %363 : vector<2x8x1xf32> to vector<2x8x8xf32>
    %365 = arith.subf %361, %364 : vector<2x8x8xf32>
    %366 = math.exp %365 : vector<2x8x8xf32>
    %cst_143 = arith.constant dense<0.000000e+00> : vector<2x8xf32>
    %367 = vector.multi_reduction <add>, %366, %cst_143 [2] : vector<2x8x8xf32> to vector<2x8xf32>
    %368 = vector.shape_cast %367 : vector<2x8xf32> to vector<2x8x1xf32>
    %369 = tpu.reciprocal %368 {approx = true} : vector<2x8x1xf32> -> vector<2x8x1xf32>
    %370 = vector.broadcast %369 : vector<2x8x1xf32> to vector<2x8x8xf32>
    %371 = arith.mulf %366, %370 : vector<2x8x8xf32>
    %372 = arith.truncf %371 : vector<2x8x8xf32> to vector<2x8x8xbf16>
    "tpu.trace_start"() <{level = 10 : i32, message = "bqk,bkd->bqd"}> : () -> ()
    %cst_144 = arith.constant dense<0.000000e+00> : vector<2x8x8xf32>
    %373 = tpu.matmul %372, %356, %cst_144 {dimension_numbers = #tpu.dot_dimension_numbers<[2], [1], [1], [2], [0, 0, 0, 1, 1, 2], [0], [0]>} : vector<2x8x8xbf16>, vector<2x8x8xbf16>, vector<2x8x8xf32> -> vector<2x8x8xf32>
    "tpu.trace_stop"() : () -> ()
    %374 = vector.extract_strided_slice %300 {offsets = [0, 0, 24], sizes = [2, 8, 8], strides = [1, 1, 1]} : vector<2x8x32xf32> to vector<2x8x8xf32>
    %375 = arith.truncf %374 : vector<2x8x8xf32> to vector<2x8x8xbf16>
    %376 = vector.extract_strided_slice %302 {offsets = [0, 0, 24], sizes = [2, 8, 8], strides = [1, 1, 1]} : vector<2x8x32xf32> to vector<2x8x8xf32>
    %377 = arith.truncf %376 : vector<2x8x8xf32> to vector<2x8x8xbf16>
    %378 = vector.extract_strided_slice %304 {offsets = [0, 0, 24], sizes = [2, 8, 8], strides = [1, 1, 1]} : vector<2x8x32xf32> to vector<2x8x8xf32>
    %379 = arith.truncf %378 : vector<2x8x8xf32> to vector<2x8x8xbf16>
    "tpu.trace_start"() <{level = 10 : i32, message = "bqd,bkd->bqk"}> : () -> ()
    %cst_145 = arith.constant dense<0.000000e+00> : vector<2x8x8xf32>
    %380 = tpu.matmul %375, %377, %cst_145 {dimension_numbers = #tpu.dot_dimension_numbers<[2], [2], [1], [1], [0, 0, 0, 1, 1, 1], [0], [0]>} : vector<2x8x8xbf16>, vector<2x8x8xbf16>, vector<2x8x8xf32> -> vector<2x8x8xf32>
    "tpu.trace_stop"() : () -> ()
    %cst_146 = arith.constant 0.353553385 : f32
    %381 = vector.broadcast %cst_146 : f32 to vector<2x8x8xf32>
    %382 = arith.mulf %380, %381 : vector<2x8x8xf32>
    %383 = vector.broadcast %2 : vector<2x1x8xf32> to vector<2x8x8xf32>
    %384 = arith.addf %382, %383 : vector<2x8x8xf32>
    %cst_147 = arith.constant dense<0xFF800000> : vector<2x8xf32>
    %385 = vector.multi_reduction <maximumf>, %384, %cst_147 [2] : vector<2x8x8xf32> to vector<2x8xf32>
    %386 = vector.shape_cast %385 : vector<2x8xf32> to vector<2x8x1xf32>
    %387 = vector.broadcast %386 : vector<2x8x1xf32> to vector<2x8x8xf32>
    %388 = arith.subf %384, %387 : vector<2x8x8xf32>
    %389 = math.exp %388 : vector<2x8x8xf32>
    %cst_148 = arith.constant dense<0.000000e+00> : vector<2x8xf32>
    %390 = vector.multi_reduction <add>, %389, %cst_148 [2] : vector<2x8x8xf32> to vector<2x8xf32>
    %391 = vector.shape_cast %390 : vector<2x8xf32> to vector<2x8x1xf32>
    %392 = tpu.reciprocal %391 {approx = true} : vector<2x8x1xf32> -> vector<2x8x1xf32>
    %393 = vector.broadcast %392 : vector<2x8x1xf32> to vector<2x8x8xf32>
    %394 = arith.mulf %389, %393 : vector<2x8x8xf32>
    %395 = arith.truncf %394 : vector<2x8x8xf32> to vector<2x8x8xbf16>
    "tpu.trace_start"() <{level = 10 : i32, message = "bqk,bkd->bqd"}> : () -> ()
    %cst_149 = arith.constant dense<0.000000e+00> : vector<2x8x8xf32>
    %396 = tpu.matmul %395, %379, %cst_149 {dimension_numbers = #tpu.dot_dimension_numbers<[2], [1], [1], [2], [0, 0, 0, 1, 1, 2], [0], [0]>} : vector<2x8x8xbf16>, vector<2x8x8xbf16>, vector<2x8x8xf32> -> vector<2x8x8xf32>
    "tpu.trace_stop"() : () -> ()
    %397 = tpu.concatenate %327, %350, %373, %396 in 2 : vector<2x8x8xf32>, vector<2x8x8xf32>, vector<2x8x8xf32>, vector<2x8x8xf32> -> vector<2x8x32xf32>
    %398 = vector.shape_cast %397 : vector<2x8x32xf32> to vector<16x32xf32>
    %399 = arith.truncf %398 : vector<16x32xf32> to vector<16x32xbf16>
    %c1_150 = arith.constant 1 : index
    %c0_151 = arith.constant 0 : index
    %c0_152 = arith.constant 0 : index
    %400 = vector.load %arg12[%c1_150, %c0_151, %c0_152] : memref<2x32x32xbf16, #tpu.memory_space<vmem>>, vector<1x32x32xbf16>
    %401 = vector.shape_cast %400 : vector<1x32x32xbf16> to vector<32x32xbf16>
    %cst_153 = arith.constant dense<0.000000e+00> : vector<16x32xf32>
    %402 = tpu.matmul %399, %401, %cst_153 {dimension_numbers = #tpu.dot_dimension_numbers<[1], [0], [0], [1], [0, 0, 1, 1], [], []>} : vector<16x32xbf16>, vector<32x32xbf16>, vector<16x32xf32> -> vector<16x32xf32>
    %c1_154 = arith.constant 1 : index
    %c0_155 = arith.constant 0 : index
    %c0_156 = arith.constant 0 : index
    %403 = vector.load %arg13[%c1_154, %c0_155, %c0_156] : memref<2x1x32xf32, #tpu.memory_space<vmem>>, vector<1x1x32xf32>
    %404 = vector.shape_cast %403 : vector<1x1x32xf32> to vector<1x32xf32>
    %405 = vector.broadcast %404 : vector<1x32xf32> to vector<16x32xf32>
    %406 = arith.addf %402, %405 : vector<16x32xf32>
    %407 = arith.addf %406, %264 : vector<16x32xf32>
    %c1_157 = arith.constant 1 : index
    %c0_158 = arith.constant 0 : index
    %c0_159 = arith.constant 0 : index
    %408 = vector.load %arg14[%c1_157, %c0_158, %c0_159] : memref<2x1x32xf32, #tpu.memory_space<vmem>>, vector<1x1x32xf32>
    %409 = vector.shape_cast %408 : vector<1x1x32xf32> to vector<1x32xf32>
    %c1_160 = arith.constant 1 : index
    %c0_161 = arith.constant 0 : index
    %c0_162 = arith.constant 0 : index
    %410 = vector.load %arg15[%c1_160, %c0_161, %c0_162] : memref<2x1x32xf32, #tpu.memory_space<vmem>>, vector<1x1x32xf32>
    %411 = vector.shape_cast %410 : vector<1x1x32xf32> to vector<1x32xf32>
    %cst_163 = arith.constant dense<0.000000e+00> : vector<16xf32>
    %412 = vector.multi_reduction <add>, %407, %cst_163 [1] : vector<16x32xf32> to vector<16xf32>
    %413 = vector.shape_cast %412 : vector<16xf32> to vector<16x1xf32>
    %cst_164 = arith.constant 3.200000e+01 : f32
    %414 = vector.broadcast %cst_164 : f32 to vector<16x1xf32>
    %415 = arith.divf %413, %414 : vector<16x1xf32>
    %416 = vector.broadcast %415 : vector<16x1xf32> to vector<16x32xf32>
    %417 = arith.subf %407, %416 : vector<16x32xf32>
    %418 = arith.mulf %417, %417 : vector<16x32xf32>
    %cst_165 = arith.constant dense<0.000000e+00> : vector<16xf32>
    %419 = vector.multi_reduction <add>, %418, %cst_165 [1] : vector<16x32xf32> to vector<16xf32>
    %420 = vector.shape_cast %419 : vector<16xf32> to vector<16x1xf32>
    %cst_166 = arith.constant 3.200000e+01 : f32
    %421 = vector.broadcast %cst_166 : f32 to vector<16x1xf32>
    %422 = arith.divf %420, %421 : vector<16x1xf32>
    %423 = vector.broadcast %415 : vector<16x1xf32> to vector<16x32xf32>
    %424 = arith.subf %407, %423 : vector<16x32xf32>
    %cst_167 = arith.constant 9.99999974E-6 : f32
    %425 = vector.broadcast %cst_167 : f32 to vector<16x1xf32>
    %426 = arith.addf %422, %425 : vector<16x1xf32>
    %427 = math.rsqrt %426 : vector<16x1xf32>
    %428 = vector.broadcast %427 : vector<16x1xf32> to vector<16x32xf32>
    %429 = arith.mulf %424, %428 : vector<16x32xf32>
    %430 = vector.broadcast %409 : vector<1x32xf32> to vector<16x32xf32>
    %431 = arith.mulf %429, %430 : vector<16x32xf32>
    %432 = vector.broadcast %411 : vector<1x32xf32> to vector<16x32xf32>
    %433 = arith.addf %431, %432 : vector<16x32xf32>
    %434 = arith.truncf %433 : vector<16x32xf32> to vector<16x32xbf16>
    %c1_168 = arith.constant 1 : index
    %c0_169 = arith.constant 0 : index
    %c0_170 = arith.constant 0 : index
    %435 = vector.load %arg16[%c1_168, %c0_169, %c0_170] : memref<2x32x32xbf16, #tpu.memory_space<vmem>>, vector<1x32x32xbf16>
    %436 = vector.shape_cast %435 : vector<1x32x32xbf16> to vector<32x32xbf16>
    %cst_171 = arith.constant dense<0.000000e+00> : vector<16x32xf32>
    %437 = tpu.matmul %434, %436, %cst_171 {dimension_numbers = #tpu.dot_dimension_numbers<[1], [0], [0], [1], [0, 0, 1, 1], [], []>} : vector<16x32xbf16>, vector<32x32xbf16>, vector<16x32xf32> -> vector<16x32xf32>
    %c1_172 = arith.constant 1 : index
    %c0_173 = arith.constant 0 : index
    %c0_174 = arith.constant 0 : index
    %438 = vector.load %arg17[%c1_172, %c0_173, %c0_174] : memref<2x1x32xf32, #tpu.memory_space<vmem>>, vector<1x1x32xf32>
    %439 = vector.shape_cast %438 : vector<1x1x32xf32> to vector<1x32xf32>
    %440 = vector.broadcast %439 : vector<1x32xf32> to vector<16x32xf32>
    %441 = arith.addf %437, %440 : vector<16x32xf32>
    %cst_175 = arith.constant 5.000000e-01 : f32
    %442 = vector.broadcast %cst_175 : f32 to vector<16x32xf32>
    %443 = arith.mulf %442, %441 : vector<16x32xf32>
    %cst_176 = arith.constant 0.707106769 : f32
    %444 = vector.broadcast %cst_176 : f32 to vector<16x32xf32>
    %445 = arith.mulf %441, %444 : vector<16x32xf32>
    %cst_177 = arith.constant 0.000000e+00 : f32
    %446 = vector.broadcast %cst_177 : f32 to vector<16x32xf32>
    %447 = arith.cmpf oge, %445, %446 : vector<16x32xf32>
    %cst_178 = arith.constant 1.000000e+00 : f32
    %cst_179 = arith.constant -1.000000e+00 : f32
    %448 = vector.broadcast %cst_178 : f32 to vector<16x32xf32>
    %449 = vector.broadcast %cst_179 : f32 to vector<16x32xf32>
    %450 = arith.select %447, %448, %449 : vector<16x32xi1>, vector<16x32xf32>
    %451 = math.absf %445 : vector<16x32xf32>
    %cst_180 = arith.constant 0.327591091 : f32
    %452 = vector.broadcast %cst_180 : f32 to vector<16x32xf32>
    %453 = arith.mulf %452, %451 : vector<16x32xf32>
    %cst_181 = arith.constant 1.000000e+00 : f32
    %454 = vector.broadcast %cst_181 : f32 to vector<16x32xf32>
    %455 = arith.addf %454, %453 : vector<16x32xf32>
    %456 = tpu.reciprocal %455 {approx = true} : vector<16x32xf32> -> vector<16x32xf32>
    %cst_182 = arith.constant 1.06140542 : f32
    %457 = vector.broadcast %cst_182 : f32 to vector<16x32xf32>
    %458 = arith.mulf %457, %456 : vector<16x32xf32>
    %cst_183 = arith.constant -1.45315206 : f32
    %459 = vector.broadcast %cst_183 : f32 to vector<16x32xf32>
    %460 = arith.addf %458, %459 : vector<16x32xf32>
    %461 = arith.mulf %460, %456 : vector<16x32xf32>
    %cst_184 = arith.constant 1.42141378 : f32
    %462 = vector.broadcast %cst_184 : f32 to vector<16x32xf32>
    %463 = arith.addf %461, %462 : vector<16x32xf32>
    %464 = arith.mulf %463, %456 : vector<16x32xf32>
    %cst_185 = arith.constant -0.284496725 : f32
    %465 = vector.broadcast %cst_185 : f32 to vector<16x32xf32>
    %466 = arith.addf %464, %465 : vector<16x32xf32>
    %467 = arith.mulf %466, %456 : vector<16x32xf32>
    %cst_186 = arith.constant 0.254829586 : f32
    %468 = vector.broadcast %cst_186 : f32 to vector<16x32xf32>
    %469 = arith.addf %467, %468 : vector<16x32xf32>
    %470 = arith.mulf %469, %456 : vector<16x32xf32>
    %cst_187 = arith.constant 0.000000e+00 : f32
    %471 = vector.broadcast %cst_187 : f32 to vector<16x32xf32>
    %472 = arith.subf %471, %451 : vector<16x32xf32>
    %473 = arith.mulf %472, %451 : vector<16x32xf32>
    %474 = math.exp %473 : vector<16x32xf32>
    %475 = arith.mulf %470, %474 : vector<16x32xf32>
    %cst_188 = arith.constant 1.000000e+00 : f32
    %476 = vector.broadcast %cst_188 : f32 to vector<16x32xf32>
    %477 = arith.subf %476, %475 : vector<16x32xf32>
    %478 = arith.mulf %450, %477 : vector<16x32xf32>
    %cst_189 = arith.constant 1.000000e+00 : f32
    %479 = vector.broadcast %cst_189 : f32 to vector<16x32xf32>
    %480 = arith.addf %479, %478 : vector<16x32xf32>
    %481 = arith.mulf %443, %480 : vector<16x32xf32>
    %482 = arith.truncf %481 : vector<16x32xf32> to vector<16x32xbf16>
    %c1_190 = arith.constant 1 : index
    %c0_191 = arith.constant 0 : index
    %c0_192 = arith.constant 0 : index
    %483 = vector.load %arg18[%c1_190, %c0_191, %c0_192] : memref<2x32x32xbf16, #tpu.memory_space<vmem>>, vector<1x32x32xbf16>
    %484 = vector.shape_cast %483 : vector<1x32x32xbf16> to vector<32x32xbf16>
    %cst_193 = arith.constant dense<0.000000e+00> : vector<16x32xf32>
    %485 = tpu.matmul %482, %484, %cst_193 {dimension_numbers = #tpu.dot_dimension_numbers<[1], [0], [0], [1], [0, 0, 1, 1], [], []>} : vector<16x32xbf16>, vector<32x32xbf16>, vector<16x32xf32> -> vector<16x32xf32>
    %c1_194 = arith.constant 1 : index
    %c0_195 = arith.constant 0 : index
    %c0_196 = arith.constant 0 : index
    %486 = vector.load %arg19[%c1_194, %c0_195, %c0_196] : memref<2x1x32xf32, #tpu.memory_space<vmem>>, vector<1x1x32xf32>
    %487 = vector.shape_cast %486 : vector<1x1x32xf32> to vector<1x32xf32>
    %488 = vector.broadcast %487 : vector<1x32xf32> to vector<16x32xf32>
    %489 = arith.addf %485, %488 : vector<16x32xf32>
    %490 = arith.addf %489, %407 : vector<16x32xf32>
    %cst_197 = arith.constant 0.000000e+00 : f32
    %491 = vector.broadcast %cst_197 : f32 to vector<16x32xf32>
    %492 = arith.maximumf %490, %491 : vector<16x32xf32>
    %c0_198 = arith.constant 0 : index
    %c0_199 = arith.constant 0 : index
    %493 = vector.load %arg20[%c0_198, %c0_199] : memref<32x128xf32, #tpu.memory_space<vmem>>, vector<32x128xf32>
    %cst_200 = arith.constant dense<0.000000e+00> : vector<16x128xf32>
    %494 = tpu.matmul %492, %493, %cst_200 {dimension_numbers = #tpu.dot_dimension_numbers<[1], [0], [0], [1], [0, 0, 1, 1], [], []>} : vector<16x32xf32>, vector<32x128xf32>, vector<16x128xf32> -> vector<16x128xf32>
    %c0_201 = arith.constant 0 : index
    %c0_202 = arith.constant 0 : index
    %495 = vector.load %arg21[%c0_201, %c0_202] : memref<1x128xf32, #tpu.memory_space<vmem>>, vector<1x128xf32>
    %496 = vector.broadcast %495 : vector<1x128xf32> to vector<16x128xf32>
    %497 = arith.addf %494, %496 : vector<16x128xf32>
    %498 = vector.shape_cast %497 : vector<16x128xf32> to vector<2x8x128xf32>
    %c0_203 = arith.constant 0 : index
    %c0_204 = arith.constant 0 : index
    %c0_205 = arith.constant 0 : index
    %499 = vector.load %arg22[%c0_203, %c0_204, %c0_205] : memref<2x8x128xf32, #tpu.memory_space<vmem>>, vector<2x8x128xf32>
    tpu.vector_store %arg22[%c0_203, %c0_204, %c0_205], %498 {strides = array<i32>} : memref<2x8x128xf32, #tpu.memory_space<vmem>>, vector<2x8x128xf32>,
    return
  }
  func.func @transform_0(%arg0: i32) -> (i32, i32, i32) {
    %c0_i32 = arith.constant 0 : i32
    %c0_i32_0 = arith.constant 0 : i32
    %c0_i32_1 = arith.constant 0 : i32
    return %arg0, %c0_i32, %c0_i32_0 : i32, i32, i32
  }
  func.func @transform_1(%arg0: i32) -> (i32, i32, i32) {
    %c0_i32 = arith.constant 0 : i32
    %c0_i32_0 = arith.constant 0 : i32
    %c0_i32_1 = arith.constant 0 : i32
    return %arg0, %c0_i32, %c0_i32_0 : i32, i32, i32
  }
  func.func @transform_2(%arg0: i32) -> (i32, i32, i32) {
    %c0_i32 = arith.constant 0 : i32
    %c0_i32_0 = arith.constant 0 : i32
    %c0_i32_1 = arith.constant 0 : i32
    return %arg0, %c0_i32, %c0_i32_0 : i32, i32, i32
  }
  func.func @transform_3(%arg0: i32) -> (i32, i32) {
    %c0_i32 = arith.constant 0 : i32
    %c0_i32_0 = arith.constant 0 : i32
    %c0_i32_1 = arith.constant 0 : i32
    return %c0_i32, %c0_i32_0 : i32, i32
  }
  func.func @transform_4(%arg0: i32) -> (i32, i32) {
    %c0_i32 = arith.constant 0 : i32
    %c0_i32_0 = arith.constant 0 : i32
    %c0_i32_1 = arith.constant 0 : i32
    return %c0_i32, %c0_i32_0 : i32, i32
  }
  func.func @transform_5(%arg0: i32) -> (i32, i32, i32) {
    %c0_i32 = arith.constant 0 : i32
    %c0_i32_0 = arith.constant 0 : i32
    %c0_i32_1 = arith.constant 0 : i32
    %c0_i32_2 = arith.constant 0 : i32
    return %c0_i32, %c0_i32_0, %c0_i32_1 : i32, i32, i32
  }
  func.func @transform_6(%arg0: i32) -> (i32, i32, i32) {
    %c0_i32 = arith.constant 0 : i32
    %c0_i32_0 = arith.constant 0 : i32
    %c0_i32_1 = arith.constant 0 : i32
    %c0_i32_2 = arith.constant 0 : i32
    return %c0_i32, %c0_i32_0, %c0_i32_1 : i32, i32, i32
  }
  func.func @transform_7(%arg0: i32) -> (i32, i32, i32) {
    %c0_i32 = arith.constant 0 : i32
    %c0_i32_0 = arith.constant 0 : i32
    %c0_i32_1 = arith.constant 0 : i32
    %c0_i32_2 = arith.constant 0 : i32
    return %c0_i32, %c0_i32_0, %c0_i32_1 : i32, i32, i32
  }
  func.func @transform_8(%arg0: i32) -> (i32, i32, i32) {
    %c0_i32 = arith.constant 0 : i32
    %c0_i32_0 = arith.constant 0 : i32
    %c0_i32_1 = arith.constant 0 : i32
    %c0_i32_2 = arith.constant 0 : i32
    return %c0_i32, %c0_i32_0, %c0_i32_1 : i32, i32, i32
  }
  func.func @transform_9(%arg0: i32) -> (i32, i32, i32) {
    %c0_i32 = arith.constant 0 : i32
    %c0_i32_0 = arith.constant 0 : i32
    %c0_i32_1 = arith.constant 0 : i32
    %c0_i32_2 = arith.constant 0 : i32
    return %c0_i32, %c0_i32_0, %c0_i32_1 : i32, i32, i32
  }
  func.func @transform_10(%arg0: i32) -> (i32, i32, i32) {
    %c0_i32 = arith.constant 0 : i32
    %c0_i32_0 = arith.constant 0 : i32
    %c0_i32_1 = arith.constant 0 : i32
    %c0_i32_2 = arith.constant 0 : i32
    return %c0_i32, %c0_i32_0, %c0_i32_1 : i32, i32, i32
  }
  func.func @transform_11(%arg0: i32) -> (i32, i32, i32) {
    %c0_i32 = arith.constant 0 : i32
    %c0_i32_0 = arith.constant 0 : i32
    %c0_i32_1 = arith.constant 0 : i32
    %c0_i32_2 = arith.constant 0 : i32
    return %c0_i32, %c0_i32_0, %c0_i32_1 : i32, i32, i32
  }
  func.func @transform_12(%arg0: i32) -> (i32, i32, i32) {
    %c0_i32 = arith.constant 0 : i32
    %c0_i32_0 = arith.constant 0 : i32
    %c0_i32_1 = arith.constant 0 : i32
    %c0_i32_2 = arith.constant 0 : i32
    return %c0_i32, %c0_i32_0, %c0_i32_1 : i32, i32, i32
  }
  func.func @transform_13(%arg0: i32) -> (i32, i32, i32) {
    %c0_i32 = arith.constant 0 : i32
    %c0_i32_0 = arith.constant 0 : i32
    %c0_i32_1 = arith.constant 0 : i32
    %c0_i32_2 = arith.constant 0 : i32
    return %c0_i32, %c0_i32_0, %c0_i32_1 : i32, i32, i32
  }
  func.func @transform_14(%arg0: i32) -> (i32, i32, i32) {
    %c0_i32 = arith.constant 0 : i32
    %c0_i32_0 = arith.constant 0 : i32
    %c0_i32_1 = arith.constant 0 : i32
    %c0_i32_2 = arith.constant 0 : i32
    return %c0_i32, %c0_i32_0, %c0_i32_1 : i32, i32, i32
  }
  func.func @transform_15(%arg0: i32) -> (i32, i32, i32) {
    %c0_i32 = arith.constant 0 : i32
    %c0_i32_0 = arith.constant 0 : i32
    %c0_i32_1 = arith.constant 0 : i32
    %c0_i32_2 = arith.constant 0 : i32
    return %c0_i32, %c0_i32_0, %c0_i32_1 : i32, i32, i32
  }
  func.func @transform_16(%arg0: i32) -> (i32, i32, i32) {
    %c0_i32 = arith.constant 0 : i32
    %c0_i32_0 = arith.constant 0 : i32
    %c0_i32_1 = arith.constant 0 : i32
    %c0_i32_2 = arith.constant 0 : i32
    return %c0_i32, %c0_i32_0, %c0_i32_1 : i32, i32, i32
  }
  func.func @transform_17(%arg0: i32) -> (i32, i32, i32) {
    %c0_i32 = arith.constant 0 : i32
    %c0_i32_0 = arith.constant 0 : i32
    %c0_i32_1 = arith.constant 0 : i32
    %c0_i32_2 = arith.constant 0 : i32
    return %c0_i32, %c0_i32_0, %c0_i32_1 : i32, i32, i32
  }
  func.func @transform_18(%arg0: i32) -> (i32, i32, i32) {
    %c0_i32 = arith.constant 0 : i32
    %c0_i32_0 = arith.constant 0 : i32
    %c0_i32_1 = arith.constant 0 : i32
    %c0_i32_2 = arith.constant 0 : i32
    return %c0_i32, %c0_i32_0, %c0_i32_1 : i32, i32, i32
  }
  func.func @transform_19(%arg0: i32) -> (i32, i32) {
    %c0_i32 = arith.constant 0 : i32
    %c0_i32_0 = arith.constant 0 : i32
    %c0_i32_1 = arith.constant 0 : i32
    return %c0_i32, %c0_i32_0 : i32, i32
  }
  func.func @transform_20(%arg0: i32) -> (i32, i32) {
    %c0_i32 = arith.constant 0 : i32
    %c0_i32_0 = arith.constant 0 : i32
    %c0_i32_1 = arith.constant 0 : i32
    return %c0_i32, %c0_i32_0 : i32, i32
  }
  func.func @transform_21(%arg0: i32) -> (i32, i32, i32) {
    %c0_i32 = arith.constant 0 : i32
    %c0_i32_0 = arith.constant 0 : i32
    %c0_i32_1 = arith.constant 0 : i32
    return %arg0, %c0_i32, %c0_i32_0 : i32, i32, i32
  }
}

</mosaic_0001>

<bundles_post_ra>
// kernel: simple_fc_forward.1
= control target key start
LH: loop header
LB: loop body
LE: loop exit
PB: predicated region body
PF: predicated region fallthrough
CT: control target
= control target key end

     0   :  { %vm80_vm0 = vcmask 64512   ;;  %vm133_vm1 = vcmask 261120   ;;  %v2255_v26 = vmov 32.0   ;;  %s2258_s30 = smov 80   ;;  %s2259_s22 = smov 112   ;;  %vm345_vm9 = vcmask 1043456   ;;  %s2910_s3 = inlined_call_operand.vmem [shape: f32[8,32], index: 3, kind: input, shape index: {}]   ;;  %s2911_s0 = inlined_call_operand.vmem [shape: f32[2,8,8], index: 0, kind: input, shape index: {}]   ;;  %s2912_s4 = inlined_call_operand.vmem [shape: f32[1,32], index: 4, kind: input, shape index: {}]   ;;  %s2913_s6 = inlined_call_operand.vmem [shape: f32[2,1,32], index: 6, kind: input, shape index: {}]   ;;  %s2914_s5 = inlined_call_operand.vmem [shape: bf16[2,32,32], index: 5, kind: input, shape index: {}]   ;;  %s2915_s2 = inlined_call_operand.vmem [shape: f32[2,2,32], index: 2, kind: input, shape index: {}]   ;;  %s2916_s7 = inlined_call_operand.vmem [shape: f32[2,1,32], index: 7, kind: input, shape index: {}]   ;;  %s2917_s8 = inlined_call_operand.vmem [shape: f32[2,1,32], index: 8, kind: input, shape index: {}]   ;;  %s2918_s10 = inlined_call_operand.vmem [shape: f32[2,1,96], index: 10, kind: input, shape index: {}]   ;;  %s2919_s9 = inlined_call_operand.vmem [shape: bf16[2,32,96], index: 9, kind: input, shape index: {}]   ;;  %s2920_s1 = inlined_call_operand.vmem [shape: f32[2,1,8], index: 1, kind: input, shape index: {}]   ;;  %s2921_s12 = inlined_call_operand.vmem [shape: f32[2,1,32], index: 12, kind: input, shape index: {}]   ;;  %s2922_s11 = inlined_call_operand.vmem [shape: bf16[2,32,32], index: 11, kind: input, shape index: {}]   ;;  %s2923_s13 = inlined_call_operand.vmem [shape: f32[2,1,32], index: 13, kind: input, shape index: {}]   ;;  %s2924_s14 = inlined_call_operand.vmem [shape: f32[2,1,32], index: 14, kind: input, shape index: {}]   ;;  %s2925_s16 = inlined_call_operand.vmem [shape: f32[2,1,32], index: 16, kind: input, shape index: {}]   ;;  %s2926_s15 = inlined_call_operand.vmem [shape: bf16[2,32,32], index: 15, kind: input, shape index: {}]   ;;  %s2927_s18 = inlined_call_operand.vmem [shape: f32[2,1,32], index: 18, kind: input, shape index: {}]   ;;  %s2928_s17 = inlined_call_operand.vmem [shape: bf16[2,32,32], index: 17, kind: input, shape index: {}]   ;;  %s2929_s20 = inlined_call_operand.vmem [shape: f32[1,128], index: 20, kind: input, shape index: {}]   ;;  %s2930_s19 = inlined_call_operand.vmem [shape: f32[32,128], index: 19, kind: input, shape index: {}]   ;;  %s2931_s21 = inlined_call_operand.vmem [shape: f32[2,8,128], index: 21, kind: output, shape index: {}]  }
   0x1   :  { %2949 = sst [smem:[#allocation2_spill]] %s2910_s3  ;;  %2153 = vrcp.f32 %v2255_v26  ;;  %v2068_v43 = vld [vmem:[%s2919_s9 + $0x8] sm:$0xff]  ;;  %v2067_v45 = vld [vmem:[%s2919_s9] sm:$0xff]  ;;  %s2256_s3 = smov 88   ;;  %vm757_vm10 = vcmask 130048   ;;  %vm760_vm11 = vcmask 195584  }
   0x2   :  { %2950 = sst [smem:[#allocation3_spill]] %s2911_s0  ;;  %248 = vmatpush.bf16.msra.mxu2 %v2068_v43  ;;  %s2260_s23 = smov 72  }
   0x3   :  { %2951 = sst [smem:[#allocation4_spill]] %s2912_s4  ;;  %s2261_s0 = smov 120  }
   0x4   :  { %2952 = sst [smem:[#allocation5_spill]] %s2913_s6  ;;  %s2945_s24 = smov 104  }
   0x5   :  { %2953 = sst [smem:[#allocation6_spill]] %s2914_s5  ;;  %s2257_s5 = smov 96  }
   0x6   :  { %2954 = sst [smem:[#allocation7_spill]] %s2915_s2  ;;  %249 = vmatpush.bf16.msra.mxu2 %v2067_v45  ;;  %s2938_s25 = smov 48  }
   0x7   :  { %s2955_s26 = sld [smem:[#allocation2_spill]]  ;;  %v2154_v27 = vpop.eup %2153  ;;  %s2944_s6 = smov 8  }
   0x8   :  { %s2956_s28 = sld [smem:[#allocation3_spill]]  ;;  %v164_v28 = vmul.f32 32.0, %v2154_v27  ;;  %vm168_vm2 = vweird.f32 %v2154_v27 }
   0x9   :  { %s2957_s2 = sld [smem:[#allocation6_spill]] }
   0xa   :  { %s2958_s4 = sld [smem:[#allocation4_spill]]  ;;  %v165_v29 = vsub.f32 1.0, %v164_v28 }
   0xb   :  { %s2959_s27 = sld [smem:[#allocation7_spill]] }
   0xc   :  { %s2960_s29 = sld [smem:[#allocation5_spill]]  ;;  %v166_v30 = vmul.f32 %v2154_v27, %v165_v29 }
   0xd   :  { %v75_v0 = vld [vmem:[%s2955_s26] sm:$0xff]  ;;  %s2936_s26 = smov 40  }
   0xe   :  { %v69_v1 = vld [vmem:[%s2956_s28] sm:$0xff]  ;;  %102 = vmatpush.msra.mxu0 %v75_v0  ;;  %v70_v2 = vld [vmem:[%s2956_s28 + $0x8] sm:$0xff]  ;;  %v167_v31 = vadd.f32 %v2154_v27, %v166_v30  ;;  %s2942_s28 = smov 64  }
   0xf   :  { %1910 = vmatmul.msk.f32.vlgmr.msra.gmra.mxu0 %vm80_vm0, %v69_v1  ;;  %v2066_v3 = vld [vmem:[%s2957_s2 + $0x8] sm:$0xff]  ;;  %v2065_v4 = vld [vmem:[%s2957_s2] sm:$0xff] }
  0x10   :  { %143 = vmatpush.bf16.msra.mxu1 %v2066_v3  ;;  %v2131_v6 = vld [vmem:[%s2958_s4] ss:$0 sm:$0xff]  ;;  %v2419_v32 = vsel %vm168_vm2, %v2154_v27, %v167_v31  ;;  %s2940_s4 = smov 56  }
  0x11   :  { %v73_v13 = vld [vmem:[%s2959_s27] sm:$0x3]  ;;  %v74_v19 = vld [vmem:[%s2959_s27 + $0x2] sm:$0x3] }
  0x12   :  { %v2132_v14 = vld [vmem:[%s2960_s29] ss:$0 sm:$0xff]  ;;  %v151_v15 = vperm.slane %v73_v13, 0  ;;  %v152_v21 = vperm.slane %v74_v19, 0 }
  0x13   :  { %v2133_v0 = vld [vmem:[%s2916_s7] ss:$0 sm:$0xff] }
  0x14   :  { %144 = vmatpush.bf16.msra.mxu1 %v2065_v4 }
  0x17   :  { %1911 = vmatmul.msk.f32.gmra.mxu0 %vm80_vm0, %v70_v2 }
  0x8c   :  { %v104_v5 = vpop.f32.mrf.mxu0 }
  0x8d   :  { %v105_v7 = vadd.f32 %v2131_v6, %v104_v5  ;;  %v2134_v5 = vld [vmem:[%s2917_s8] ss:$0 sm:$0xff] }
  0x8f   :  { %v110_v10 = vmax.f32 %v105_v7, 0.0 }
  0x94   :  { %v107_v8 = vpop.f32.mrf.mxu0 }
  0x95   :  { %v108_v9 = vadd.f32 %v2131_v6, %v107_v8 }
  0x97   :  { %v111_v11 = vmax.f32 %v108_v9, 0.0 }
  0x99   :  { %v112_v12 = vpack.c.bf16 %v111_v11, %v110_v10  ;;  %v2137_v10 = vld [vmem:[%s2918_s10] ss:$0 sm:$0xff] }
  0x9b   :  { %1920 = vmatmul.msk.bf16.vlgmr.msra.gmra.mxu1 %vm133_vm1, %v112_v12 }
 0x118   :  { %v146_v16 = vpop.f32.mrf.mxu1 }
 0x119   :  { %v147_v17 = vadd.f32 %v2132_v14, %v146_v16 }
 0x11b   :  { %v2408_v18 = vadd.f32 %v151_v15, %v147_v17 }
 0x11d   :  { %v157_v20 = vsel %vm133_vm1, %v2408_v18, 0.0 }
 0x11e   :  { %158 = vadd.xlane.f32.xlu0 %v157_v20 }
 0x120   :  { %v148_v22 = vpop.f32.mrf.mxu1 }
 0x121   :  { %v149_v23 = vadd.f32 %v2132_v14, %v148_v22 }
 0x123   :  { %v2415_v24 = vadd.f32 %v152_v21, %v149_v23 }
 0x125   :  { %v160_v25 = vsel %vm133_vm1, %v2415_v24, 0.0 }
 0x126   :  { %161 = vadd.xlane.f32.xlu0 %v160_v25 }
 0x191   :  { %v159_v33 = vpop.xlane.xlu0 %158 }
 0x192   :  { %v170_v34 = vmul.f32 %v2419_v32, %v159_v33 }
 0x194   :  { %v172_v35 = vsub.f32 %v2408_v18, %v170_v34 }
 0x196   :  { %v174_v36 = vmul.f32 %v172_v35, %v172_v35 }
 0x198   :  { %v176_v37 = vsel %vm133_vm1, %v174_v36, 0.0 }
 0x199   :  { %177 = vadd.xlane.f32.xlu1 %v176_v37  ;;  %v162_v38 = vpop.xlane.xlu0 %161 }
 0x19a   :  { %v171_v39 = vmul.f32 %v2419_v32, %v162_v38 }
 0x19c   :  { %v173_v40 = vsub.f32 %v2415_v24, %v171_v39 }
 0x19e   :  { %v175_v41 = vmul.f32 %v173_v40, %v173_v40 }
 0x1a0   :  { %v179_v42 = vsel %vm133_vm1, %v175_v41, 0.0 }
 0x1a1   :  { %180 = vadd.xlane.f32.xlu1 %v179_v42 }
 0x20c   :  { %v178_v44 = vpop.xlane.xlu1 %177 }
 0x20d   :  { %v182_v46 = vmul.f32 %v178_v44, %v2419_v32 }
 0x20f   :  { %v184_v47 = vadd.f32 1e-05, %v182_v46  ;;  %v2138_v46 = vld [vmem:[%s2920_s1] ss:$0 sm:$0xff] }
 0x211   :  { %2155 = vrsqrt.f32 %v184_v47  ;;  %vm192_vm4 = vweird.f32 %v184_v47 }
 0x214   :  { %v181_v48 = vpop.xlane.xlu1 %180 }
 0x215   :  { %v183_v49 = vmul.f32 %v181_v48, %v2419_v32 }
 0x217   :  { %v2156_v50 = vpop.eup %2155  ;;  %v185_v51 = vadd.f32 1e-05, %v183_v49  ;;  %v2139_v49 = vld [vmem:[%s2920_s1 + $0x1] ss:$0 sm:$0xff] }
 0x218   :  { %v187_v52 = vmul.f32 %v2156_v50, %v184_v47  ;;  %vm193_vm3 = vweird.f32 %v2156_v50 }
 0x219   :  { %2157 = vrsqrt.f32 %v185_v51  ;;  %vm194_vm5 = vmor %vm192_vm4, %vm193_vm3  ;;  %vm202_vm7 = vweird.f32 %v185_v51 }
 0x21a   :  { %v188_v53 = vmul.f32 %v2156_v50, %v187_v52 }
 0x21c   :  { %v189_v54 = vmul.f32 0.5, %v188_v53 }
 0x21e   :  { %v190_v55 = vsub.f32 1.5, %v189_v54 }
 0x21f   :  { %v2158_v56 = vpop.eup %2157 }
 0x220   :  { %v191_v57 = vmul.f32 %v2156_v50, %v190_v55  ;;  %v197_v58 = vmul.f32 %v2158_v56, %v185_v51  ;;  %vm203_vm6 = vweird.f32 %v2158_v56 }
 0x221   :  { %vm204_vm8 = vmor %vm202_vm7, %vm203_vm6 }
 0x222   :  { %v198_v59 = vmul.f32 %v2158_v56, %v197_v58  ;;  %v195_v60 = vsel %vm194_vm5, %v2156_v50, %v191_v57 }
 0x223   :  { %v206_v63 = vmul.f32 %v195_v60, %v172_v35 }
 0x224   :  { %v199_v61 = vmul.f32 0.5, %v198_v59 }
 0x225   :  { %v211_v4 = vmul.f32 %v2133_v0, %v206_v63 }
 0x226   :  { %v200_v62 = vsub.f32 1.5, %v199_v61 }
 0x227   :  { %v216_v7 = vadd.f32 %v2134_v5, %v211_v4 }
 0x228   :  { %v201_v1 = vmul.f32 %v2158_v56, %v200_v62 }
 0x22a   :  { %v205_v2 = vsel %vm204_vm8, %v2158_v56, %v201_v1 }
 0x22b   :  { %v207_v3 = vmul.f32 %v205_v2, %v173_v40 }
 0x22d   :  { %v212_v6 = vmul.f32 %v2133_v0, %v207_v3 }
 0x22f   :  { %v217_v8 = vadd.f32 %v2134_v5, %v212_v6 }
 0x231   :  { %v218_v9 = vpack.c.bf16 %v217_v8, %v216_v7 }
 0x233   :  { %1929 = vmatmul.msk.bf16.vlgmr.msra.gmra.mxu2 %vm133_vm1, %v218_v9 }
 0x2b6   :  { %v251_v11 = vpop.f32.mrf.mxu2 }
 0x2b7   :  { %v252_v12 = vadd.f32 %v2137_v10, %v251_v11 }
 0x2b9   :  { %v256_v13 = vpack.c.bf16 %v252_v12, %v252_v12 }
 0x2bb   :  { %v259_v14 = vunpack.c.l.b16 %v256_v13 }
 0x2bd   :  { %v2445_v15 = vpack.c.b16 %v259_v14, %v259_v14 }
 0x2be   :  { %v253_v16 = vpop.f32.mrf.mxu2 }
 0x2bf   :  { %v254_v17 = vadd.f32 %v2137_v10, %v253_v16  ;;  %385 = vrot.lane.b32.xlu0 %v2445_v15, %s2256_s3  ;;  %261 = vrot.lane.b32.xlu2 %v2445_v15, %s2257_s5 }
 0x2c1   :  { %v257_v19 = vpack.c.bf16 %v254_v17, %v254_v17 }
 0x2c3   :  { %v283_v20 = vunpack.c.l.b16 %v257_v19 }
 0x2c5   :  { %v2451_v21 = vpack.c.b16 %v283_v20, %v283_v20 }
 0x2c7   :  { %408 = vrot.lane.b32.xlu1 %v2451_v21, %s2256_s3  ;;  %524 = vrot.lane.b32.xlu0 %v2451_v21, %s2258_s30 }
 0x2c8   :  { %285 = vrot.lane.b32.xlu2 %v2451_v21, %s2257_s5 }
 0x2cf   :  { %522 = vrot.lane.b32.xlu1 %v2451_v21, %s2259_s22  ;;  %617 = vrot.lane.b32.xlu0 %v2445_v15, %s2260_s23 }
 0x2d0   :  { %383 = vrot.lane.b32.xlu2 %v2445_v15, %s2261_s0 }
 0x2d7   :  { %615 = vrot.lane.b32.xlu1 %v2445_v15, %s2945_s24  ;;  %638 = vrot.lane.b32.xlu0 %v2451_v21, %s2945_s24 }
 0x2d8   :  { %406 = vrot.lane.b32.xlu2 %v2451_v21, %s2261_s0 }
 0x2e0   :  { %501 = vrot.lane.b32.xlu2 %v2445_v15, %s2258_s30 }
 0x2e8   :  { %499 = vrot.lane.b32.xlu2 %v2445_v15, %s2259_s22 }
 0x2f0   :  { %640 = vrot.lane.b32.xlu2 %v2451_v21, %s2260_s23 }
 0x319   :  { %v262_v22 = vpop.permute.xlu2 %261 }
 0x31a   :  { %v267_v23 = vsel %vm80_vm0, %v262_v22, 0 }
 0x31b   :  { %276 = vmatpush.bf16.xpose.msra.mxu3 %v267_v23 }
 0x322   :  { %v286_v25 = vpop.permute.xlu2 %285  ;;  %1930 = vmatmul.msk.bf16.vlgmr.msra.gmra.mxu3 %vm80_vm0, %v256_v13 }
 0x323   :  { %v291_v26 = vsel %vm80_vm0, %v286_v25, 0 }
 0x324   :  { %300 = vmatpush.bf16.xpose.msrb.mxu0 %v291_v26 }
 0x32a   :  { %v384_v27 = vpop.permute.xlu2 %383 }
 0x32b   :  { %1931 = vmatmul.msk.bf16.vlgmr.msrb.gmra.mxu0 %vm80_vm0, %v257_v19 }
 0x331   :  { %v386_v28 = vpop.permute.xlu0 %385 }
 0x332   :  { %v407_v29 = vpop.permute.xlu2 %406  ;;  %v391_v30 = vsel %vm80_vm0, %v386_v28, 0 }
 0x333   :  { %400 = vmatpush.bf16.xpose.msrb.mxu3 %v391_v30 }
 0x339   :  { %v409_v31 = vpop.permute.xlu1 %408  ;;  %v525_v33 = vpop.permute.xlu0 %524 }
 0x33a   :  { %v414_v34 = vsel %vm80_vm0, %v409_v31, 0  ;;  %v530_v35 = vsel %vm80_vm0, %v525_v33, 0  ;;  %v502_v36 = vpop.permute.xlu2 %501  ;;  %1934 = vmatmul.msk.bf16.vlgmr.msrb.gmra.mxu3 %vm80_vm0, %v384_v27 }
 0x33b   :  { %v507_v37 = vsel %vm80_vm0, %v502_v36, 0  ;;  %423 = vmatpush.bf16.xpose.msra.mxu0 %v414_v34 }
 0x33c   :  { %516 = vmatpush.bf16.xpose.msra.mxu3 %v507_v37 }
 0x341   :  { %v618_v38 = vpop.permute.xlu0 %617  ;;  %v523_v43 = vpop.permute.xlu1 %522 }
 0x342   :  { %v623_v39 = vsel %vm80_vm0, %v618_v38, 0  ;;  %v500_v40 = vpop.permute.xlu2 %499  ;;  %1935 = vmatmul.msk.bf16.vlgmr.msra.gmra.mxu0 %vm80_vm0, %v407_v29 }
 0x343   :  { %539 = vmatpush.bf16.xpose.msrb.mxu0 %v530_v35 }
 0x344   :  { %632 = vmatpush.bf16.xpose.msrb.mxu3 %v623_v39 }
 0x349   :  { %v616_v44 = vpop.permute.xlu1 %615  ;;  %v639_v45 = vpop.permute.xlu0 %638 }
 0x34a   :  { %v641_v41 = vpop.permute.xlu2 %640  ;;  %1938 = vmatmul.msk.bf16.vlgmr.msra.gmra.mxu3 %vm80_vm0, %v500_v40 }
 0x34b   :  { %v646_v42 = vsel %vm80_vm0, %v641_v41, 0 }
 0x34c   :  { %655 = vmatpush.bf16.xpose.msra.mxu0 %v646_v42 }
 0x352   :  { %1939 = vmatmul.msk.bf16.vlgmr.msrb.gmra.mxu0 %vm80_vm0, %v523_v43 }
 0x35a   :  { %1942 = vmatmul.msk.bf16.vlgmr.msrb.gmra.mxu3 %vm80_vm0, %v616_v44 }
 0x362   :  { %1943 = vmatmul.msk.bf16.vlgmr.msra.gmra.mxu0 %vm80_vm0, %v639_v45 }
 0x3a5   :  { %v278_v47 = vpop.f32.mrf.mxu3 }
 0x3a6   :  { %v306_v48 = vmul.f32 0.35355338, %v278_v47 }
 0x3a8   :  { %v302_v50 = vpop.f32.mrf.mxu0  ;;  %v314_v51 = vadd.f32 %v2138_v46, %v306_v48 }
 0x3a9   :  { %v307_v52 = vmul.f32 0.35355338, %v302_v50 }
 0x3aa   :  { %v316_v53 = vsel %vm80_vm0, %v314_v51, -inf }
 0x3ab   :  { %317 = vmax.xlane.f32.xlu1 %v316_v53  ;;  %v315_v54 = vadd.f32 %v2139_v49, %v307_v52 }
 0x3ad   :  { %v280_v55 = vpop.f32.mrf.mxu3  ;;  %v319_v56 = vsel %vm80_vm0, %v315_v54, -inf }
 0x3ae   :  { %320 = vmax.xlane.f32.xlu2 %v319_v56 }
 0x3b0   :  { %v304_v57 = vpop.f32.mrf.mxu0 }
 0x3bd   :  { %v402_v58 = vpop.f32.mrf.mxu3 }
 0x3be   :  { %v429_v59 = vmul.f32 0.35355338, %v402_v58 }
 0x3bf   :  { %v425_v60 = vpop.f32.mrf.mxu0 }
 0x3c0   :  { %v430_v61 = vmul.f32 0.35355338, %v425_v60  ;;  %v2501_v62 = vadd.f32 %v2138_v46, %v429_v59 }
 0x3c2   :  { %v433_v63 = vsel %vm80_vm0, %v2501_v62, -inf  ;;  %v2505_v0 = vadd.f32 %v2139_v49, %v430_v61 }
 0x3c3   :  { %434 = vmax.xlane.f32.xlu2 %v433_v63 }
 0x3c4   :  { %v436_v1 = vsel %vm80_vm0, %v2505_v0, -inf }
 0x3c5   :  { %v404_v2 = vpop.f32.mrf.mxu3  ;;  %437 = vmax.xlane.f32.xlu0 %v436_v1 }
 0x3c7   :  { %v427_v3 = vpop.f32.mrf.mxu0 }
 0x3cd   :  { %v518_v4 = vpop.f32.mrf.mxu3 }
 0x3ce   :  { %v545_v5 = vmul.f32 0.35355338, %v518_v4 }
 0x3cf   :  { %v541_v6 = vpop.f32.mrf.mxu0 }
 0x3d0   :  { %v546_v7 = vmul.f32 0.35355338, %v541_v6  ;;  %v547_v8 = vadd.f32 %v2138_v46, %v545_v5 }
 0x3d2   :  { %v549_v9 = vsel %vm80_vm0, %v547_v8, -inf  ;;  %v548_v10 = vadd.f32 %v2139_v49, %v546_v7 }
 0x3d3   :  { %550 = vmax.xlane.f32.xlu0 %v549_v9 }
 0x3d4   :  { %v552_v11 = vsel %vm80_vm0, %v548_v10, -inf }
 0x3d5   :  { %553 = vmax.xlane.f32.xlu1 %v552_v11  ;;  %v520_v12 = vpop.f32.mrf.mxu3 }
 0x3d7   :  { %v543_v13 = vpop.f32.mrf.mxu0 }
 0x3dd   :  { %v634_v14 = vpop.f32.mrf.mxu3 }
 0x3de   :  { %v661_v16 = vmul.f32 0.35355338, %v634_v14 }
 0x3df   :  { %v657_v17 = vpop.f32.mrf.mxu0 }
 0x3e0   :  { %v662_v19 = vmul.f32 0.35355338, %v657_v17  ;;  %v663_v20 = vadd.f32 %v2138_v46, %v661_v16 }
 0x3e2   :  { %v665_v22 = vsel %vm80_vm0, %v663_v20, -inf  ;;  %v2512_v23 = vadd.f32 %v2139_v49, %v662_v19 }
 0x3e3   :  { %666 = vmax.xlane.f32.xlu0 %v665_v22 }
 0x3e4   :  { %v668_v25 = vsel %vm80_vm0, %v2512_v23, -inf }
 0x3e5   :  { %v636_v26 = vpop.f32.mrf.mxu3  ;;  %669 = vmax.xlane.f32.xlu2 %v668_v25 }
 0x3e7   :  { %v659_v27 = vpop.f32.mrf.mxu0 }
 0x3f7   :  { %340 = vrot.lane.b32.xlu0 %v2445_v15, %s2942_s28 }
 0x3ff   :  { %457 = vrot.lane.b32.xlu0 %v2445_v15, %s2940_s4 }
 0x41e   :  { %v318_v28 = vpop.xlane.xlu1 %317 }
 0x41f   :  { %v322_v29 = vsub.f32 %v314_v51, %v318_v28 }
 0x421   :  { %v324_v30 = vmul.f32 1.442695, %v322_v29  ;;  %v321_v31 = vpop.xlane.xlu2 %320 }
 0x422   :  { %v323_v33 = vsub.f32 %v315_v54, %v321_v31 }
 0x423   :  { %2159 = vpow2.f32 %v324_v30 }
 0x424   :  { %v326_v34 = vmul.f32 1.442695, %v323_v33 }
 0x426   :  { %2161 = vpow2.f32 %v326_v34 }
 0x429   :  { %v2160_v35 = vpop.eup %2159 }
 0x42a   :  { %v328_v36 = vsel %vm80_vm0, %v2160_v35, 0.0 }
 0x42b   :  { %329 = vadd.xlane.f32.xlu2 %v328_v36 }
 0x42c   :  { %v2521_v37 = vpop.eup %2161 }
 0x42d   :  { %v331_v38 = vsel %vm80_vm0, %v2521_v37, 0.0 }
 0x42e   :  { %332 = vadd.xlane.f32.xlu1 %v331_v38 }
 0x436   :  { %v435_v46 = vpop.xlane.xlu2 %434 }
 0x437   :  { %v439_v49 = vsub.f32 %v2501_v62, %v435_v46 }
 0x438   :  { %v438_v39 = vpop.xlane.xlu0 %437 }
 0x439   :  { %v441_v51 = vmul.f32 1.442695, %v439_v49  ;;  %v440_v54 = vsub.f32 %v2505_v0, %v438_v39 }
 0x43b   :  { %v443_v58 = vmul.f32 1.442695, %v440_v54 }
 0x443   :  { %478 = vrot.lane.b32.xlu2 %v2451_v21, %s2940_s4 }
 0x446   :  { %v551_v40 = vpop.xlane.xlu0 %550 }
 0x447   :  { %v555_v41 = vsub.f32 %v547_v8, %v551_v40  ;;  %362 = vrot.lane.b32.xlu1 %v2451_v21, %s2942_s28 }
 0x448   :  { %v554_v45 = vpop.xlane.xlu1 %553 }
 0x449   :  { %v557_v42 = vmul.f32 1.442695, %v555_v41  ;;  %v556_v47 = vsub.f32 %v548_v10, %v554_v45 }
 0x44b   :  { %2163 = vpow2.f32 %v557_v42  ;;  %594 = vrot.lane.b32.xlu2 %v2451_v21, %s2938_s25  ;;  %v559_v50 = vmul.f32 1.442695, %v556_v47 }
 0x44d   :  { %2165 = vpow2.f32 %v559_v50 }
 0x44e   :  { %2167 = vpow2.f32 %v441_v51 }
 0x451   :  { %v2531_v43 = vpop.eup %2163 }
 0x452   :  { %v561_v44 = vsel %vm80_vm0, %v2531_v43, 0.0 }
 0x453   :  { %562 = vadd.xlane.f32.xlu0 %v561_v44  ;;  %v2540_v57 = vpop.eup %2165 }
 0x454   :  { %v2168_v59 = vpop.eup %2167  ;;  %v564_v60 = vsel %vm80_vm0, %v2540_v57, 0.0 }
 0x455   :  { %v445_v62 = vsel %vm80_vm0, %v2168_v59, 0.0 }
 0x456   :  { %v667_v48 = vpop.xlane.xlu0 %666 }
 0x457   :  { %v671_v52 = vsub.f32 %v663_v20, %v667_v48 }
 0x458   :  { %v670_v3 = vpop.xlane.xlu2 %669 }
 0x459   :  { %v673_v56 = vmul.f32 1.442695, %v671_v52  ;;  %v672_v8 = vsub.f32 %v2512_v23, %v670_v3 }
 0x45b   :  { %2169 = vpow2.f32 %v673_v56  ;;  %v675_v10 = vmul.f32 1.442695, %v672_v8 }
 0x45c   :  { %2171 = vpow2.f32 %v443_v58 }
 0x461   :  { %v2546_v63 = vpop.eup %2169 }
 0x462   :  { %v2172_v0 = vpop.eup %2171  ;;  %v677_v1 = vsel %vm80_vm0, %v2546_v63, 0.0 }
 0x463   :  { %v448_v2 = vsel %vm80_vm0, %v2172_v0, 0.0 }
 0x467   :  { %710 = vrot.lane.b32.xlu0 %v2451_v21, %s2936_s26 }
 0x469   :  { %v341_v53 = vpop.permute.xlu0 %340 }
 0x46a   :  { %v347_v55 = vsel %vm345_vm9, %v341_v53, 0 }
 0x46b   :  { %356 = vmatpush.bf16.msrb.mxu1 %v347_v55 }
 0x471   :  { %565 = vadd.xlane.f32.xlu1 %v564_v60  ;;  %v458_v61 = vpop.permute.xlu0 %457 }
 0x472   :  { %v463_v21 = vsel %vm345_vm9, %v458_v61, 0 }
 0x473   :  { %472 = vmatpush.bf16.msra.mxu1 %v463_v21 }
 0x474   :  { %446 = vadd.xlane.f32.xlu2 %v445_v62 }
 0x479   :  { %678 = vadd.xlane.f32.xlu1 %v677_v1 }
 0x47c   :  { %449 = vadd.xlane.f32.xlu2 %v448_v2 }
 0x492   :  { %689 = vrot.lane.b32.xlu1 %v2445_v15, %s2936_s26  ;;  %s2948_s26 = smov 16  }
 0x494   :  { %573 = vrot.lane.b32.xlu2 %v2445_v15, %s2938_s25  ;;  %s2947_s25 = smov 24  }
 0x49e   :  { %v330_v4 = vpop.xlane.xlu2 %329 }
 0x49f   :  { %2173 = vrcp.f32 %v330_v4 }
 0x4a1   :  { %v333_v9 = vpop.xlane.xlu1 %332 }
 0x4a2   :  { %2175 = vrcp.f32 %v333_v9 }
 0x4a3   :  { %2177 = vpow2.f32 %v675_v10  ;;  %v2070_v10 = vld [vmem:[%s2922_s11 + $0x8] sm:$0xff] }
 0x4a4   :  { %793 = vmatpush.bf16.msra.mxu3 %v2070_v10 }
 0x4a5   :  { %v2174_v5 = vpop.eup %2173 }
 0x4a6   :  { %v336_v6 = vmul.f32 %v2174_v5, %v2160_v35  ;;  %v479_v11 = vpop.permute.xlu2 %478 }
 0x4a7   :  { %v484_v17 = vsel %vm345_vm9, %v479_v11, 0  ;;  %v2069_v11 = vld [vmem:[%s2922_s11] sm:$0xff] }
 0x4a8   :  { %v338_v7 = vpack.c.bf16 %v336_v6, %v336_v6  ;;  %v2176_v12 = vpop.eup %2175  ;;  %794 = vmatpush.bf16.msra.mxu3 %v2069_v11 }
 0x4a9   :  { %v337_v13 = vmul.f32 %v2176_v12, %v2521_v37  ;;  %v2178_v14 = vpop.eup %2177 }
 0x4aa   :  { %1932 = vmatmul.msk.bf16.vlgmr.msrb.gmra.mxu1 %vm80_vm0, %v338_v7  ;;  %v680_v22 = vsel %vm80_vm0, %v2178_v14, 0.0 }
 0x4ab   :  { %v339_v20 = vpack.c.bf16 %v337_v13, %v337_v13 }
 0x4ae   :  { %v595_v19 = vpop.permute.xlu2 %594 }
 0x4af   :  { %v600_v23 = vsel %vm345_vm9, %v595_v19, 0 }
 0x4b9   :  { %v363_v15 = vpop.permute.xlu1 %362 }
 0x4ba   :  { %v368_v16 = vsel %vm345_vm9, %v363_v15, 0 }
 0x4bb   :  { %377 = vmatpush.bf16.msrb.mxu2 %v368_v16 }
 0x4bd   :  { %681 = vadd.xlane.f32.xlu2 %v680_v22 }
 0x4be   :  { %1933 = vmatmul.msk.bf16.vlgmr.msrb.gmra.mxu2 %vm80_vm0, %v339_v20 }
 0x4bf   :  { %493 = vmatpush.bf16.msra.mxu2 %v484_v17 }
 0x4c3   :  { %609 = vmatpush.bf16.msrb.mxu2 %v600_v23 }
 0x4c6   :  { %v563_v29 = vpop.xlane.xlu0 %562 }
 0x4d9   :  { %v711_v36 = vpop.permute.xlu0 %710 }
 0x4da   :  { %v716_v40 = vsel %vm345_vm9, %v711_v36, 0 }
 0x4e4   :  { %v566_v31 = vpop.xlane.xlu1 %565 }
 0x4e7   :  { %v447_v25 = vpop.xlane.xlu2 %446 }
 0x4e8   :  { %2179 = vrcp.f32 %v447_v25 }
 0x4ec   :  { %v679_v41 = vpop.xlane.xlu1 %678 }
 0x4ee   :  { %v2180_v26 = vpop.eup %2179 }
 0x4ef   :  { %v453_v27 = vmul.f32 %v2180_v26, %v2168_v59  ;;  %v450_v28 = vpop.xlane.xlu2 %449 }
 0x4f0   :  { %2181 = vrcp.f32 %v450_v28 }
 0x4f1   :  { %v455_v30 = vpack.c.bf16 %v453_v27, %v453_v27  ;;  %2183 = vrcp.f32 %v563_v29 }
 0x4f2   :  { %2185 = vrcp.f32 %v566_v31  ;;  %v2140_v31 = vld [vmem:[%s2921_s12] ss:$0 sm:$0xff] }
 0x4f3   :  { %1936 = vmatmul.msk.bf16.vlgmr.msra.gmra.mxu1 %vm80_vm0, %v455_v30  ;;  %2187 = vrcp.f32 %v679_v41 }
 0x4f6   :  { %v2182_v33 = vpop.eup %2181 }
 0x4f7   :  { %v454_v34 = vmul.f32 %v2182_v33, %v2172_v0  ;;  %v574_v35 = vpop.permute.xlu2 %573  ;;  %v2184_v39 = vpop.eup %2183 }
 0x4f8   :  { %v579_v37 = vsel %vm345_vm9, %v574_v35, 0  ;;  %v569_v42 = vmul.f32 %v2184_v39, %v2531_v43  ;;  %v2186_v45 = vpop.eup %2185 }
 0x4f9   :  { %v456_v38 = vpack.c.bf16 %v454_v34, %v454_v34  ;;  %588 = vmatpush.bf16.msrb.mxu1 %v579_v37  ;;  %v570_v47 = vmul.f32 %v2186_v45, %v2540_v57  ;;  %v2188_v50 = vpop.eup %2187 }
 0x4fa   :  { %v571_v44 = vpack.c.bf16 %v569_v42, %v569_v42  ;;  %v685_v51 = vmul.f32 %v2188_v50, %v2546_v63  ;;  %v2072_v50 = vld [vmem:[%s2926_s15 + $0x8] sm:$0xff] }
 0x4fb   :  { %1937 = vmatmul.msk.bf16.vlgmr.msra.gmra.mxu2 %vm80_vm0, %v456_v38  ;;  %v572_v49 = vpack.c.bf16 %v570_v47, %v570_v47  ;;  %889 = vmatpush.bf16.msrb.mxu0 %v2072_v50 }
 0x4fc   :  { %725 = vmatpush.bf16.msra.mxu2 %v716_v40  ;;  %v687_v52 = vpack.c.bf16 %v685_v51, %v685_v51 }
 0x503   :  { %1940 = vmatmul.msk.bf16.vlgmr.msrb.gmra.mxu1 %vm80_vm0, %v571_v44 }
 0x504   :  { %v690_v46 = vpop.permute.xlu1 %689 }
 0x505   :  { %v695_v48 = vsel %vm345_vm9, %v690_v46, 0 }
 0x506   :  { %704 = vmatpush.bf16.msra.mxu1 %v695_v48 }
 0x50b   :  { %1941 = vmatmul.msk.bf16.vlgmr.msrb.gmra.mxu2 %vm80_vm0, %v572_v49 }
 0x513   :  { %1944 = vmatmul.msk.bf16.vlgmr.msra.gmra.mxu1 %vm80_vm0, %v687_v52 }
 0x527   :  { %v358_v43 = vpop.f32.mrf.mxu1 }
 0x52f   :  { %v360_v53 = vpop.f32.mrf.mxu1 }
 0x530   :  { %v682_v54 = vpop.xlane.xlu2 %681  ;;  %v2071_v53 = vld [vmem:[%s2926_s15] sm:$0xff] }
 0x531   :  { %2189 = vrcp.f32 %v682_v54  ;;  %890 = vmatpush.bf16.msrb.mxu0 %v2071_v53 }
 0x537   :  { %v2190_v55 = vpop.eup %2189 }
 0x538   :  { %v686_v56 = vmul.f32 %v2190_v55, %v2178_v14 }
 0x53a   :  { %v688_v58 = vpack.c.bf16 %v686_v56, %v686_v56 }
 0x53c   :  { %1945 = vmatmul.msk.bf16.vlgmr.msra.gmra.mxu2 %vm80_vm0, %v688_v58 }
 0x541   :  { %v379_v57 = vpop.f32.mrf.mxu2 }
 0x549   :  { %v381_v59 = vpop.f32.mrf.mxu2 }
 0x570   :  { %v474_v60 = vpop.f32.mrf.mxu1 }
 0x578   :  { %v476_v61 = vpop.f32.mrf.mxu1 }
 0x57e   :  { %v495_v21 = vpop.f32.mrf.mxu2 }
 0x57f   :  { %v2101_v62 = vpack.i.bf16 %v495_v21, %v474_v60 }
 0x580   :  { %v590_v0 = vpop.f32.mrf.mxu1 }
 0x581   :  { %2102 = vrot.lane.b32.xlu0 %v2101_v62, %s2944_s6 }
 0x586   :  { %v497_v63 = vpop.f32.mrf.mxu2 }
 0x588   :  { %v592_v1 = vpop.f32.mrf.mxu1 }
 0x58e   :  { %v611_v2 = vpop.f32.mrf.mxu2 }
 0x58f   :  { %v2106_v3 = vpack.i.bf16 %v611_v2, %v590_v0 }
 0x590   :  { %v706_v4 = vpop.f32.mrf.mxu1 }
 0x591   :  { %2107 = vrot.lane.b32.xlu1 %v2106_v3, %s2948_s26 }
 0x596   :  { %v613_v5 = vpop.f32.mrf.mxu2 }
 0x598   :  { %v708_v6 = vpop.f32.mrf.mxu1 }
 0x5bf   :  { %v727_v7 = vpop.f32.mrf.mxu2 }
 0x5c0   :  { %v2111_v8 = vpack.i.bf16 %v727_v7, %v706_v4  ;;  %v2141_v4 = vld [vmem:[%s2923_s13] ss:$0 sm:$0xff] }
 0x5c2   :  { %2112 = vrot.lane.b32.xlu0 %v2111_v8, %s2947_s25  ;;  %v2142_v8 = vld [vmem:[%s2924_s14] ss:$0 sm:$0xff] }
 0x5c7   :  { %v729_v9 = vpop.f32.mrf.mxu2 }
 0x5f3   :  { %v2103_v12 = vpop.permute.xlu0 %2102 }
 0x5f4   :  { %v2105_v14 = vunpack.i.h.bf16 %v2103_v12  ;;  %v2104_v15 = vunpack.i.l.bf16 %v2103_v12 }
 0x5f6   :  { %v756_v20 = vsel %vm80_vm0, %v379_v57, %v2105_v14  ;;  %v755_v22 = vsel %vm80_vm0, %v358_v43, %v2104_v15  ;;  %v2143_v15 = vld [vmem:[%s2925_s16] ss:$0 sm:$0xff] }
 0x603   :  { %v2108_v13 = vpop.permute.xlu1 %2107 }
 0x604   :  { %v2110_v16 = vunpack.i.h.bf16 %v2108_v13  ;;  %v2109_v17 = vunpack.i.l.bf16 %v2108_v13 }
 0x606   :  { %v759_v26 = vsel %vm757_vm10, %v756_v20, %v2110_v16  ;;  %v758_v27 = vsel %vm757_vm10, %v755_v22, %v2109_v17 }
 0x634   :  { %v2113_v19 = vpop.permute.xlu0 %2112 }
 0x635   :  { %v2115_v23 = vunpack.i.h.bf16 %v2113_v19  ;;  %v2114_v25 = vunpack.i.l.bf16 %v2113_v19 }
 0x637   :  { %v762_v28 = vsel %vm760_vm11, %v759_v26, %v2115_v23  ;;  %v761_v29 = vsel %vm760_vm11, %v758_v27, %v2114_v25 }
 0x638   :  { %v763_v30 = vpack.c.bf16 %v762_v28, %v761_v29 }
 0x63a   :  { %1954 = vmatmul.msk.bf16.vlgmr.msra.gmra.mxu3 %vm133_vm1, %v763_v30  ;;  %v2074_v30 = vld [vmem:[%s2928_s17 + $0x8] sm:$0xff] }
 0x63b   :  { %979 = vmatpush.bf16.msrb.mxu1 %v2074_v30 }
 0x6bd   :  { %v796_v33 = vpop.f32.mrf.mxu3 }
 0x6be   :  { %v797_v34 = vadd.f32 %v2140_v31, %v796_v33 }
 0x6c0   :  { %v2595_v35 = vadd.f32 %v797_v34, %v2408_v18 }
 0x6c2   :  { %v805_v36 = vsel %vm133_vm1, %v2595_v35, 0.0 }
 0x6c3   :  { %806 = vadd.xlane.f32.xlu2 %v805_v36 }
 0x6c5   :  { %v798_v37 = vpop.f32.mrf.mxu3 }
 0x6c6   :  { %v799_v38 = vadd.f32 %v2140_v31, %v798_v37 }
 0x6c8   :  { %v2600_v39 = vadd.f32 %v799_v38, %v2415_v24  ;;  %v2073_v38 = vld [vmem:[%s2928_s17] sm:$0xff] }
 0x6c9   :  { %980 = vmatpush.bf16.msrb.mxu1 %v2073_v38 }
 0x6ca   :  { %v808_v40 = vsel %vm133_vm1, %v2600_v39, 0.0 }
 0x6cb   :  { %809 = vadd.xlane.f32.xlu1 %v808_v40 }
 0x736   :  { %v807_v41 = vpop.xlane.xlu2 %806 }
 0x737   :  { %v811_v42 = vmul.f32 %v807_v41, %v2419_v32 }
 0x739   :  { %v813_v44 = vsub.f32 %v2595_v35, %v811_v42 }
 0x73b   :  { %v815_v18 = vmul.f32 %v813_v44, %v813_v44 }
 0x73d   :  { %v817_v45 = vsel %vm133_vm1, %v815_v18, 0.0 }
 0x73e   :  { %v810_v46 = vpop.xlane.xlu1 %809  ;;  %818 = vadd.xlane.f32.xlu0 %v817_v45 }
 0x73f   :  { %v812_v47 = vmul.f32 %v810_v46, %v2419_v32 }
 0x741   :  { %v814_v48 = vsub.f32 %v2600_v39, %v812_v47 }
 0x743   :  { %v816_v24 = vmul.f32 %v814_v48, %v814_v48 }
 0x745   :  { %v820_v49 = vsel %vm133_vm1, %v816_v24, 0.0 }
 0x746   :  { %821 = vadd.xlane.f32.xlu2 %v820_v49 }
 0x7b1   :  { %v819_v51 = vpop.xlane.xlu0 %818 }
 0x7b2   :  { %v823_v52 = vmul.f32 %v819_v51, %v2419_v32 }
 0x7b4   :  { %v825_v43 = vadd.f32 1e-05, %v823_v52 }
 0x7b6   :  { %2191 = vrsqrt.f32 %v825_v43  ;;  %vm833_vm13 = vweird.f32 %v825_v43 }
 0x7b9   :  { %v822_v54 = vpop.xlane.xlu2 %821 }
 0x7ba   :  { %v824_v55 = vmul.f32 %v822_v54, %v2419_v32 }
 0x7bc   :  { %v2192_v56 = vpop.eup %2191  ;;  %v826_v58 = vadd.f32 1e-05, %v824_v55 }
 0x7bd   :  { %v828_v57 = vmul.f32 %v2192_v56, %v825_v43  ;;  %vm834_vm12 = vweird.f32 %v2192_v56 }
 0x7be   :  { %2193 = vrsqrt.f32 %v826_v58  ;;  %vm835_vm14 = vmor %vm833_vm13, %vm834_vm12  ;;  %vm843_vm2 = vweird.f32 %v826_v58 }
 0x7bf   :  { %v829_v59 = vmul.f32 %v2192_v56, %v828_v57 }
 0x7c1   :  { %v830_v60 = vmul.f32 0.5, %v829_v59 }
 0x7c3   :  { %v831_v61 = vsub.f32 1.5, %v830_v60 }
 0x7c4   :  { %v2194_v21 = vpop.eup %2193 }
 0x7c5   :  { %v832_v62 = vmul.f32 %v2192_v56, %v831_v61  ;;  %v838_v0 = vmul.f32 %v2194_v21, %v826_v58  ;;  %vm844_vm15 = vweird.f32 %v2194_v21 }
 0x7c6   :  { %vm845_vm3 = vmor %vm843_vm2, %vm844_vm15 }
 0x7c7   :  { %v839_v63 = vmul.f32 %v2194_v21, %v838_v0  ;;  %v836_v1 = vsel %vm835_vm14, %v2192_v56, %v832_v62  ;;  %v2270_v0 = vmov -1.0  }
 0x7c8   :  { %v847_v5 = vmul.f32 %v836_v1, %v813_v44 }
 0x7c9   :  { %v840_v2 = vmul.f32 0.5, %v839_v63 }
 0x7ca   :  { %v852_v9 = vmul.f32 %v2141_v4, %v847_v5 }
 0x7cb   :  { %v841_v3 = vsub.f32 1.5, %v840_v2 }
 0x7cc   :  { %v857_v12 = vadd.f32 %v2142_v8, %v852_v9 }
 0x7cd   :  { %v842_v6 = vmul.f32 %v2194_v21, %v841_v3 }
 0x7cf   :  { %v846_v7 = vsel %vm845_vm3, %v2194_v21, %v842_v6 }
 0x7d0   :  { %v848_v10 = vmul.f32 %v846_v7, %v814_v48 }
 0x7d2   :  { %v853_v11 = vmul.f32 %v2141_v4, %v848_v10 }
 0x7d4   :  { %v858_v13 = vadd.f32 %v2142_v8, %v853_v11 }
 0x7d6   :  { %v859_v14 = vpack.c.bf16 %v858_v13, %v857_v12  ;;  %v2076_v13 = vld [vmem:[%s2957_s2 + $0x18] sm:$0xff] }
 0x7d7   :  { %1023 = vmatpush.bf16.msrb.mxu2 %v2076_v13 }
 0x7d8   :  { %1963 = vmatmul.msk.bf16.vlgmr.msrb.gmra.mxu0 %vm133_vm1, %v859_v14  ;;  %v2075_v14 = vld [vmem:[%s2957_s2 + $0x10] sm:$0xff] }
 0x7db   :  { %1024 = vmatpush.bf16.msrb.mxu2 %v2075_v14 }
 0x855   :  { %v892_v16 = vpop.f32.mrf.mxu0 }
 0x856   :  { %v893_v17 = vadd.f32 %v2143_v15, %v892_v16  ;;  %v2144_v16 = vld [vmem:[%s2927_s18] ss:$0 sm:$0xff] }
 0x858   :  { %v899_v19 = vmul.f32 0.70710677, %v893_v17  ;;  %v897_v7 = vmul.f32 0.5, %v893_v17 }
 0x85a   :  { %v905_v20 = vand.u32 2147483647, %v899_v19  ;;  %vm901_vm4 = vcmp.ge.f32.partialorder %v899_v19, 0.0 }
 0x85b   :  { %v903_v63 = vsel %vm901_vm4, 1.0, %v2270_v0 }
 0x85c   :  { %v907_v22 = vmul.f32 0.3275911, %v905_v20  ;;  %v931_v33 = vsub.f32 0.0, %v905_v20 }
 0x85d   :  { %v894_v23 = vpop.f32.mrf.mxu0 }
 0x85e   :  { %v909_v25 = vadd.f32 1.0, %v907_v22  ;;  %v895_v26 = vadd.f32 %v2143_v15, %v894_v23  ;;  %v933_v40 = vmul.f32 %v931_v33, %v905_v20 }
 0x860   :  { %2195 = vrcp.f32 %v909_v25  ;;  %v900_v27 = vmul.f32 0.70710677, %v895_v26  ;;  %v935_v18 = vmul.f32 1.442695, %v933_v40  ;;  %v898_v8 = vmul.f32 0.5, %v895_v26 }
 0x862   :  { %v906_v28 = vand.u32 2147483647, %v900_v27  ;;  %vm902_vm5 = vcmp.ge.f32.partialorder %v900_v27, 0.0 }
 0x863   :  { %v904_v4 = vsel %vm902_vm5, 1.0, %v2270_v0 }
 0x864   :  { %v908_v29 = vmul.f32 0.3275911, %v906_v28  ;;  %v932_v45 = vsub.f32 0.0, %v906_v28 }
 0x866   :  { %v2196_v31 = vpop.eup %2195  ;;  %v910_v34 = vadd.f32 1.0, %v908_v29  ;;  %v934_v49 = vmul.f32 %v932_v45, %v906_v28  ;;  %v2145_v28 = vld [vmem:[%s2960_s29 + $0x1] ss:$0 sm:$0xff]  ;;  %s2968_s29 = smov 24  }
 0x867   :  { %v913_v36 = vmul.f32 1.0614054, %v2196_v31  ;;  %v2251_v29 = vld [vmem:[%s2959_s27] sm:$0x3] }
 0x868   :  { %2197 = vrcp.f32 %v910_v34  ;;  %v937_v53 = vmul.f32 1.442695, %v934_v49  ;;  %v1031_v30 = vperm.slane %v2251_v29, 1  ;;  %v2252_v34 = vld [vmem:[%s2959_s27 + $0x2] sm:$0x3]  ;;  %s2967_s27 = smov 16  }
 0x869   :  { %v915_v37 = vadd.f32 -1.4531521, %v913_v36  ;;  %2199 = vpow2.f32 %v935_v18  ;;  %v1032_v36 = vperm.slane %v2252_v34, 1 }
 0x86a   :  { %2201 = vpow2.f32 %v937_v53 }
 0x86b   :  { %v917_v41 = vmul.f32 %v2196_v31, %v915_v37 }
 0x86d   :  { %v919_v42 = vadd.f32 1.4214138, %v917_v41 }
 0x86e   :  { %v2198_v44 = vpop.eup %2197 }
 0x86f   :  { %v921_v46 = vmul.f32 %v2196_v31, %v919_v42  ;;  %v914_v47 = vmul.f32 1.0614054, %v2198_v44  ;;  %v2200_v56 = vpop.eup %2199 }
 0x870   :  { %v2202_v62 = vpop.eup %2201 }
 0x871   :  { %v923_v48 = vadd.f32 -0.28449672, %v921_v46  ;;  %v916_v24 = vadd.f32 -1.4531521, %v914_v47 }
 0x873   :  { %v925_v50 = vmul.f32 %v2196_v31, %v923_v48  ;;  %v918_v51 = vmul.f32 %v2198_v44, %v916_v24 }
 0x875   :  { %v927_v52 = vadd.f32 0.2548296, %v925_v50  ;;  %v920_v43 = vadd.f32 1.4214138, %v918_v51  ;;  %v2078_v51 = vld [vmem:[%s2919_s9 + $0x18] sm:$0xff] }
 0x876   :  { %1125 = vmatpush.bf16.msrb.mxu3 %v2078_v51 }
 0x877   :  { %v929_v54 = vmul.f32 %v2196_v31, %v927_v52  ;;  %v922_v55 = vmul.f32 %v2198_v44, %v920_v43 }
 0x879   :  { %v939_v58 = vmul.f32 %v2200_v56, %v929_v54  ;;  %v924_v57 = vadd.f32 -0.28449672, %v922_v55  ;;  %v2077_v54 = vld [vmem:[%s2919_s9 + $0x10] sm:$0xff] }
 0x87a   :  { %1126 = vmatpush.bf16.msrb.mxu3 %v2077_v54 }
 0x87b   :  { %v926_v59 = vmul.f32 %v2198_v44, %v924_v57  ;;  %v941_v60 = vsub.f32 1.0, %v939_v58 }
 0x87d   :  { %v928_v61 = vadd.f32 0.2548296, %v926_v59  ;;  %v943_v1 = vmul.f32 %v941_v60, %v903_v63 }
 0x87f   :  { %v930_v21 = vmul.f32 %v2198_v44, %v928_v61  ;;  %v945_v5 = vadd.f32 1.0, %v943_v1 }
 0x881   :  { %v940_v2 = vmul.f32 %v2202_v62, %v930_v21  ;;  %v947_v10 = vmul.f32 %v945_v5, %v897_v7 }
 0x883   :  { %v942_v3 = vsub.f32 1.0, %v940_v2 }
 0x885   :  { %v944_v6 = vmul.f32 %v942_v3, %v904_v4 }
 0x887   :  { %v946_v9 = vadd.f32 1.0, %v944_v6  ;;  %v2135_v6 = vld [vmem:[%s2916_s7 + $0x1] ss:$0 sm:$0xff]  ;;  %s2961_s7 = smov 104  }
 0x889   :  { %v948_v11 = vmul.f32 %v946_v9, %v898_v8 }
 0x88b   :  { %v949_v12 = vpack.c.bf16 %v948_v11, %v947_v10  ;;  %v2136_v10 = vld [vmem:[%s2917_s8 + $0x1] ss:$0 sm:$0xff]  ;;  %s2962_s8 = smov 64  }
 0x88d   :  { %1972 = vmatmul.msk.bf16.vlgmr.msrb.gmra.mxu1 %vm133_vm1, %v949_v12 }
 0x90a   :  { %v982_v15 = vpop.f32.mrf.mxu1 }
 0x90b   :  { %v983_v17 = vadd.f32 %v2144_v16, %v982_v15 }
 0x90d   :  { %v987_v20 = vadd.f32 %v983_v17, %v2595_v35  ;;  %v2146_v17 = vld [vmem:[%s2918_s10 + $0x1] ss:$0 sm:$0xff] }
 0x90f   :  { %v989_v25 = vmax.f32 %v987_v20, 0.0 }
 0x912   :  { %v984_v19 = vpop.f32.mrf.mxu1 }
 0x913   :  { %v985_v22 = vadd.f32 %v2144_v16, %v984_v19 }
 0x915   :  { %v988_v23 = vadd.f32 %v985_v22, %v2600_v39 }
 0x917   :  { %v990_v26 = vmax.f32 %v988_v23, 0.0 }
 0x919   :  { %v991_v27 = vpack.c.bf16 %v990_v26, %v989_v25 }
 0x91b   :  { %1986 = vmatmul.msk.bf16.vlgmr.msrb.gmra.mxu2 %vm133_vm1, %v991_v27 }
 0x99e   :  { %v1026_v31 = vpop.f32.mrf.mxu2 }
 0x99f   :  { %v1027_v33 = vadd.f32 %v2145_v28, %v1026_v31 }
 0x9a1   :  { %v2655_v35 = vadd.f32 %v1031_v30, %v1027_v33 }
 0x9a3   :  { %v1039_v39 = vsel %vm133_vm1, %v2655_v35, 0.0 }
 0x9a4   :  { %1040 = vadd.xlane.f32.xlu2 %v1039_v39 }
 0x9a6   :  { %v1028_v37 = vpop.f32.mrf.mxu2 }
 0x9a7   :  { %v1029_v38 = vadd.f32 %v2145_v28, %v1028_v37 }
 0x9a9   :  { %v2662_v40 = vadd.f32 %v1032_v36, %v1029_v38 }
 0x9ab   :  { %v1042_v41 = vsel %vm133_vm1, %v2662_v40, 0.0 }
 0x9ac   :  { %1043 = vadd.xlane.f32.xlu2 %v1042_v41 }
 0xa17   :  { %v1041_v42 = vpop.xlane.xlu2 %1040 }
 0xa18   :  { %v1045_v44 = vmul.f32 %v1041_v42, %v2419_v32 }
 0xa1a   :  { %v1047_v18 = vsub.f32 %v2655_v35, %v1045_v44 }
 0xa1c   :  { %v1049_v45 = vmul.f32 %v1047_v18, %v1047_v18 }
 0xa1e   :  { %v1051_v46 = vsel %vm133_vm1, %v1049_v45, 0.0 }
 0xa1f   :  { %1052 = vadd.xlane.f32.xlu2 %v1051_v46  ;;  %v1044_v47 = vpop.xlane.xlu2 %1043 }
 0xa20   :  { %v1046_v48 = vmul.f32 %v1044_v47, %v2419_v32 }
 0xa22   :  { %v1048_v24 = vsub.f32 %v2662_v40, %v1046_v48 }
 0xa24   :  { %v1050_v49 = vmul.f32 %v1048_v24, %v1048_v24 }
 0xa26   :  { %v1054_v50 = vsel %vm133_vm1, %v1050_v49, 0.0 }
 0xa27   :  { %1055 = vadd.xlane.f32.xlu2 %v1054_v50 }
 0xa92   :  { %v1053_v52 = vpop.xlane.xlu2 %1052 }
 0xa93   :  { %v1057_v43 = vmul.f32 %v1053_v52, %v2419_v32 }
 0xa95   :  { %v1059_v53 = vadd.f32 1e-05, %v1057_v43 }
 0xa97   :  { %2203 = vrsqrt.f32 %v1059_v53  ;;  %vm1067_vm7 = vweird.f32 %v1059_v53 }
 0xa9a   :  { %v1056_v55 = vpop.xlane.xlu2 %1055 }
 0xa9b   :  { %v1058_v56 = vmul.f32 %v1056_v55, %v2419_v32 }
 0xa9d   :  { %v2204_v58 = vpop.eup %2203  ;;  %v1060_v57 = vadd.f32 1e-05, %v1058_v56 }
 0xa9e   :  { %v1062_v59 = vmul.f32 %v2204_v58, %v1059_v53  ;;  %vm1068_vm6 = vweird.f32 %v2204_v58 }
 0xa9f   :  { %2205 = vrsqrt.f32 %v1060_v57  ;;  %vm1069_vm8 = vmor %vm1067_vm7, %vm1068_vm6  ;;  %vm1077_vm13 = vweird.f32 %v1060_v57 }
 0xaa0   :  { %v1063_v60 = vmul.f32 %v2204_v58, %v1062_v59 }
 0xaa2   :  { %v1064_v61 = vmul.f32 0.5, %v1063_v60 }
 0xaa4   :  { %v1065_v21 = vsub.f32 1.5, %v1064_v61 }
 0xaa5   :  { %v2206_v62 = vpop.eup %2205 }
 0xaa6   :  { %v1066_v63 = vmul.f32 %v2204_v58, %v1065_v21  ;;  %v1072_v1 = vmul.f32 %v2206_v62, %v1060_v57  ;;  %vm1078_vm12 = vweird.f32 %v2206_v62  ;;  %v2253_v57 = vld [vmem:[%s2920_s1] ss:$0 sm:$0xff] }
 0xaa7   :  { %vm1079_vm14 = vmor %vm1077_vm13, %vm1078_vm12 }
 0xaa8   :  { %v1073_v2 = vmul.f32 %v2206_v62, %v1072_v1  ;;  %v1070_v3 = vsel %vm1069_vm8, %v2204_v58, %v1066_v63  ;;  %v2254_v63 = vld [vmem:[%s2920_s1 + $0x1] ss:$0 sm:$0xff]  ;;  %s2963_s1 = smov 56  }
 0xaa9   :  { %v1081_v7 = vmul.f32 %v1070_v3, %v1047_v18 }
 0xaaa   :  { %v1074_v4 = vmul.f32 0.5, %v1073_v2 }
 0xaab   :  { %v1086_v11 = vmul.f32 %v2135_v6, %v1081_v7 }
 0xaac   :  { %v1075_v5 = vsub.f32 1.5, %v1074_v4 }
 0xaad   :  { %v1091_v14 = vadd.f32 %v2136_v10, %v1086_v11 }
 0xaae   :  { %v1076_v8 = vmul.f32 %v2206_v62, %v1075_v5 }
 0xab0   :  { %v1080_v9 = vsel %vm1079_vm14, %v2206_v62, %v1076_v8 }
 0xab1   :  { %v1082_v12 = vmul.f32 %v1080_v9, %v1048_v24 }
 0xab3   :  { %v1087_v13 = vmul.f32 %v2135_v6, %v1082_v12 }
 0xab5   :  { %v1092_v15 = vadd.f32 %v2136_v10, %v1087_v13 }
 0xab7   :  { %v1093_v16 = vpack.c.bf16 %v1092_v15, %v1091_v14 }
 0xab9   :  { %2002 = vmatmul.msk.bf16.vlgmr.msrb.gmra.mxu3 %vm133_vm1, %v1093_v16 }
 0xb3c   :  { %v1128_v19 = vpop.f32.mrf.mxu3 }
 0xb3d   :  { %v1129_v20 = vadd.f32 %v2146_v17, %v1128_v19 }
 0xb3f   :  { %v1133_v22 = vpack.c.bf16 %v1129_v20, %v1129_v20 }
 0xb41   :  { %v1136_v23 = vunpack.c.l.b16 %v1133_v22 }
 0xb43   :  { %v2690_v25 = vpack.c.b16 %v1136_v23, %v1136_v23 }
 0xb44   :  { %v1130_v26 = vpop.f32.mrf.mxu3 }
 0xb45   :  { %v1131_v27 = vadd.f32 %v2146_v17, %v1130_v26  ;;  %1255 = vrot.lane.b32.xlu2 %v2690_v25, %s2256_s3  ;;  %1138 = vrot.lane.b32.xlu1 %v2690_v25, %s2257_s5 }
 0xb47   :  { %v1134_v28 = vpack.c.bf16 %v1131_v27, %v1131_v27 }
 0xb49   :  { %v1160_v29 = vunpack.c.l.b16 %v1134_v28 }
 0xb4b   :  { %v2696_v30 = vpack.c.b16 %v1160_v29, %v1160_v29 }
 0xb4d   :  { %1162 = vrot.lane.b32.xlu0 %v2696_v30, %s2257_s5  ;;  %1276 = vrot.lane.b32.xlu2 %v2696_v30, %s2261_s0 }
 0xb4e   :  { %1253 = vrot.lane.b32.xlu1 %v2690_v25, %s2261_s0  ;;  %s2966_s0 = smov 8  }
 0xb55   :  { %1278 = vrot.lane.b32.xlu0 %v2696_v30, %s2256_s3  ;;  %1369 = vrot.lane.b32.xlu2 %v2690_v25, %s2259_s22 }
 0xb56   :  { %1394 = vrot.lane.b32.xlu1 %v2696_v30, %s2258_s30 }
 0xb5d   :  { %1371 = vrot.lane.b32.xlu0 %v2690_v25, %s2258_s30  ;;  %1510 = vrot.lane.b32.xlu2 %v2696_v30, %s2260_s23 }
 0xb5e   :  { %1487 = vrot.lane.b32.xlu1 %v2690_v25, %s2260_s23  ;;  %s2965_s23 = smov 40  }
 0xb65   :  { %1392 = vrot.lane.b32.xlu0 %v2696_v30, %s2259_s22  ;;  %s2964_s22 = smov 48  }
 0xb66   :  { %1508 = vrot.lane.b32.xlu1 %v2696_v30, %s2961_s7 }
 0xb6d   :  { %1485 = vrot.lane.b32.xlu0 %v2690_v25, %s2961_s7 }
 0xb75   :  { %1211 = vrot.lane.b32.xlu0 %v2690_v25, %s2962_s8 }
 0xb9f   :  { %v1256_v31 = vpop.permute.xlu2 %1255 }
 0xba0   :  { %v1261_v34 = vsel %vm80_vm0, %v1256_v31, 0 }
 0xba7   :  { %v1277_v41 = vpop.permute.xlu2 %1276 }
 0xbaf   :  { %v1370_v46 = vpop.permute.xlu2 %1369 }
 0xbb7   :  { %v1139_v33 = vpop.permute.xlu1 %1138  ;;  %v1511_v50 = vpop.permute.xlu2 %1510 }
 0xbb8   :  { %v1144_v39 = vsel %vm80_vm0, %v1139_v33, 0  ;;  %v1516_v52 = vsel %vm80_vm0, %v1511_v50, 0 }
 0xbb9   :  { %1153 = vmatpush.bf16.xpose.msra.mxu0 %v1144_v39 }
 0xbbf   :  { %v1163_v36 = vpop.permute.xlu0 %1162 }
 0xbc0   :  { %v1168_v37 = vsel %vm80_vm0, %v1163_v36, 0  ;;  %v1254_v38 = vpop.permute.xlu1 %1253  ;;  %2003 = vmatmul.msk.bf16.vlgmr.msra.gmra.mxu0 %vm80_vm0, %v1133_v22 }
 0xbc1   :  { %1270 = vmatpush.bf16.xpose.msrb.mxu0 %v1261_v34  ;;  %1177 = vmatpush.bf16.xpose.msra.mxu1 %v1168_v37 }
 0xbc7   :  { %v1279_v42 = vpop.permute.xlu0 %1278 }
 0xbc8   :  { %v1284_v44 = vsel %vm80_vm0, %v1279_v42, 0  ;;  %v1395_v18 = vpop.permute.xlu1 %1394  ;;  %2004 = vmatmul.msk.bf16.vlgmr.msra.gmra.mxu1 %vm80_vm0, %v1134_v28 }
 0xbc9   :  { %v1400_v45 = vsel %vm80_vm0, %v1395_v18, 0  ;;  %1293 = vmatpush.bf16.xpose.msrb.mxu1 %v1284_v44 }
 0xbcf   :  { %v1372_v47 = vpop.permute.xlu0 %1371 }
 0xbd0   :  { %v1377_v48 = vsel %vm80_vm0, %v1372_v47, 0  ;;  %v1488_v24 = vpop.permute.xlu1 %1487  ;;  %2007 = vmatmul.msk.bf16.vlgmr.msrb.gmra.mxu0 %vm80_vm0, %v1254_v38 }
 0xbd1   :  { %1409 = vmatpush.bf16.xpose.msra.mxu1 %v1400_v45  ;;  %v1493_v49 = vsel %vm80_vm0, %v1488_v24, 0  ;;  %1386 = vmatpush.bf16.xpose.msra.mxu0 %v1377_v48 }
 0xbd7   :  { %v1393_v51 = vpop.permute.xlu0 %1392 }
 0xbd8   :  { %2008 = vmatmul.msk.bf16.vlgmr.msrb.gmra.mxu1 %vm80_vm0, %v1277_v41  ;;  %v1509_v55 = vpop.permute.xlu1 %1508 }
 0xbd9   :  { %1502 = vmatpush.bf16.xpose.msrb.mxu0 %v1493_v49  ;;  %1525 = vmatpush.bf16.xpose.msrb.mxu1 %v1516_v52 }
 0xbdf   :  { %v1486_v43 = vpop.permute.xlu0 %1485 }
 0xbe0   :  { %2011 = vmatmul.msk.bf16.vlgmr.msra.gmra.mxu0 %vm80_vm0, %v1370_v46 }
 0xbe7   :  { %v1212_v53 = vpop.permute.xlu0 %1211 }
 0xbe8   :  { %v1217_v54 = vsel %vm345_vm9, %v1212_v53, 0  ;;  %2012 = vmatmul.msk.bf16.vlgmr.msra.gmra.mxu1 %vm80_vm0, %v1393_v51 }
 0xbe9   :  { %1226 = vmatpush.bf16.msra.mxu2 %v1217_v54 }
 0xbf0   :  { %2015 = vmatmul.msk.bf16.vlgmr.msrb.gmra.mxu0 %vm80_vm0, %v1486_v43 }
 0xbf8   :  { %2016 = vmatmul.msk.bf16.vlgmr.msrb.gmra.mxu1 %vm80_vm0, %v1509_v55 }
 0xc3d   :  { %v1155_v56 = vpop.f32.mrf.mxu0 }
 0xc3e   :  { %v1183_v58 = vmul.f32 0.35355338, %v1155_v56 }
 0xc40   :  { %v1185_v59 = vadd.f32 %v2253_v57, %v1183_v58 }
 0xc42   :  { %v1187_v60 = vsel %vm80_vm0, %v1185_v59, -inf }
 0xc43   :  { %1188 = vmax.xlane.f32.xlu2 %v1187_v60 }
 0xc45   :  { %v1157_v61 = vpop.f32.mrf.mxu0  ;;  %v1179_v21 = vpop.f32.mrf.mxu1 }
 0xc46   :  { %v1184_v62 = vmul.f32 0.35355338, %v1179_v21 }
 0xc48   :  { %v1186_v1 = vadd.f32 %v2254_v63, %v1184_v62 }
 0xc4a   :  { %v1190_v2 = vsel %vm80_vm0, %v1186_v1, -inf }
 0xc4b   :  { %1191 = vmax.xlane.f32.xlu0 %v1190_v2 }
 0xc4d   :  { %v1181_v3 = vpop.f32.mrf.mxu1  ;;  %v1272_v4 = vpop.f32.mrf.mxu0 }
 0xc4e   :  { %v1299_v5 = vmul.f32 0.35355338, %v1272_v4 }
 0xc50   :  { %v1301_v6 = vadd.f32 %v2253_v57, %v1299_v5 }
 0xc52   :  { %v1303_v7 = vsel %vm80_vm0, %v1301_v6, -inf }
 0xc53   :  { %1304 = vmax.xlane.f32.xlu1 %v1303_v7 }
 0xc55   :  { %v1274_v8 = vpop.f32.mrf.mxu0  ;;  %v1295_v9 = vpop.f32.mrf.mxu1 }
 0xc56   :  { %v1300_v10 = vmul.f32 0.35355338, %v1295_v9 }
 0xc58   :  { %v1302_v11 = vadd.f32 %v2254_v63, %v1300_v10 }
 0xc5a   :  { %v1306_v12 = vsel %vm80_vm0, %v1302_v11, -inf }
 0xc5b   :  { %1307 = vmax.xlane.f32.xlu2 %v1306_v12 }
 0xc5d   :  { %v1297_v13 = vpop.f32.mrf.mxu1  ;;  %v1388_v14 = vpop.f32.mrf.mxu0 }
 0xc5e   :  { %v1415_v15 = vmul.f32 0.35355338, %v1388_v14 }
 0xc60   :  { %v1417_v16 = vadd.f32 %v2253_v57, %v1415_v15 }
 0xc62   :  { %v1419_v17 = vsel %vm80_vm0, %v1417_v16, -inf }
 0xc63   :  { %1420 = vmax.xlane.f32.xlu0 %v1419_v17 }
 0xc65   :  { %v1390_v19 = vpop.f32.mrf.mxu0  ;;  %v1411_v20 = vpop.f32.mrf.mxu1 }
 0xc66   :  { %v1416_v22 = vmul.f32 0.35355338, %v1411_v20 }
 0xc68   :  { %v1418_v23 = vadd.f32 %v2254_v63, %v1416_v22 }
 0xc6a   :  { %v1422_v26 = vsel %vm80_vm0, %v1418_v23, -inf }
 0xc6b   :  { %1423 = vmax.xlane.f32.xlu2 %v1422_v26 }
 0xc6d   :  { %v1413_v27 = vpop.f32.mrf.mxu1  ;;  %v1504_v28 = vpop.f32.mrf.mxu0 }
 0xc6e   :  { %v1531_v29 = vmul.f32 0.35355338, %v1504_v28 }
 0xc70   :  { %v2753_v31 = vadd.f32 %v2253_v57, %v1531_v29 }
 0xc72   :  { %v1535_v33 = vsel %vm80_vm0, %v2753_v31, -inf }
 0xc73   :  { %1536 = vmax.xlane.f32.xlu1 %v1535_v33 }
 0xc75   :  { %v1506_v39 = vpop.f32.mrf.mxu0  ;;  %v1527_v34 = vpop.f32.mrf.mxu1 }
 0xc76   :  { %v1532_v36 = vmul.f32 0.35355338, %v1527_v34 }
 0xc78   :  { %v1534_v37 = vadd.f32 %v2254_v63, %v1532_v36 }
 0xc7a   :  { %v1538_v38 = vsel %vm80_vm0, %v1534_v37, -inf }
 0xc7b   :  { %1539 = vmax.xlane.f32.xlu0 %v1538_v38 }
 0xc7d   :  { %v1529_v41 = vpop.f32.mrf.mxu1 }
 0xc83   :  { %1232 = vrot.lane.b32.xlu2 %v2696_v30, %s2962_s8 }
 0xc8c   :  { %1348 = vrot.lane.b32.xlu1 %v2696_v30, %s2963_s1 }
 0xc8f   :  { %1327 = vrot.lane.b32.xlu0 %v2690_v25, %s2963_s1 }
 0xc94   :  { %1443 = vrot.lane.b32.xlu1 %v2690_v25, %s2964_s22 }
 0xcb6   :  { %v1189_v42 = vpop.xlane.xlu2 %1188 }
 0xcb7   :  { %v1193_v44 = vsub.f32 %v1185_v59, %v1189_v42 }
 0xcb9   :  { %v1195_v18 = vmul.f32 1.442695, %v1193_v44 }
 0xcbb   :  { %2207 = vpow2.f32 %v1195_v18 }
 0xcbe   :  { %v1192_v45 = vpop.xlane.xlu0 %1191 }
 0xcbf   :  { %v1194_v46 = vsub.f32 %v1186_v1, %v1192_v45 }
 0xcc1   :  { %v2766_v47 = vpop.eup %2207  ;;  %v1197_v48 = vmul.f32 1.442695, %v1194_v46 }
 0xcc2   :  { %v1199_v24 = vsel %vm80_vm0, %v2766_v47, 0.0 }
 0xcc3   :  { %2209 = vpow2.f32 %v1197_v48  ;;  %1200 = vadd.xlane.f32.xlu2 %v1199_v24 }
 0xcc6   :  { %v1305_v49 = vpop.xlane.xlu1 %1304 }
 0xcc7   :  { %v1309_v50 = vsub.f32 %v1301_v6, %v1305_v49 }
 0xcc9   :  { %v2770_v51 = vpop.eup %2209  ;;  %v1311_v52 = vmul.f32 1.442695, %v1309_v50 }
 0xcca   :  { %v1202_v43 = vsel %vm80_vm0, %v2770_v51, 0.0 }
 0xccb   :  { %2211 = vpow2.f32 %v1311_v52  ;;  %1203 = vadd.xlane.f32.xlu1 %v1202_v43 }
 0xcce   :  { %v1308_v53 = vpop.xlane.xlu2 %1307 }
 0xccf   :  { %v1310_v54 = vsub.f32 %v1302_v11, %v1308_v53 }
 0xcd1   :  { %v2774_v55 = vpop.eup %2211  ;;  %v1313_v56 = vmul.f32 1.442695, %v1310_v54 }
 0xcd2   :  { %v1315_v58 = vsel %vm80_vm0, %v2774_v55, 0.0 }
 0xcd3   :  { %2213 = vpow2.f32 %v1313_v56  ;;  %1316 = vadd.xlane.f32.xlu1 %v1315_v58 }
 0xcd6   :  { %v1421_v57 = vpop.xlane.xlu0 %1420 }
 0xcd7   :  { %v1425_v59 = vsub.f32 %v1417_v16, %v1421_v57 }
 0xcd9   :  { %v2778_v60 = vpop.eup %2213  ;;  %v1427_v61 = vmul.f32 1.442695, %v1425_v59 }
 0xcda   :  { %v1318_v21 = vsel %vm80_vm0, %v2778_v60, 0.0 }
 0xcdb   :  { %2215 = vpow2.f32 %v1427_v61  ;;  %1319 = vadd.xlane.f32.xlu1 %v1318_v21 }
 0xcde   :  { %v1424_v62 = vpop.xlane.xlu2 %1423 }
 0xcdf   :  { %v1426_v63 = vsub.f32 %v1418_v23, %v1424_v62 }
 0xce1   :  { %v2782_v1 = vpop.eup %2215  ;;  %v1429_v2 = vmul.f32 1.442695, %v1426_v63 }
 0xce2   :  { %v1431_v3 = vsel %vm80_vm0, %v2782_v1, 0.0 }
 0xce3   :  { %2217 = vpow2.f32 %v1429_v2  ;;  %1432 = vadd.xlane.f32.xlu2 %v1431_v3 }
 0xce6   :  { %v1233_v4 = vpop.permute.xlu2 %1232  ;;  %v1537_v11 = vpop.xlane.xlu1 %1536 }
 0xce7   :  { %v1238_v5 = vsel %vm345_vm9, %v1233_v4, 0  ;;  %v1541_v19 = vsub.f32 %v2753_v31, %v1537_v11 }
 0xce8   :  { %1247 = vmatpush.bf16.msra.mxu3 %v1238_v5 }
 0xce9   :  { %v2218_v6 = vpop.eup %2217  ;;  %v1543_v20 = vmul.f32 1.442695, %v1541_v19 }
 0xcea   :  { %v1434_v7 = vsel %vm80_vm0, %v2218_v6, 0.0 }
 0xceb   :  { %1435 = vadd.xlane.f32.xlu0 %v1434_v7 }
 0xcee   :  { %v1540_v8 = vpop.xlane.xlu0 %1539 }
 0xcef   :  { %v1542_v9 = vsub.f32 %v1534_v37, %v1540_v8 }
 0xcf1   :  { %v1545_v10 = vmul.f32 1.442695, %v1542_v9 }
 0xcf3   :  { %2219 = vpow2.f32 %v1545_v10 }
 0xcf4   :  { %1464 = vrot.lane.b32.xlu1 %v2696_v30, %s2964_s22  ;;  %2221 = vpow2.f32 %v1543_v20 }
 0xcf9   :  { %v2790_v12 = vpop.eup %2219 }
 0xcfa   :  { %v1550_v13 = vsel %vm80_vm0, %v2790_v12, 0.0  ;;  %v2222_v22 = vpop.eup %2221 }
 0xcfb   :  { %1551 = vadd.xlane.f32.xlu2 %v1550_v13  ;;  %v1547_v23 = vsel %vm80_vm0, %v2222_v22, 0.0 }
 0xcfe   :  { %v1349_v14 = vpop.permute.xlu1 %1348 }
 0xcff   :  { %v1354_v15 = vsel %vm345_vm9, %v1349_v14, 0  ;;  %1559 = vrot.lane.b32.xlu0 %v2690_v25, %s2965_s23 }
 0xd00   :  { %1363 = vmatpush.bf16.msrb.mxu3 %v1354_v15 }
 0xd01   :  { %v1328_v16 = vpop.permute.xlu0 %1327 }
 0xd02   :  { %v1333_v17 = vsel %vm345_vm9, %v1328_v16, 0 }
 0xd03   :  { %1342 = vmatpush.bf16.msrb.mxu2 %v1333_v17 }
 0xd06   :  { %v1444_v26 = vpop.permute.xlu1 %1443 }
 0xd07   :  { %v1449_v31 = vsel %vm345_vm9, %v1444_v26, 0  ;;  %v2079_v26 = vld [vmem:[%s2922_s11 + $0x10] sm:$0xff] }
 0xd13   :  { %1580 = vrot.lane.b32.xlu2 %v2696_v30, %s2965_s23 }
 0xd1e   :  { %1548 = vadd.xlane.f32.xlu1 %v1547_v23  ;;  %v2080_v23 = vld [vmem:[%s2922_s11 + $0x18] sm:$0xff] }
 0xd1f   :  { %1663 = vmatpush.bf16.msra.mxu0 %v2080_v23 }
 0xd23   :  { %1664 = vmatpush.bf16.msra.mxu0 %v2079_v26 }
 0xd36   :  { %v1201_v27 = vpop.xlane.xlu2 %1200 }
 0xd37   :  { %2223 = vrcp.f32 %v1201_v27 }
 0xd3d   :  { %v2224_v25 = vpop.eup %2223 }
 0xd3e   :  { %v1207_v28 = vmul.f32 %v2224_v25, %v2766_v47  ;;  %v1204_v29 = vpop.xlane.xlu1 %1203 }
 0xd3f   :  { %2225 = vrcp.f32 %v1204_v29 }
 0xd40   :  { %v1209_v33 = vpack.c.bf16 %v1207_v28, %v1207_v28 }
 0xd42   :  { %2005 = vmatmul.msk.bf16.vlgmr.msra.gmra.mxu2 %vm80_vm0, %v1209_v33 }
 0xd43   :  { %1458 = vmatpush.bf16.msra.mxu2 %v1449_v31 }
 0xd45   :  { %v2226_v30 = vpop.eup %2225 }
 0xd46   :  { %v1208_v39 = vmul.f32 %v2226_v30, %v2770_v51  ;;  %v1317_v34 = vpop.xlane.xlu1 %1316 }
 0xd47   :  { %2227 = vrcp.f32 %v1317_v34 }
 0xd48   :  { %v1210_v36 = vpack.c.bf16 %v1208_v39, %v1208_v39 }
 0xd4a   :  { %2006 = vmatmul.msk.bf16.vlgmr.msra.gmra.mxu3 %vm80_vm0, %v1210_v36 }
 0xd4d   :  { %v2228_v37 = vpop.eup %2227 }
 0xd4e   :  { %v1323_v38 = vmul.f32 %v2228_v37, %v2774_v55  ;;  %v1320_v41 = vpop.xlane.xlu1 %1319 }
 0xd4f   :  { %2229 = vrcp.f32 %v1320_v41 }
 0xd50   :  { %v1325_v42 = vpack.c.bf16 %v1323_v38, %v1323_v38 }
 0xd52   :  { %2009 = vmatmul.msk.bf16.vlgmr.msrb.gmra.mxu2 %vm80_vm0, %v1325_v42 }
 0xd55   :  { %v2230_v44 = vpop.eup %2229 }
 0xd56   :  { %v1324_v18 = vmul.f32 %v2230_v44, %v2778_v60  ;;  %v1433_v45 = vpop.xlane.xlu2 %1432 }
 0xd57   :  { %2231 = vrcp.f32 %v1433_v45  ;;  %v2147_v45 = vld [vmem:[%s2921_s12 + $0x1] ss:$0 sm:$0xff] }
 0xd58   :  { %v1326_v46 = vpack.c.bf16 %v1324_v18, %v1324_v18 }
 0xd5a   :  { %2010 = vmatmul.msk.bf16.vlgmr.msrb.gmra.mxu3 %vm80_vm0, %v1326_v46 }
 0xd5d   :  { %v2232_v47 = vpop.eup %2231 }
 0xd5e   :  { %v1439_v48 = vmul.f32 %v2232_v47, %v2782_v1  ;;  %v1436_v24 = vpop.xlane.xlu0 %1435 }
 0xd5f   :  { %2233 = vrcp.f32 %v1436_v24 }
 0xd60   :  { %v1441_v49 = vpack.c.bf16 %v1439_v48, %v1439_v48 }
 0xd62   :  { %2013 = vmatmul.msk.bf16.vlgmr.msra.gmra.mxu2 %vm80_vm0, %v1441_v49 }
 0xd65   :  { %v2234_v50 = vpop.eup %2233 }
 0xd66   :  { %v1440_v51 = vmul.f32 %v2234_v50, %v2218_v6  ;;  %v1465_v52 = vpop.permute.xlu1 %1464 }
 0xd67   :  { %v1470_v43 = vsel %vm345_vm9, %v1465_v52, 0 }
 0xd68   :  { %v1442_v53 = vpack.c.bf16 %v1440_v51, %v1440_v51  ;;  %1479 = vmatpush.bf16.msra.mxu3 %v1470_v43 }
 0xd6b   :  { %2014 = vmatmul.msk.bf16.vlgmr.msra.gmra.mxu3 %vm80_vm0, %v1442_v53 }
 0xd6e   :  { %v1552_v54 = vpop.xlane.xlu2 %1551 }
 0xd6f   :  { %2235 = vrcp.f32 %v1552_v54 }
 0xd71   :  { %v1560_v55 = vpop.permute.xlu0 %1559 }
 0xd72   :  { %v1565_v56 = vsel %vm345_vm9, %v1560_v55, 0 }
 0xd73   :  { %1574 = vmatpush.bf16.msrb.mxu2 %v1565_v56 }
 0xd75   :  { %v2236_v58 = vpop.eup %2235 }
 0xd76   :  { %v1556_v57 = vmul.f32 %v2236_v58, %v2790_v12  ;;  %v1581_v59 = vpop.permute.xlu2 %1580 }
 0xd77   :  { %v1586_v60 = vsel %vm345_vm9, %v1581_v59, 0 }
 0xd78   :  { %v1558_v61 = vpack.c.bf16 %v1556_v57, %v1556_v57  ;;  %1595 = vmatpush.bf16.msrb.mxu3 %v1586_v60  ;;  %v2082_v60 = vld [vmem:[%s2926_s15 + $0x18] sm:$0xff] }
 0xd79   :  { %1763 = vmatpush.bf16.msra.mxu1 %v2082_v60 }
 0xd7b   :  { %2018 = vmatmul.msk.bf16.vlgmr.msrb.gmra.mxu3 %vm80_vm0, %v1558_v61 }
 0xd91   :  { %v1549_v21 = vpop.xlane.xlu1 %1548 }
 0xd92   :  { %2237 = vrcp.f32 %v1549_v21 }
 0xd98   :  { %v2238_v62 = vpop.eup %2237 }
 0xd99   :  { %v1555_v63 = vmul.f32 %v2238_v62, %v2222_v22 }
 0xd9b   :  { %v1557_v1 = vpack.c.bf16 %v1555_v63, %v1555_v63  ;;  %v2081_v63 = vld [vmem:[%s2926_s15 + $0x10] sm:$0xff] }
 0xd9c   :  { %1764 = vmatpush.bf16.msra.mxu1 %v2081_v63 }
 0xd9d   :  { %2017 = vmatmul.msk.bf16.vlgmr.msrb.gmra.mxu2 %vm80_vm0, %v1557_v1 }
 0xdc5   :  { %v1228_v2 = vpop.f32.mrf.mxu2 }
 0xdcd   :  { %v1230_v3 = vpop.f32.mrf.mxu2  ;;  %v1249_v4 = vpop.f32.mrf.mxu3 }
 0xdd5   :  { %v1251_v5 = vpop.f32.mrf.mxu3  ;;  %v1344_v6 = vpop.f32.mrf.mxu2 }
 0xddd   :  { %v1346_v7 = vpop.f32.mrf.mxu2  ;;  %v1365_v8 = vpop.f32.mrf.mxu3 }
 0xdde   :  { %v2116_v9 = vpack.i.bf16 %v1365_v8, %v1344_v6 }
 0xde0   :  { %2117 = vrot.lane.b32.xlu0 %v2116_v9, %s2966_s0 }
 0xde5   :  { %v1367_v10 = vpop.f32.mrf.mxu3  ;;  %v1460_v11 = vpop.f32.mrf.mxu2 }
 0xded   :  { %v1462_v12 = vpop.f32.mrf.mxu2 }
 0xdee   :  { %v1481_v13 = vpop.f32.mrf.mxu3 }
 0xdef   :  { %v2121_v14 = vpack.i.bf16 %v1481_v13, %v1460_v11 }
 0xdf1   :  { %2122 = vrot.lane.b32.xlu0 %v2121_v14, %s2967_s27 }
 0xdf6   :  { %v1483_v15 = vpop.f32.mrf.mxu3 }
 0xdfe   :  { %v1597_v16 = vpop.f32.mrf.mxu3 }
 0xe06   :  { %v1599_v17 = vpop.f32.mrf.mxu3 }
 0xe20   :  { %v1576_v19 = vpop.f32.mrf.mxu2 }
 0xe21   :  { %v2126_v20 = vpack.i.bf16 %v1597_v16, %v1576_v19 }
 0xe23   :  { %2127 = vrot.lane.b32.xlu2 %v2126_v20, %s2968_s29  ;;  %v2149_v20 = vld [vmem:[%s2924_s14 + $0x1] ss:$0 sm:$0xff] }
 0xe28   :  { %v1578_v22 = vpop.f32.mrf.mxu2 }
 0xe52   :  { %v2118_v27 = vpop.permute.xlu0 %2117 }
 0xe53   :  { %v2120_v28 = vunpack.i.h.bf16 %v2118_v27  ;;  %v2119_v29 = vunpack.i.l.bf16 %v2118_v27 }
 0xe55   :  { %v1626_v39 = vsel %vm80_vm0, %v1249_v4, %v2120_v28  ;;  %v1625_v34 = vsel %vm80_vm0, %v1228_v2, %v2119_v29  ;;  %v2150_v29 = vld [vmem:[%s2925_s16 + $0x1] ss:$0 sm:$0xff] }
 0xe63   :  { %v2123_v25 = vpop.permute.xlu0 %2122 }
 0xe64   :  { %v2125_v33 = vunpack.i.h.bf16 %v2123_v25  ;;  %v2124_v31 = vunpack.i.l.bf16 %v2123_v25 }
 0xe66   :  { %v1628_v38 = vsel %vm757_vm10, %v1626_v39, %v2125_v33  ;;  %v1627_v41 = vsel %vm757_vm10, %v1625_v34, %v2124_v31 }
 0xe7d   :  { %v2128_v30 = vpop.permute.xlu2 %2127 }
 0xe7e   :  { %v2130_v36 = vunpack.i.h.bf16 %v2128_v30  ;;  %v2129_v37 = vunpack.i.l.bf16 %v2128_v30 }
 0xe80   :  { %v1630_v42 = vsel %vm760_vm11, %v1628_v38, %v2130_v36  ;;  %v1629_v44 = vsel %vm760_vm11, %v1627_v41, %v2129_v37 }
 0xe81   :  { %v1631_v18 = vpack.c.bf16 %v1630_v42, %v1629_v44 }
 0xe83   :  { %2032 = vmatmul.msk.bf16.vlgmr.msra.gmra.mxu0 %vm133_vm1, %v1631_v18  ;;  %v2084_v18 = vld [vmem:[%s2928_s17 + $0x18] sm:$0xff] }
 0xe84   :  { %1855 = vmatpush.bf16.msra.mxu2 %v2084_v18 }
 0xf00   :  { %v1666_v46 = vpop.f32.mrf.mxu0 }
 0xf01   :  { %v1667_v47 = vadd.f32 %v2147_v45, %v1666_v46 }
 0xf03   :  { %v2840_v48 = vadd.f32 %v1667_v47, %v2655_v35 }
 0xf05   :  { %v1677_v24 = vsel %vm133_vm1, %v2840_v48, 0.0 }
 0xf06   :  { %1678 = vadd.xlane.f32.xlu1 %v1677_v24 }
 0xf08   :  { %v1668_v49 = vpop.f32.mrf.mxu0 }
 0xf09   :  { %v1669_v50 = vadd.f32 %v2147_v45, %v1668_v49 }
 0xf0b   :  { %v2845_v51 = vadd.f32 %v1669_v50, %v2662_v40  ;;  %v2083_v50 = vld [vmem:[%s2928_s17 + $0x10] sm:$0xff] }
 0xf0c   :  { %1856 = vmatpush.bf16.msra.mxu2 %v2083_v50 }
 0xf0d   :  { %v1680_v52 = vsel %vm133_vm1, %v2845_v51, 0.0 }
 0xf0e   :  { %1681 = vadd.xlane.f32.xlu0 %v1680_v52 }
 0xf79   :  { %v1679_v43 = vpop.xlane.xlu1 %1678 }
 0xf7a   :  { %v1683_v53 = vmul.f32 %v1679_v43, %v2419_v32 }
 0xf7c   :  { %v1685_v54 = vsub.f32 %v2840_v48, %v1683_v53 }
 0xf7e   :  { %v1687_v35 = vmul.f32 %v1685_v54, %v1685_v54 }
 0xf80   :  { %v1689_v55 = vsel %vm133_vm1, %v1687_v35, 0.0 }
 0xf81   :  { %v1682_v56 = vpop.xlane.xlu0 %1681  ;;  %1690 = vadd.xlane.f32.xlu2 %v1689_v55 }
 0xf82   :  { %v1684_v58 = vmul.f32 %v1682_v56, %v2419_v32 }
 0xf84   :  { %v1686_v57 = vsub.f32 %v2845_v51, %v1684_v58 }
 0xf86   :  { %v1688_v40 = vmul.f32 %v1686_v57, %v1686_v57 }
 0xf88   :  { %v1692_v59 = vsel %vm133_vm1, %v1688_v40, 0.0 }
 0xf89   :  { %1693 = vadd.xlane.f32.xlu1 %v1692_v59 }
 0xff4   :  { %v1691_v61 = vpop.xlane.xlu2 %1690 }
 0xff5   :  { %v1695_v21 = vmul.f32 %v1691_v61, %v2419_v32 }
 0xff7   :  { %v1697_v62 = vadd.f32 1e-05, %v1695_v21 }
 0xff9   :  { %2239 = vrsqrt.f32 %v1697_v62  ;;  %vm1705_vm9 = vweird.f32 %v1697_v62 }
 0xffc   :  { %v1694_v1 = vpop.xlane.xlu1 %1693 }
 0xffd   :  { %v1696_v2 = vmul.f32 %v1694_v1, %v2419_v32  ;;  %v2148_v32 = vld [vmem:[%s2923_s13 + $0x1] ss:$0 sm:$0xff] }
 0xfff   :  { %v2240_v3 = vpop.eup %2239  ;;  %v1698_v4 = vadd.f32 1e-05, %v1696_v2 }
0x1000   :  { %v1700_v5 = vmul.f32 %v2240_v3, %v1697_v62  ;;  %vm1706_vm0 = vweird.f32 %v2240_v3 }
0x1001   :  { %2241 = vrsqrt.f32 %v1698_v4  ;;  %vm1707_vm10 = vmor %vm1705_vm9, %vm1706_vm0  ;;  %vm1715_vm15 = vweird.f32 %v1698_v4 }
0x1002   :  { %v1701_v6 = vmul.f32 %v2240_v3, %v1700_v5 }
0x1004   :  { %v1702_v7 = vmul.f32 0.5, %v1701_v6 }
0x1006   :  { %v1703_v8 = vsub.f32 1.5, %v1702_v7 }
0x1007   :  { %v2242_v9 = vpop.eup %2241 }
0x1008   :  { %v1704_v10 = vmul.f32 %v2240_v3, %v1703_v8  ;;  %v1710_v11 = vmul.f32 %v2242_v9, %v1698_v4  ;;  %vm1716_vm11 = vweird.f32 %v2242_v9 }
0x1009   :  { %vm1717_vm2 = vmor %vm1715_vm15, %vm1716_vm11 }
0x100a   :  { %v1711_v12 = vmul.f32 %v2242_v9, %v1710_v11  ;;  %v1708_v13 = vsel %vm1707_vm10, %v2240_v3, %v1704_v10 }
0x100b   :  { %v1719_v16 = vmul.f32 %v1708_v13, %v1685_v54 }
0x100c   :  { %v1712_v14 = vmul.f32 0.5, %v1711_v12 }
0x100d   :  { %v1724_v22 = vmul.f32 %v2148_v32, %v1719_v16 }
0x100e   :  { %v1713_v15 = vsub.f32 1.5, %v1712_v14 }
0x100f   :  { %v1729_v27 = vadd.f32 %v2149_v20, %v1724_v22 }
0x1010   :  { %v1714_v17 = vmul.f32 %v2242_v9, %v1713_v15 }
0x1012   :  { %v1718_v19 = vsel %vm1717_vm2, %v2242_v9, %v1714_v17 }
0x1013   :  { %v1720_v23 = vmul.f32 %v1718_v19, %v1686_v57 }
0x1015   :  { %v1725_v26 = vmul.f32 %v2148_v32, %v1720_v23 }
0x1017   :  { %v1730_v25 = vadd.f32 %v2149_v20, %v1725_v26 }
0x1019   :  { %v1731_v28 = vpack.c.bf16 %v1730_v25, %v1729_v27  ;;  %v1870_v27 = vld [vmem:[%s2930_s19 + $0x18] sm:$0xff]  ;;  %v1869_v25 = vld [vmem:[%s2930_s19 + $0x10] sm:$0xff] }
0x101a   :  { %1893 = vmatpush.msra.mxu3 %v1870_v27 }
0x101b   :  { %2048 = vmatmul.msk.bf16.vlgmr.msra.gmra.mxu1 %vm133_vm1, %v1731_v28  ;;  %v1867_v28 = vld [vmem:[%s2930_s19] sm:$0xff] }
0x101c   :  { %1894 = vmatpush.msra.mxu3 %v1869_v25 }
0x1098   :  { %v1766_v33 = vpop.f32.mrf.mxu1 }
0x1099   :  { %v1767_v31 = vadd.f32 %v2150_v29, %v1766_v33 }
0x109b   :  { %v1773_v30 = vmul.f32 0.70710677, %v1767_v31  ;;  %v1771_v17 = vmul.f32 0.5, %v1767_v31 }
0x109d   :  { %v1779_v39 = vand.u32 2147483647, %v1773_v30  ;;  %vm1775_vm3 = vcmp.ge.f32.partialorder %v1773_v30, 0.0 }
0x109e   :  { %v1777_v11 = vsel %vm1775_vm3, 1.0, %v2270_v0 }
0x109f   :  { %v1781_v34 = vmul.f32 0.3275911, %v1779_v39  ;;  %v1805_v46 = vsub.f32 0.0, %v1779_v39 }
0x10a0   :  { %v1768_v36 = vpop.f32.mrf.mxu1 }
0x10a1   :  { %v1783_v37 = vadd.f32 1.0, %v1781_v34  ;;  %v1769_v38 = vadd.f32 %v2150_v29, %v1768_v36  ;;  %v1807_v52 = vmul.f32 %v1805_v46, %v1779_v39  ;;  %v2151_v29 = vld [vmem:[%s2927_s18 + $0x1] ss:$0 sm:$0xff] }
0x10a3   :  { %2243 = vrcp.f32 %v1783_v37  ;;  %v1774_v41 = vmul.f32 0.70710677, %v1769_v38  ;;  %v1809_v35 = vmul.f32 1.442695, %v1807_v52  ;;  %v1772_v19 = vmul.f32 0.5, %v1769_v38 }
0x10a5   :  { %v1780_v42 = vand.u32 2147483647, %v1774_v41  ;;  %vm1776_vm4 = vcmp.ge.f32.partialorder %v1774_v41, 0.0  ;;  %v2152_v41 = vld [vmem:[%s2929_s20] ss:$0 sm:$0xff] }
0x10a6   :  { %v1778_v15 = vsel %vm1776_vm4, 1.0, %v2270_v0  ;;  %v1868_v0 = vld [vmem:[%s2930_s19 + $0x8] sm:$0xff] }
0x10a7   :  { %v1782_v44 = vmul.f32 0.3275911, %v1780_v42  ;;  %v1806_v55 = vsub.f32 0.0, %v1780_v42  ;;  %1895 = vmatpush.msra.mxu3 %v1868_v0 }
0x10a9   :  { %v2244_v45 = vpop.eup %2243  ;;  %v1784_v47 = vadd.f32 1.0, %v1782_v44  ;;  %v1808_v59 = vmul.f32 %v1806_v55, %v1780_v42  ;;  %1896 = vmatpush.msra.mxu3 %v1867_v28 }
0x10aa   :  { %v1787_v24 = vmul.f32 1.0614054, %v2244_v45 }
0x10ab   :  { %2245 = vrcp.f32 %v1784_v47  ;;  %v1811_v63 = vmul.f32 1.442695, %v1808_v59 }
0x10ac   :  { %v1789_v49 = vadd.f32 -1.4531521, %v1787_v24  ;;  %2247 = vpow2.f32 %v1809_v35 }
0x10ad   :  { %2249 = vpow2.f32 %v1811_v63 }
0x10ae   :  { %v1791_v43 = vmul.f32 %v2244_v45, %v1789_v49 }
0x10b0   :  { %v1793_v53 = vadd.f32 1.4214138, %v1791_v43 }
0x10b1   :  { %v2246_v54 = vpop.eup %2245 }
0x10b2   :  { %v1795_v56 = vmul.f32 %v2244_v45, %v1793_v53  ;;  %v1788_v58 = vmul.f32 1.0614054, %v2246_v54  ;;  %v2248_v3 = vpop.eup %2247 }
0x10b3   :  { %v2250_v10 = vpop.eup %2249 }
0x10b4   :  { %v1797_v57 = vadd.f32 -0.28449672, %v1795_v56  ;;  %v1790_v40 = vadd.f32 -1.4531521, %v1788_v58 }
0x10b6   :  { %v1799_v60 = vmul.f32 %v2244_v45, %v1797_v57  ;;  %v1792_v61 = vmul.f32 %v2246_v54, %v1790_v40 }
0x10b8   :  { %v1801_v21 = vadd.f32 0.2548296, %v1799_v60  ;;  %v1794_v62 = vadd.f32 1.4214138, %v1792_v61 }
0x10ba   :  { %v1803_v1 = vmul.f32 %v2244_v45, %v1801_v21  ;;  %v1796_v2 = vmul.f32 %v2246_v54, %v1794_v62 }
0x10bc   :  { %v1813_v4 = vmul.f32 %v2248_v3, %v1803_v1  ;;  %v1798_v5 = vadd.f32 -0.28449672, %v1796_v2 }
0x10be   :  { %v1800_v6 = vmul.f32 %v2246_v54, %v1798_v5  ;;  %v1815_v7 = vsub.f32 1.0, %v1813_v4 }
0x10c0   :  { %v1802_v8 = vadd.f32 0.2548296, %v1800_v6  ;;  %v1817_v12 = vmul.f32 %v1815_v7, %v1777_v11 }
0x10c2   :  { %v1804_v9 = vmul.f32 %v2246_v54, %v1802_v8  ;;  %v1819_v32 = vadd.f32 1.0, %v1817_v12 }
0x10c4   :  { %v1814_v13 = vmul.f32 %v2250_v10, %v1804_v9  ;;  %v1821_v22 = vmul.f32 %v1819_v32, %v1771_v17 }
0x10c6   :  { %v1816_v14 = vsub.f32 1.0, %v1814_v13 }
0x10c8   :  { %v1818_v16 = vmul.f32 %v1816_v14, %v1778_v15 }
0x10ca   :  { %v1820_v20 = vadd.f32 1.0, %v1818_v16 }
0x10cc   :  { %v1822_v23 = vmul.f32 %v1820_v20, %v1772_v19 }
0x10ce   :  { %v1823_v26 = vpack.c.bf16 %v1822_v23, %v1821_v22 }
0x10d0   :  { %2062 = vmatmul.msk.bf16.vlgmr.msra.gmra.mxu2 %vm133_vm1, %v1823_v26 }
0x1153   :  { %v1858_v33 = vpop.f32.mrf.mxu2 }
0x1154   :  { %v1859_v31 = vadd.f32 %v2151_v29, %v1858_v33 }
0x1156   :  { %v1863_v30 = vadd.f32 %v1859_v31, %v2840_v48 }
0x1158   :  { %v1865_v39 = vmax.f32 %v1863_v30, 0.0 }
0x115a   :  { %2063 = vmatmul.msk.f32.vlgmr.msra.gmra.mxu3 %vm133_vm1, %v1865_v39 }
0x115b   :  { %v1860_v34 = vpop.f32.mrf.mxu2 }
0x115c   :  { %v1861_v36 = vadd.f32 %v2151_v29, %v1860_v34 }
0x115e   :  { %v1864_v37 = vadd.f32 %v1861_v36, %v2845_v51 }
0x1160   :  { %v1866_v38 = vmax.f32 %v1864_v37, 0.0 }
0x1162   :  { %2064 = vmatmul.msk.f32.gmra.mxu3 %vm133_vm1, %v1866_v38 }
0x11dd   :  { %v1898_v42 = vpop.f32.mrf.mxu3 }
0x11de   :  { %v1899_v44 = vadd.f32 %v2152_v41, %v1898_v42 }
0x11e0   :  { %1904 = vst [vmem:[%s2931_s21] sm:$0xff] %v1899_v44 }
0x11e5   :  { %v1901_v48 = vpop.f32.mrf.mxu3 }
0x11e6   :  { %v1902_v18 = vadd.f32 %v2152_v41, %v1901_v48 }
0x11e8   :  { %1905 = vst [vmem:[%s2931_s21 + $0x8] sm:$0xff] %v1902_v18 }

</bundles_post_ra>
